<compile_context>
chip_gen: v7x
topology: tpu7x:2x2x1
jax: 0.10.0
libtpu: 0.0.40
codegen_flags: <defaults>
</compile_context>

<pallas_src>
import functools

import jax
import jax.numpy as jnp
import numpy as np
from jax.experimental import pallas as pl
from jax.experimental.pallas import tpu as pltpu


def _rate_lstm_kernel(x_ref,      # (T, B, 1)   f32 raw input, time-major
                      aux_ref,    # (8, 4*HP)   f32: [wih0; b0; b1; fcw|0; fcb|0; ...]
                      wrec_hbm,   # (3*HP, 4*HP) bf16 recurrent weights, in HBM (pl.ANY)
                      out_ref,    # (B, 1)      f32
                      wrec_vmem,  # scratch VMEM (3*HP, 4*HP) bf16
                      sem,        # scalar DMA semaphore
                      *, hp):
    T = x_ref.shape[0]
    B = x_ref.shape[1]
    G = 4 * hp

    # Kick off the recurrent-weight DMA immediately; the t=0 layer-0 step below
    # only needs x / wih0 / b0 (already resident), so the copy is hidden.
    wcopy = pltpu.make_async_copy(wrec_hbm, wrec_vmem, sem)
    wcopy.start()

    # Hoisted broadcasts of the tiny constants (JAX does not CSE broadcasts).
    wih0_b = jnp.broadcast_to(aux_ref[0:1, :], (B, G))   # layer-0 input weight row
    b0_b = jnp.broadcast_to(aux_ref[1:2, :], (B, G))     # layer-0 bias (b_ih + b_hh)
    b1_b = jnp.broadcast_to(aux_ref[2:3, :], (B, G))     # layer-1 bias (b_ih + b_hh)
    fcw = aux_ref[3:4, 0:hp]                              # (1, HP) fc weight row
    fcb = aux_ref[4:5, 0:1]                               # (1, 1)  fc bias

    def xgate(t):
        # Layer-0 input projection for timestep t.  D_in == 1, so this is an
        # outer product on the VPU (no degenerate K=1 MXU matmul).
        return x_ref[t] * wih0_b + b0_b                   # (B,1)*(B,G)+(B,G) -> (B,G)

    def lstm_update(gates, c):
        # torch gate order (i, f, g, o); each gate block is one full 128-lane vreg.
        i = jax.nn.sigmoid(gates[:, 0 * hp:1 * hp])
        f = jax.nn.sigmoid(gates[:, 1 * hp:2 * hp])
        g = jnp.tanh(gates[:, 2 * hp:3 * hp])
        o = jax.nn.sigmoid(gates[:, 3 * hp:4 * hp])
        c_new = f * c + i * g
        h_new = o * jnp.tanh(c_new)
        return h_new, c_new

    zeros = jnp.zeros((B, hp), jnp.float32)
    h1, c1 = zeros, zeros                                 # layer-1 state (pad lanes stay 0)

    # t = 0: hidden states are zero, so layer-0 gates reduce to the input proj.
    h0, c0 = lstm_update(xgate(0), zeros)

    # Recurrent weights are needed from here on.
    wcopy.wait()

    # Wavefront schedule, statically unrolled: iteration t computes layer1(t-1)
    # (from h0_{t-1}, h1_{t-2}) and layer0(t) (from h0_{t-1}) with two
    # INDEPENDENT bf16 MXU dots.
    for t in range(1, T + 1):
        lhs01 = jnp.concatenate([h0, h1], axis=1).astype(jnp.bfloat16)   # (B, 2*HP)
        g1 = jnp.dot(lhs01, wrec_vmem[hp:3 * hp, :],
                     preferred_element_type=jnp.float32) + b1_b           # layer-1, step t-1
        if t < T:
            g0 = jnp.dot(h0.astype(jnp.bfloat16), wrec_vmem[0:hp, :],
                         preferred_element_type=jnp.float32) + xgate(t)   # layer-0, step t
            h0_new, c0_new = lstm_update(g0, c0)
        else:
            h0_new, c0_new = h0, c0
        h1, c1 = lstm_update(g1, c1)
        h0, c0 = h0_new, c0_new

    # fc(out[:, -1, :]) as a VPU multiply + lane reduction (no trailing MXU push).
    out_ref[...] = jnp.sum(h1 * fcw, axis=1, keepdims=True) + fcb


def pack_rate_lstm_params(params):
    """One-time (model-load-time) packing of PyTorch-layout params for the kernel.

    Returns:
      wrec: (3*HP, 4*HP) bf16   rows [whh0; wih1; whh1], gate blocks lane-padded.
      aux : (8, 4*HP)    f32    rows [wih0_row; b0; b1; fcw (first H lanes); fcb@(4,0)].
    """
    H = params["w_hh_l0"].shape[1]
    assert params["w_ih_l0"].shape[1] == 1, "kernel assumes input_dim == 1 (RateLSTM default)"
    HP = max(128, ((H + 127) // 128) * 128)               # lane-aligned per-gate width
    G = 4 * HP

    def pad_gate_cols(w):
        # (rows, 4H) -> (rows, G): each H-wide gate block zero-padded to HP lanes.
        parts = jnp.split(w, 4, axis=1)
        return jnp.concatenate([jnp.pad(p, ((0, 0), (0, HP - H))) for p in parts], axis=1)

    def pad_rows(w):
        return jnp.pad(w, ((0, HP - H), (0, 0)))

    whh0 = pad_rows(pad_gate_cols(params["w_hh_l0"].T))   # (HP, G): layer-0, h0 rows
    wih1 = pad_rows(pad_gate_cols(params["w_ih_l1"].T))   # (HP, G): layer-1, h0 rows
    whh1 = pad_rows(pad_gate_cols(params["w_hh_l1"].T))   # (HP, G): layer-1, h1 rows
    wrec = jnp.concatenate([whh0, wih1, whh1], axis=0).astype(jnp.bfloat16)  # (3*HP, G)

    wih0 = pad_gate_cols(params["w_ih_l0"].T)                                    # (1, G)
    b0 = pad_gate_cols((params["b_ih_l0"] + params["b_hh_l0"]).reshape(1, -1))   # (1, G)
    b1 = pad_gate_cols((params["b_ih_l1"] + params["b_hh_l1"]).reshape(1, -1))   # (1, G)

    aux = jnp.zeros((8, G), jnp.float32)
    aux = aux.at[0, :].set(wih0[0])
    aux = aux.at[1, :].set(b0[0])
    aux = aux.at[2, :].set(b1[0])
    aux = aux.at[3, :H].set(params["fc_w"][0])
    aux = aux.at[4, 0].set(params["fc_b"][0])
    return wrec, aux


@jax.jit
def rate_lstm_forward(x, wrec, aux):
    """x: (B, T, 1) f32 batch_first; wrec/aux from pack_rate_lstm_params. Returns (B, 1)."""
    B, T, D = x.shape
    hp = aux.shape[1] // 4
    xt = jnp.swapaxes(x.astype(jnp.float32), 0, 1)        # (T, B, 1), time-major

    return pl.pallas_call(
        functools.partial(_rate_lstm_kernel, hp=hp),
        out_shape=jax.ShapeDtypeStruct((B, 1), jnp.float32),
        in_specs=[
            pl.BlockSpec(memory_space=pltpu.MemorySpace.VMEM),   # x (tiny)
            pl.BlockSpec(memory_space=pltpu.MemorySpace.VMEM),   # aux (16 KiB)
            pl.BlockSpec(memory_space=pl.ANY),                   # wrec: manual DMA in-kernel
        ],
        out_specs=pl.BlockSpec(memory_space=pltpu.MemorySpace.VMEM),
        scratch_shapes=[
            pltpu.VMEM(wrec.shape, wrec.dtype),                  # (3*HP, 4*HP) bf16
            pltpu.SemaphoreType.DMA(()),
        ],
    )(xt, aux, wrec)


def init_params(key, input_dim=1, hidden_dim=64):
    """Deterministic init matching PyTorch LSTM/Linear shapes (uniform(-k, k), k=1/sqrt(H))."""
    H = hidden_dim
    k = 1.0 / np.sqrt(H)
    names_shapes = [
        ("w_ih_l0", (4 * H, input_dim)), ("w_hh_l0", (4 * H, H)),
        ("b_ih_l0", (4 * H,)), ("b_hh_l0", (4 * H,)),
        ("w_ih_l1", (4 * H, H)), ("w_hh_l1", (4 * H, H)),
        ("b_ih_l1", (4 * H,)), ("b_hh_l1", (4 * H,)),
        ("fc_w", (1, H)), ("fc_b", (1,)),
    ]
    keys = jax.random.split(key, len(names_shapes))
    return {
        name: jax.random.uniform(kk, shape, jnp.float32, -k, k)
        for kk, (name, shape) in zip(keys, names_shapes)
    }


def rate_lstm_reference(x, params):
    """Pure-JAX f32 reference of the PyTorch forward (eval mode)."""
    B, T, D = x.shape
    H = params["w_hh_l0"].shape[1]

    def cell(x_t, h, c, wih, whh, b):
        gates = x_t @ wih.T + h @ whh.T + b
        i, f, g, o = jnp.split(gates, 4, axis=-1)
        c = jax.nn.sigmoid(f) * c + jax.nn.sigmoid(i) * jnp.tanh(g)
        h = jax.nn.sigmoid(o) * jnp.tanh(c)
        return h, c

    h0 = c0 = h1 = c1 = jnp.zeros((B, H), jnp.float32)
    b0 = params["b_ih_l0"] + params["b_hh_l0"]
    b1 = params["b_ih_l1"] + params["b_hh_l1"]
    for t in range(T):
        h0, c0 = cell(x[:, t, :], h0, c0, params["w_ih_l0"], params["w_hh_l0"], b0)
        h1, c1 = cell(h0, h1, c1, params["w_ih_l1"], params["w_hh_l1"], b1)
    return h1 @ params["fc_w"].T + params["fc_b"]


if __name__ == "__main__":
    key = jax.random.PRNGKey(0)
    k_param, k_x = jax.random.split(key)

    B, T, D_in, H = 2, 8, 1, 64          # RateLSTM defaults: input_dim=1, hidden_dim=64
    params = init_params(k_param, input_dim=D_in, hidden_dim=H)
    x = jax.random.normal(k_x, (B, T, D_in), jnp.float32)

    # One-time, load-time weight packing (outside the per-call jitted path).
    wrec, aux = jax.block_until_ready(pack_rate_lstm_params(params))

    out = jax.block_until_ready(rate_lstm_forward(x, wrec, aux))
    ref = jax.block_until_ready(rate_lstm_reference(x, params))

    assert out.shape == (B, 1)
    # bf16 MXU operands (f32 state/elementwise math) -> relaxed tolerance vs f32 reference.
    np.testing.assert_allclose(np.asarray(out), np.asarray(ref), rtol=2e-2, atol=2e-2)
    print("KERNEL_OK")
</pallas_src>

<mosaic_0001>
module attributes {stable_mosaic.version = 11 : i64} {
  func.func @_rate_lstm_kernel(%arg0: memref<8x2x1xf32, #tpu.memory_space<vmem>>, %arg1: memref<8x512xf32, #tpu.memory_space<vmem>>, %arg2: memref<384x512xbf16, #tpu.memory_space<any>>, %arg3: memref<2x1xf32, #tpu.memory_space<vmem>>, %arg4: memref<384x512xbf16, #tpu.memory_space<vmem>>, %arg5: memref<!tpu.dma_semaphore, #tpu.memory_space<semaphore_mem>>) attributes {dimension_semantics = [], scalar_prefetch = 0 : i64, scratch_operands = 2 : i64, tpu.core_type = #tpu.core_type<tc>} {
    tpu.enqueue_dma source(%arg2 : memref<384x512xbf16, #tpu.memory_space<any>>) target(%arg4 : memref<384x512xbf16, #tpu.memory_space<vmem>>) target_semaphore(%arg5 : memref<!tpu.dma_semaphore, #tpu.memory_space<semaphore_mem>>)
    %c0 = arith.constant 0 : index
    %c0_0 = arith.constant 0 : index
    %0 = vector.load %arg1[%c0, %c0_0] : memref<8x512xf32, #tpu.memory_space<vmem>>, vector<1x512xf32>
    %1 = vector.shape_cast %0 : vector<1x512xf32> to vector<1x512xf32>
    %2 = vector.broadcast %1 : vector<1x512xf32> to vector<2x512xf32>
    %c1 = arith.constant 1 : index
    %c0_1 = arith.constant 0 : index
    %3 = vector.load %arg1[%c1, %c0_1] : memref<8x512xf32, #tpu.memory_space<vmem>>, vector<1x512xf32>
    %4 = vector.shape_cast %3 : vector<1x512xf32> to vector<1x512xf32>
    %5 = vector.broadcast %4 : vector<1x512xf32> to vector<2x512xf32>
    %c2 = arith.constant 2 : index
    %c0_2 = arith.constant 0 : index
    %6 = vector.load %arg1[%c2, %c0_2] : memref<8x512xf32, #tpu.memory_space<vmem>>, vector<1x512xf32>
    %7 = vector.shape_cast %6 : vector<1x512xf32> to vector<1x512xf32>
    %8 = vector.broadcast %7 : vector<1x512xf32> to vector<2x512xf32>
    %c3 = arith.constant 3 : index
    %c0_3 = arith.constant 0 : index
    %9 = vector.load %arg1[%c3, %c0_3] : memref<8x512xf32, #tpu.memory_space<vmem>>, vector<1x128xf32>
    %c4 = arith.constant 4 : index
    %c0_4 = arith.constant 0 : index
    %10 = vector.load %arg1[%c4, %c0_4] : memref<8x512xf32, #tpu.memory_space<vmem>>, vector<1x1xf32>
    %cst = arith.constant 0.000000e+00 : f32
    %11 = vector.broadcast %cst : f32 to vector<2x128xf32>
    %c0_5 = arith.constant 0 : index
    %c0_6 = arith.constant 0 : index
    %c0_7 = arith.constant 0 : index
    %12 = vector.load %arg0[%c0_5, %c0_6, %c0_7] : memref<8x2x1xf32, #tpu.memory_space<vmem>>, vector<1x2x1xf32>
    %13 = vector.shape_cast %12 : vector<1x2x1xf32> to vector<2x1xf32>
    %14 = vector.broadcast %13 : vector<2x1xf32> to vector<2x512xf32>
    %15 = arith.mulf %14, %2 : vector<2x512xf32>
    %16 = arith.addf %15, %5 : vector<2x512xf32>
    %17 = vector.extract_strided_slice %16 {offsets = [0, 0], sizes = [2, 128], strides = [1, 1]} : vector<2x512xf32> to vector<2x128xf32>
    %18 = arith.negf %17 : vector<2x128xf32>
    %19 = math.exp %18 : vector<2x128xf32>
    %cst_8 = arith.constant 1.000000e+00 : f32
    %20 = vector.broadcast %cst_8 : f32 to vector<2x128xf32>
    %21 = arith.addf %20, %19 : vector<2x128xf32>
    %22 = arith.divf %20, %21 : vector<2x128xf32>
    %23 = vector.extract_strided_slice %16 {offsets = [0, 128], sizes = [2, 128], strides = [1, 1]} : vector<2x512xf32> to vector<2x128xf32>
    %24 = arith.negf %23 : vector<2x128xf32>
    %25 = math.exp %24 : vector<2x128xf32>
    %cst_9 = arith.constant 1.000000e+00 : f32
    %26 = vector.broadcast %cst_9 : f32 to vector<2x128xf32>
    %27 = arith.addf %26, %25 : vector<2x128xf32>
    %28 = arith.divf %26, %27 : vector<2x128xf32>
    %29 = vector.extract_strided_slice %16 {offsets = [0, 256], sizes = [2, 128], strides = [1, 1]} : vector<2x512xf32> to vector<2x128xf32>
    %30 = math.tanh %29 : vector<2x128xf32>
    %31 = vector.extract_strided_slice %16 {offsets = [0, 384], sizes = [2, 128], strides = [1, 1]} : vector<2x512xf32> to vector<2x128xf32>
    %32 = arith.negf %31 : vector<2x128xf32>
    %33 = math.exp %32 : vector<2x128xf32>
    %cst_10 = arith.constant 1.000000e+00 : f32
    %34 = vector.broadcast %cst_10 : f32 to vector<2x128xf32>
    %35 = arith.addf %34, %33 : vector<2x128xf32>
    %36 = arith.divf %34, %35 : vector<2x128xf32>
    %37 = arith.mulf %28, %11 : vector<2x128xf32>
    %38 = arith.mulf %22, %30 : vector<2x128xf32>
    %39 = arith.addf %37, %38 : vector<2x128xf32>
    %40 = math.tanh %39 : vector<2x128xf32>
    %41 = arith.mulf %36, %40 : vector<2x128xf32>
    tpu.wait_dma2 semaphore(%arg5 : memref<!tpu.dma_semaphore, #tpu.memory_space<semaphore_mem>>) src(%arg2 : memref<384x512xbf16, #tpu.memory_space<any>>) dst(%arg4 : memref<384x512xbf16, #tpu.memory_space<vmem>>)
    %42 = tpu.concatenate %41, %11 in 1 : vector<2x128xf32>, vector<2x128xf32> -> vector<2x256xf32>
    %43 = arith.truncf %42 : vector<2x256xf32> to vector<2x256xbf16>
    %c128 = arith.constant 128 : index
    %c0_11 = arith.constant 0 : index
    %44 = vector.load %arg4[%c128, %c0_11] : memref<384x512xbf16, #tpu.memory_space<vmem>>, vector<256x512xbf16>
    %cst_12 = arith.constant dense<0.000000e+00> : vector<2x512xf32>
    %45 = tpu.matmul %43, %44, %cst_12 {dimension_numbers = #tpu.dot_dimension_numbers<[1], [0], [0], [1], [0, 0, 1, 1], [], []>} : vector<2x256xbf16>, vector<256x512xbf16>, vector<2x512xf32> -> vector<2x512xf32>
    %46 = arith.addf %45, %8 : vector<2x512xf32>
    %47 = arith.truncf %41 : vector<2x128xf32> to vector<2x128xbf16>
    %c0_13 = arith.constant 0 : index
    %c0_14 = arith.constant 0 : index
    %48 = vector.load %arg4[%c0_13, %c0_14] : memref<384x512xbf16, #tpu.memory_space<vmem>>, vector<128x512xbf16>
    %cst_15 = arith.constant dense<0.000000e+00> : vector<2x512xf32>
    %49 = tpu.matmul %47, %48, %cst_15 {dimension_numbers = #tpu.dot_dimension_numbers<[1], [0], [0], [1], [0, 0, 1, 1], [], []>} : vector<2x128xbf16>, vector<128x512xbf16>, vector<2x512xf32> -> vector<2x512xf32>
    %c1_16 = arith.constant 1 : index
    %c0_17 = arith.constant 0 : index
    %c0_18 = arith.constant 0 : index
    %50 = vector.load %arg0[%c1_16, %c0_17, %c0_18] : memref<8x2x1xf32, #tpu.memory_space<vmem>>, vector<1x2x1xf32>
    %51 = vector.shape_cast %50 : vector<1x2x1xf32> to vector<2x1xf32>
    %52 = vector.broadcast %51 : vector<2x1xf32> to vector<2x512xf32>
    %53 = arith.mulf %52, %2 : vector<2x512xf32>
    %54 = arith.addf %53, %5 : vector<2x512xf32>
    %55 = arith.addf %49, %54 : vector<2x512xf32>
    %56 = vector.extract_strided_slice %55 {offsets = [0, 0], sizes = [2, 128], strides = [1, 1]} : vector<2x512xf32> to vector<2x128xf32>
    %57 = arith.negf %56 : vector<2x128xf32>
    %58 = math.exp %57 : vector<2x128xf32>
    %cst_19 = arith.constant 1.000000e+00 : f32
    %59 = vector.broadcast %cst_19 : f32 to vector<2x128xf32>
    %60 = arith.addf %59, %58 : vector<2x128xf32>
    %61 = arith.divf %59, %60 : vector<2x128xf32>
    %62 = vector.extract_strided_slice %55 {offsets = [0, 128], sizes = [2, 128], strides = [1, 1]} : vector<2x512xf32> to vector<2x128xf32>
    %63 = arith.negf %62 : vector<2x128xf32>
    %64 = math.exp %63 : vector<2x128xf32>
    %cst_20 = arith.constant 1.000000e+00 : f32
    %65 = vector.broadcast %cst_20 : f32 to vector<2x128xf32>
    %66 = arith.addf %65, %64 : vector<2x128xf32>
    %67 = arith.divf %65, %66 : vector<2x128xf32>
    %68 = vector.extract_strided_slice %55 {offsets = [0, 256], sizes = [2, 128], strides = [1, 1]} : vector<2x512xf32> to vector<2x128xf32>
    %69 = math.tanh %68 : vector<2x128xf32>
    %70 = vector.extract_strided_slice %55 {offsets = [0, 384], sizes = [2, 128], strides = [1, 1]} : vector<2x512xf32> to vector<2x128xf32>
    %71 = arith.negf %70 : vector<2x128xf32>
    %72 = math.exp %71 : vector<2x128xf32>
    %cst_21 = arith.constant 1.000000e+00 : f32
    %73 = vector.broadcast %cst_21 : f32 to vector<2x128xf32>
    %74 = arith.addf %73, %72 : vector<2x128xf32>
    %75 = arith.divf %73, %74 : vector<2x128xf32>
    %76 = arith.mulf %67, %39 : vector<2x128xf32>
    %77 = arith.mulf %61, %69 : vector<2x128xf32>
    %78 = arith.addf %76, %77 : vector<2x128xf32>
    %79 = math.tanh %78 : vector<2x128xf32>
    %80 = arith.mulf %75, %79 : vector<2x128xf32>
    %81 = vector.extract_strided_slice %46 {offsets = [0, 0], sizes = [2, 128], strides = [1, 1]} : vector<2x512xf32> to vector<2x128xf32>
    %82 = arith.negf %81 : vector<2x128xf32>
    %83 = math.exp %82 : vector<2x128xf32>
    %cst_22 = arith.constant 1.000000e+00 : f32
    %84 = vector.broadcast %cst_22 : f32 to vector<2x128xf32>
    %85 = arith.addf %84, %83 : vector<2x128xf32>
    %86 = arith.divf %84, %85 : vector<2x128xf32>
    %87 = vector.extract_strided_slice %46 {offsets = [0, 128], sizes = [2, 128], strides = [1, 1]} : vector<2x512xf32> to vector<2x128xf32>
    %88 = arith.negf %87 : vector<2x128xf32>
    %89 = math.exp %88 : vector<2x128xf32>
    %cst_23 = arith.constant 1.000000e+00 : f32
    %90 = vector.broadcast %cst_23 : f32 to vector<2x128xf32>
    %91 = arith.addf %90, %89 : vector<2x128xf32>
    %92 = arith.divf %90, %91 : vector<2x128xf32>
    %93 = vector.extract_strided_slice %46 {offsets = [0, 256], sizes = [2, 128], strides = [1, 1]} : vector<2x512xf32> to vector<2x128xf32>
    %94 = math.tanh %93 : vector<2x128xf32>
    %95 = vector.extract_strided_slice %46 {offsets = [0, 384], sizes = [2, 128], strides = [1, 1]} : vector<2x512xf32> to vector<2x128xf32>
    %96 = arith.negf %95 : vector<2x128xf32>
    %97 = math.exp %96 : vector<2x128xf32>
    %cst_24 = arith.constant 1.000000e+00 : f32
    %98 = vector.broadcast %cst_24 : f32 to vector<2x128xf32>
    %99 = arith.addf %98, %97 : vector<2x128xf32>
    %100 = arith.divf %98, %99 : vector<2x128xf32>
    %101 = arith.mulf %92, %11 : vector<2x128xf32>
    %102 = arith.mulf %86, %94 : vector<2x128xf32>
    %103 = arith.addf %101, %102 : vector<2x128xf32>
    %104 = math.tanh %103 : vector<2x128xf32>
    %105 = arith.mulf %100, %104 : vector<2x128xf32>
    %106 = tpu.concatenate %80, %105 in 1 : vector<2x128xf32>, vector<2x128xf32> -> vector<2x256xf32>
    %107 = arith.truncf %106 : vector<2x256xf32> to vector<2x256xbf16>
    %c128_25 = arith.constant 128 : index
    %c0_26 = arith.constant 0 : index
    %108 = vector.load %arg4[%c128_25, %c0_26] : memref<384x512xbf16, #tpu.memory_space<vmem>>, vector<256x512xbf16>
    %cst_27 = arith.constant dense<0.000000e+00> : vector<2x512xf32>
    %109 = tpu.matmul %107, %108, %cst_27 {dimension_numbers = #tpu.dot_dimension_numbers<[1], [0], [0], [1], [0, 0, 1, 1], [], []>} : vector<2x256xbf16>, vector<256x512xbf16>, vector<2x512xf32> -> vector<2x512xf32>
    %110 = arith.addf %109, %8 : vector<2x512xf32>
    %111 = arith.truncf %80 : vector<2x128xf32> to vector<2x128xbf16>
    %c0_28 = arith.constant 0 : index
    %c0_29 = arith.constant 0 : index
    %112 = vector.load %arg4[%c0_28, %c0_29] : memref<384x512xbf16, #tpu.memory_space<vmem>>, vector<128x512xbf16>
    %cst_30 = arith.constant dense<0.000000e+00> : vector<2x512xf32>
    %113 = tpu.matmul %111, %112, %cst_30 {dimension_numbers = #tpu.dot_dimension_numbers<[1], [0], [0], [1], [0, 0, 1, 1], [], []>} : vector<2x128xbf16>, vector<128x512xbf16>, vector<2x512xf32> -> vector<2x512xf32>
    %c2_31 = arith.constant 2 : index
    %c0_32 = arith.constant 0 : index
    %c0_33 = arith.constant 0 : index
    %114 = vector.load %arg0[%c2_31, %c0_32, %c0_33] : memref<8x2x1xf32, #tpu.memory_space<vmem>>, vector<1x2x1xf32>
    %115 = vector.shape_cast %114 : vector<1x2x1xf32> to vector<2x1xf32>
    %116 = vector.broadcast %115 : vector<2x1xf32> to vector<2x512xf32>
    %117 = arith.mulf %116, %2 : vector<2x512xf32>
    %118 = arith.addf %117, %5 : vector<2x512xf32>
    %119 = arith.addf %113, %118 : vector<2x512xf32>
    %120 = vector.extract_strided_slice %119 {offsets = [0, 0], sizes = [2, 128], strides = [1, 1]} : vector<2x512xf32> to vector<2x128xf32>
    %121 = arith.negf %120 : vector<2x128xf32>
    %122 = math.exp %121 : vector<2x128xf32>
    %cst_34 = arith.constant 1.000000e+00 : f32
    %123 = vector.broadcast %cst_34 : f32 to vector<2x128xf32>
    %124 = arith.addf %123, %122 : vector<2x128xf32>
    %125 = arith.divf %123, %124 : vector<2x128xf32>
    %126 = vector.extract_strided_slice %119 {offsets = [0, 128], sizes = [2, 128], strides = [1, 1]} : vector<2x512xf32> to vector<2x128xf32>
    %127 = arith.negf %126 : vector<2x128xf32>
    %128 = math.exp %127 : vector<2x128xf32>
    %cst_35 = arith.constant 1.000000e+00 : f32
    %129 = vector.broadcast %cst_35 : f32 to vector<2x128xf32>
    %130 = arith.addf %129, %128 : vector<2x128xf32>
    %131 = arith.divf %129, %130 : vector<2x128xf32>
    %132 = vector.extract_strided_slice %119 {offsets = [0, 256], sizes = [2, 128], strides = [1, 1]} : vector<2x512xf32> to vector<2x128xf32>
    %133 = math.tanh %132 : vector<2x128xf32>
    %134 = vector.extract_strided_slice %119 {offsets = [0, 384], sizes = [2, 128], strides = [1, 1]} : vector<2x512xf32> to vector<2x128xf32>
    %135 = arith.negf %134 : vector<2x128xf32>
    %136 = math.exp %135 : vector<2x128xf32>
    %cst_36 = arith.constant 1.000000e+00 : f32
    %137 = vector.broadcast %cst_36 : f32 to vector<2x128xf32>
    %138 = arith.addf %137, %136 : vector<2x128xf32>
    %139 = arith.divf %137, %138 : vector<2x128xf32>
    %140 = arith.mulf %131, %78 : vector<2x128xf32>
    %141 = arith.mulf %125, %133 : vector<2x128xf32>
    %142 = arith.addf %140, %141 : vector<2x128xf32>
    %143 = math.tanh %142 : vector<2x128xf32>
    %144 = arith.mulf %139, %143 : vector<2x128xf32>
    %145 = vector.extract_strided_slice %110 {offsets = [0, 0], sizes = [2, 128], strides = [1, 1]} : vector<2x512xf32> to vector<2x128xf32>
    %146 = arith.negf %145 : vector<2x128xf32>
    %147 = math.exp %146 : vector<2x128xf32>
    %cst_37 = arith.constant 1.000000e+00 : f32
    %148 = vector.broadcast %cst_37 : f32 to vector<2x128xf32>
    %149 = arith.addf %148, %147 : vector<2x128xf32>
    %150 = arith.divf %148, %149 : vector<2x128xf32>
    %151 = vector.extract_strided_slice %110 {offsets = [0, 128], sizes = [2, 128], strides = [1, 1]} : vector<2x512xf32> to vector<2x128xf32>
    %152 = arith.negf %151 : vector<2x128xf32>
    %153 = math.exp %152 : vector<2x128xf32>
    %cst_38 = arith.constant 1.000000e+00 : f32
    %154 = vector.broadcast %cst_38 : f32 to vector<2x128xf32>
    %155 = arith.addf %154, %153 : vector<2x128xf32>
    %156 = arith.divf %154, %155 : vector<2x128xf32>
    %157 = vector.extract_strided_slice %110 {offsets = [0, 256], sizes = [2, 128], strides = [1, 1]} : vector<2x512xf32> to vector<2x128xf32>
    %158 = math.tanh %157 : vector<2x128xf32>
    %159 = vector.extract_strided_slice %110 {offsets = [0, 384], sizes = [2, 128], strides = [1, 1]} : vector<2x512xf32> to vector<2x128xf32>
    %160 = arith.negf %159 : vector<2x128xf32>
    %161 = math.exp %160 : vector<2x128xf32>
    %cst_39 = arith.constant 1.000000e+00 : f32
    %162 = vector.broadcast %cst_39 : f32 to vector<2x128xf32>
    %163 = arith.addf %162, %161 : vector<2x128xf32>
    %164 = arith.divf %162, %163 : vector<2x128xf32>
    %165 = arith.mulf %156, %103 : vector<2x128xf32>
    %166 = arith.mulf %150, %158 : vector<2x128xf32>
    %167 = arith.addf %165, %166 : vector<2x128xf32>
    %168 = math.tanh %167 : vector<2x128xf32>
    %169 = arith.mulf %164, %168 : vector<2x128xf32>
    %170 = tpu.concatenate %144, %169 in 1 : vector<2x128xf32>, vector<2x128xf32> -> vector<2x256xf32>
    %171 = arith.truncf %170 : vector<2x256xf32> to vector<2x256xbf16>
    %c128_40 = arith.constant 128 : index
    %c0_41 = arith.constant 0 : index
    %172 = vector.load %arg4[%c128_40, %c0_41] : memref<384x512xbf16, #tpu.memory_space<vmem>>, vector<256x512xbf16>
    %cst_42 = arith.constant dense<0.000000e+00> : vector<2x512xf32>
    %173 = tpu.matmul %171, %172, %cst_42 {dimension_numbers = #tpu.dot_dimension_numbers<[1], [0], [0], [1], [0, 0, 1, 1], [], []>} : vector<2x256xbf16>, vector<256x512xbf16>, vector<2x512xf32> -> vector<2x512xf32>
    %174 = arith.addf %173, %8 : vector<2x512xf32>
    %175 = arith.truncf %144 : vector<2x128xf32> to vector<2x128xbf16>
    %c0_43 = arith.constant 0 : index
    %c0_44 = arith.constant 0 : index
    %176 = vector.load %arg4[%c0_43, %c0_44] : memref<384x512xbf16, #tpu.memory_space<vmem>>, vector<128x512xbf16>
    %cst_45 = arith.constant dense<0.000000e+00> : vector<2x512xf32>
    %177 = tpu.matmul %175, %176, %cst_45 {dimension_numbers = #tpu.dot_dimension_numbers<[1], [0], [0], [1], [0, 0, 1, 1], [], []>} : vector<2x128xbf16>, vector<128x512xbf16>, vector<2x512xf32> -> vector<2x512xf32>
    %c3_46 = arith.constant 3 : index
    %c0_47 = arith.constant 0 : index
    %c0_48 = arith.constant 0 : index
    %178 = vector.load %arg0[%c3_46, %c0_47, %c0_48] : memref<8x2x1xf32, #tpu.memory_space<vmem>>, vector<1x2x1xf32>
    %179 = vector.shape_cast %178 : vector<1x2x1xf32> to vector<2x1xf32>
    %180 = vector.broadcast %179 : vector<2x1xf32> to vector<2x512xf32>
    %181 = arith.mulf %180, %2 : vector<2x512xf32>
    %182 = arith.addf %181, %5 : vector<2x512xf32>
    %183 = arith.addf %177, %182 : vector<2x512xf32>
    %184 = vector.extract_strided_slice %183 {offsets = [0, 0], sizes = [2, 128], strides = [1, 1]} : vector<2x512xf32> to vector<2x128xf32>
    %185 = arith.negf %184 : vector<2x128xf32>
    %186 = math.exp %185 : vector<2x128xf32>
    %cst_49 = arith.constant 1.000000e+00 : f32
    %187 = vector.broadcast %cst_49 : f32 to vector<2x128xf32>
    %188 = arith.addf %187, %186 : vector<2x128xf32>
    %189 = arith.divf %187, %188 : vector<2x128xf32>
    %190 = vector.extract_strided_slice %183 {offsets = [0, 128], sizes = [2, 128], strides = [1, 1]} : vector<2x512xf32> to vector<2x128xf32>
    %191 = arith.negf %190 : vector<2x128xf32>
    %192 = math.exp %191 : vector<2x128xf32>
    %cst_50 = arith.constant 1.000000e+00 : f32
    %193 = vector.broadcast %cst_50 : f32 to vector<2x128xf32>
    %194 = arith.addf %193, %192 : vector<2x128xf32>
    %195 = arith.divf %193, %194 : vector<2x128xf32>
    %196 = vector.extract_strided_slice %183 {offsets = [0, 256], sizes = [2, 128], strides = [1, 1]} : vector<2x512xf32> to vector<2x128xf32>
    %197 = math.tanh %196 : vector<2x128xf32>
    %198 = vector.extract_strided_slice %183 {offsets = [0, 384], sizes = [2, 128], strides = [1, 1]} : vector<2x512xf32> to vector<2x128xf32>
    %199 = arith.negf %198 : vector<2x128xf32>
    %200 = math.exp %199 : vector<2x128xf32>
    %cst_51 = arith.constant 1.000000e+00 : f32
    %201 = vector.broadcast %cst_51 : f32 to vector<2x128xf32>
    %202 = arith.addf %201, %200 : vector<2x128xf32>
    %203 = arith.divf %201, %202 : vector<2x128xf32>
    %204 = arith.mulf %195, %142 : vector<2x128xf32>
    %205 = arith.mulf %189, %197 : vector<2x128xf32>
    %206 = arith.addf %204, %205 : vector<2x128xf32>
    %207 = math.tanh %206 : vector<2x128xf32>
    %208 = arith.mulf %203, %207 : vector<2x128xf32>
    %209 = vector.extract_strided_slice %174 {offsets = [0, 0], sizes = [2, 128], strides = [1, 1]} : vector<2x512xf32> to vector<2x128xf32>
    %210 = arith.negf %209 : vector<2x128xf32>
    %211 = math.exp %210 : vector<2x128xf32>
    %cst_52 = arith.constant 1.000000e+00 : f32
    %212 = vector.broadcast %cst_52 : f32 to vector<2x128xf32>
    %213 = arith.addf %212, %211 : vector<2x128xf32>
    %214 = arith.divf %212, %213 : vector<2x128xf32>
    %215 = vector.extract_strided_slice %174 {offsets = [0, 128], sizes = [2, 128], strides = [1, 1]} : vector<2x512xf32> to vector<2x128xf32>
    %216 = arith.negf %215 : vector<2x128xf32>
    %217 = math.exp %216 : vector<2x128xf32>
    %cst_53 = arith.constant 1.000000e+00 : f32
    %218 = vector.broadcast %cst_53 : f32 to vector<2x128xf32>
    %219 = arith.addf %218, %217 : vector<2x128xf32>
    %220 = arith.divf %218, %219 : vector<2x128xf32>
    %221 = vector.extract_strided_slice %174 {offsets = [0, 256], sizes = [2, 128], strides = [1, 1]} : vector<2x512xf32> to vector<2x128xf32>
    %222 = math.tanh %221 : vector<2x128xf32>
    %223 = vector.extract_strided_slice %174 {offsets = [0, 384], sizes = [2, 128], strides = [1, 1]} : vector<2x512xf32> to vector<2x128xf32>
    %224 = arith.negf %223 : vector<2x128xf32>
    %225 = math.exp %224 : vector<2x128xf32>
    %cst_54 = arith.constant 1.000000e+00 : f32
    %226 = vector.broadcast %cst_54 : f32 to vector<2x128xf32>
    %227 = arith.addf %226, %225 : vector<2x128xf32>
    %228 = arith.divf %226, %227 : vector<2x128xf32>
    %229 = arith.mulf %220, %167 : vector<2x128xf32>
    %230 = arith.mulf %214, %222 : vector<2x128xf32>
    %231 = arith.addf %229, %230 : vector<2x128xf32>
    %232 = math.tanh %231 : vector<2x128xf32>
    %233 = arith.mulf %228, %232 : vector<2x128xf32>
    %234 = tpu.concatenate %208, %233 in 1 : vector<2x128xf32>, vector<2x128xf32> -> vector<2x256xf32>
    %235 = arith.truncf %234 : vector<2x256xf32> to vector<2x256xbf16>
    %c128_55 = arith.constant 128 : index
    %c0_56 = arith.constant 0 : index
    %236 = vector.load %arg4[%c128_55, %c0_56] : memref<384x512xbf16, #tpu.memory_space<vmem>>, vector<256x512xbf16>
    %cst_57 = arith.constant dense<0.000000e+00> : vector<2x512xf32>
    %237 = tpu.matmul %235, %236, %cst_57 {dimension_numbers = #tpu.dot_dimension_numbers<[1], [0], [0], [1], [0, 0, 1, 1], [], []>} : vector<2x256xbf16>, vector<256x512xbf16>, vector<2x512xf32> -> vector<2x512xf32>
    %238 = arith.addf %237, %8 : vector<2x512xf32>
    %239 = arith.truncf %208 : vector<2x128xf32> to vector<2x128xbf16>
    %c0_58 = arith.constant 0 : index
    %c0_59 = arith.constant 0 : index
    %240 = vector.load %arg4[%c0_58, %c0_59] : memref<384x512xbf16, #tpu.memory_space<vmem>>, vector<128x512xbf16>
    %cst_60 = arith.constant dense<0.000000e+00> : vector<2x512xf32>
    %241 = tpu.matmul %239, %240, %cst_60 {dimension_numbers = #tpu.dot_dimension_numbers<[1], [0], [0], [1], [0, 0, 1, 1], [], []>} : vector<2x128xbf16>, vector<128x512xbf16>, vector<2x512xf32> -> vector<2x512xf32>
    %c4_61 = arith.constant 4 : index
    %c0_62 = arith.constant 0 : index
    %c0_63 = arith.constant 0 : index
    %242 = vector.load %arg0[%c4_61, %c0_62, %c0_63] : memref<8x2x1xf32, #tpu.memory_space<vmem>>, vector<1x2x1xf32>
    %243 = vector.shape_cast %242 : vector<1x2x1xf32> to vector<2x1xf32>
    %244 = vector.broadcast %243 : vector<2x1xf32> to vector<2x512xf32>
    %245 = arith.mulf %244, %2 : vector<2x512xf32>
    %246 = arith.addf %245, %5 : vector<2x512xf32>
    %247 = arith.addf %241, %246 : vector<2x512xf32>
    %248 = vector.extract_strided_slice %247 {offsets = [0, 0], sizes = [2, 128], strides = [1, 1]} : vector<2x512xf32> to vector<2x128xf32>
    %249 = arith.negf %248 : vector<2x128xf32>
    %250 = math.exp %249 : vector<2x128xf32>
    %cst_64 = arith.constant 1.000000e+00 : f32
    %251 = vector.broadcast %cst_64 : f32 to vector<2x128xf32>
    %252 = arith.addf %251, %250 : vector<2x128xf32>
    %253 = arith.divf %251, %252 : vector<2x128xf32>
    %254 = vector.extract_strided_slice %247 {offsets = [0, 128], sizes = [2, 128], strides = [1, 1]} : vector<2x512xf32> to vector<2x128xf32>
    %255 = arith.negf %254 : vector<2x128xf32>
    %256 = math.exp %255 : vector<2x128xf32>
    %cst_65 = arith.constant 1.000000e+00 : f32
    %257 = vector.broadcast %cst_65 : f32 to vector<2x128xf32>
    %258 = arith.addf %257, %256 : vector<2x128xf32>
    %259 = arith.divf %257, %258 : vector<2x128xf32>
    %260 = vector.extract_strided_slice %247 {offsets = [0, 256], sizes = [2, 128], strides = [1, 1]} : vector<2x512xf32> to vector<2x128xf32>
    %261 = math.tanh %260 : vector<2x128xf32>
    %262 = vector.extract_strided_slice %247 {offsets = [0, 384], sizes = [2, 128], strides = [1, 1]} : vector<2x512xf32> to vector<2x128xf32>
    %263 = arith.negf %262 : vector<2x128xf32>
    %264 = math.exp %263 : vector<2x128xf32>
    %cst_66 = arith.constant 1.000000e+00 : f32
    %265 = vector.broadcast %cst_66 : f32 to vector<2x128xf32>
    %266 = arith.addf %265, %264 : vector<2x128xf32>
    %267 = arith.divf %265, %266 : vector<2x128xf32>
    %268 = arith.mulf %259, %206 : vector<2x128xf32>
    %269 = arith.mulf %253, %261 : vector<2x128xf32>
    %270 = arith.addf %268, %269 : vector<2x128xf32>
    %271 = math.tanh %270 : vector<2x128xf32>
    %272 = arith.mulf %267, %271 : vector<2x128xf32>
    %273 = vector.extract_strided_slice %238 {offsets = [0, 0], sizes = [2, 128], strides = [1, 1]} : vector<2x512xf32> to vector<2x128xf32>
    %274 = arith.negf %273 : vector<2x128xf32>
    %275 = math.exp %274 : vector<2x128xf32>
    %cst_67 = arith.constant 1.000000e+00 : f32
    %276 = vector.broadcast %cst_67 : f32 to vector<2x128xf32>
    %277 = arith.addf %276, %275 : vector<2x128xf32>
    %278 = arith.divf %276, %277 : vector<2x128xf32>
    %279 = vector.extract_strided_slice %238 {offsets = [0, 128], sizes = [2, 128], strides = [1, 1]} : vector<2x512xf32> to vector<2x128xf32>
    %280 = arith.negf %279 : vector<2x128xf32>
    %281 = math.exp %280 : vector<2x128xf32>
    %cst_68 = arith.constant 1.000000e+00 : f32
    %282 = vector.broadcast %cst_68 : f32 to vector<2x128xf32>
    %283 = arith.addf %282, %281 : vector<2x128xf32>
    %284 = arith.divf %282, %283 : vector<2x128xf32>
    %285 = vector.extract_strided_slice %238 {offsets = [0, 256], sizes = [2, 128], strides = [1, 1]} : vector<2x512xf32> to vector<2x128xf32>
    %286 = math.tanh %285 : vector<2x128xf32>
    %287 = vector.extract_strided_slice %238 {offsets = [0, 384], sizes = [2, 128], strides = [1, 1]} : vector<2x512xf32> to vector<2x128xf32>
    %288 = arith.negf %287 : vector<2x128xf32>
    %289 = math.exp %288 : vector<2x128xf32>
    %cst_69 = arith.constant 1.000000e+00 : f32
    %290 = vector.broadcast %cst_69 : f32 to vector<2x128xf32>
    %291 = arith.addf %290, %289 : vector<2x128xf32>
    %292 = arith.divf %290, %291 : vector<2x128xf32>
    %293 = arith.mulf %284, %231 : vector<2x128xf32>
    %294 = arith.mulf %278, %286 : vector<2x128xf32>
    %295 = arith.addf %293, %294 : vector<2x128xf32>
    %296 = math.tanh %295 : vector<2x128xf32>
    %297 = arith.mulf %292, %296 : vector<2x128xf32>
    %298 = tpu.concatenate %272, %297 in 1 : vector<2x128xf32>, vector<2x128xf32> -> vector<2x256xf32>
    %299 = arith.truncf %298 : vector<2x256xf32> to vector<2x256xbf16>
    %c128_70 = arith.constant 128 : index
    %c0_71 = arith.constant 0 : index
    %300 = vector.load %arg4[%c128_70, %c0_71] : memref<384x512xbf16, #tpu.memory_space<vmem>>, vector<256x512xbf16>
    %cst_72 = arith.constant dense<0.000000e+00> : vector<2x512xf32>
    %301 = tpu.matmul %299, %300, %cst_72 {dimension_numbers = #tpu.dot_dimension_numbers<[1], [0], [0], [1], [0, 0, 1, 1], [], []>} : vector<2x256xbf16>, vector<256x512xbf16>, vector<2x512xf32> -> vector<2x512xf32>
    %302 = arith.addf %301, %8 : vector<2x512xf32>
    %303 = arith.truncf %272 : vector<2x128xf32> to vector<2x128xbf16>
    %c0_73 = arith.constant 0 : index
    %c0_74 = arith.constant 0 : index
    %304 = vector.load %arg4[%c0_73, %c0_74] : memref<384x512xbf16, #tpu.memory_space<vmem>>, vector<128x512xbf16>
    %cst_75 = arith.constant dense<0.000000e+00> : vector<2x512xf32>
    %305 = tpu.matmul %303, %304, %cst_75 {dimension_numbers = #tpu.dot_dimension_numbers<[1], [0], [0], [1], [0, 0, 1, 1], [], []>} : vector<2x128xbf16>, vector<128x512xbf16>, vector<2x512xf32> -> vector<2x512xf32>
    %c5 = arith.constant 5 : index
    %c0_76 = arith.constant 0 : index
    %c0_77 = arith.constant 0 : index
    %306 = vector.load %arg0[%c5, %c0_76, %c0_77] : memref<8x2x1xf32, #tpu.memory_space<vmem>>, vector<1x2x1xf32>
    %307 = vector.shape_cast %306 : vector<1x2x1xf32> to vector<2x1xf32>
    %308 = vector.broadcast %307 : vector<2x1xf32> to vector<2x512xf32>
    %309 = arith.mulf %308, %2 : vector<2x512xf32>
    %310 = arith.addf %309, %5 : vector<2x512xf32>
    %311 = arith.addf %305, %310 : vector<2x512xf32>
    %312 = vector.extract_strided_slice %311 {offsets = [0, 0], sizes = [2, 128], strides = [1, 1]} : vector<2x512xf32> to vector<2x128xf32>
    %313 = arith.negf %312 : vector<2x128xf32>
    %314 = math.exp %313 : vector<2x128xf32>
    %cst_78 = arith.constant 1.000000e+00 : f32
    %315 = vector.broadcast %cst_78 : f32 to vector<2x128xf32>
    %316 = arith.addf %315, %314 : vector<2x128xf32>
    %317 = arith.divf %315, %316 : vector<2x128xf32>
    %318 = vector.extract_strided_slice %311 {offsets = [0, 128], sizes = [2, 128], strides = [1, 1]} : vector<2x512xf32> to vector<2x128xf32>
    %319 = arith.negf %318 : vector<2x128xf32>
    %320 = math.exp %319 : vector<2x128xf32>
    %cst_79 = arith.constant 1.000000e+00 : f32
    %321 = vector.broadcast %cst_79 : f32 to vector<2x128xf32>
    %322 = arith.addf %321, %320 : vector<2x128xf32>
    %323 = arith.divf %321, %322 : vector<2x128xf32>
    %324 = vector.extract_strided_slice %311 {offsets = [0, 256], sizes = [2, 128], strides = [1, 1]} : vector<2x512xf32> to vector<2x128xf32>
    %325 = math.tanh %324 : vector<2x128xf32>
    %326 = vector.extract_strided_slice %311 {offsets = [0, 384], sizes = [2, 128], strides = [1, 1]} : vector<2x512xf32> to vector<2x128xf32>
    %327 = arith.negf %326 : vector<2x128xf32>
    %328 = math.exp %327 : vector<2x128xf32>
    %cst_80 = arith.constant 1.000000e+00 : f32
    %329 = vector.broadcast %cst_80 : f32 to vector<2x128xf32>
    %330 = arith.addf %329, %328 : vector<2x128xf32>
    %331 = arith.divf %329, %330 : vector<2x128xf32>
    %332 = arith.mulf %323, %270 : vector<2x128xf32>
    %333 = arith.mulf %317, %325 : vector<2x128xf32>
    %334 = arith.addf %332, %333 : vector<2x128xf32>
    %335 = math.tanh %334 : vector<2x128xf32>
    %336 = arith.mulf %331, %335 : vector<2x128xf32>
    %337 = vector.extract_strided_slice %302 {offsets = [0, 0], sizes = [2, 128], strides = [1, 1]} : vector<2x512xf32> to vector<2x128xf32>
    %338 = arith.negf %337 : vector<2x128xf32>
    %339 = math.exp %338 : vector<2x128xf32>
    %cst_81 = arith.constant 1.000000e+00 : f32
    %340 = vector.broadcast %cst_81 : f32 to vector<2x128xf32>
    %341 = arith.addf %340, %339 : vector<2x128xf32>
    %342 = arith.divf %340, %341 : vector<2x128xf32>
    %343 = vector.extract_strided_slice %302 {offsets = [0, 128], sizes = [2, 128], strides = [1, 1]} : vector<2x512xf32> to vector<2x128xf32>
    %344 = arith.negf %343 : vector<2x128xf32>
    %345 = math.exp %344 : vector<2x128xf32>
    %cst_82 = arith.constant 1.000000e+00 : f32
    %346 = vector.broadcast %cst_82 : f32 to vector<2x128xf32>
    %347 = arith.addf %346, %345 : vector<2x128xf32>
    %348 = arith.divf %346, %347 : vector<2x128xf32>
    %349 = vector.extract_strided_slice %302 {offsets = [0, 256], sizes = [2, 128], strides = [1, 1]} : vector<2x512xf32> to vector<2x128xf32>
    %350 = math.tanh %349 : vector<2x128xf32>
    %351 = vector.extract_strided_slice %302 {offsets = [0, 384], sizes = [2, 128], strides = [1, 1]} : vector<2x512xf32> to vector<2x128xf32>
    %352 = arith.negf %351 : vector<2x128xf32>
    %353 = math.exp %352 : vector<2x128xf32>
    %cst_83 = arith.constant 1.000000e+00 : f32
    %354 = vector.broadcast %cst_83 : f32 to vector<2x128xf32>
    %355 = arith.addf %354, %353 : vector<2x128xf32>
    %356 = arith.divf %354, %355 : vector<2x128xf32>
    %357 = arith.mulf %348, %295 : vector<2x128xf32>
    %358 = arith.mulf %342, %350 : vector<2x128xf32>
    %359 = arith.addf %357, %358 : vector<2x128xf32>
    %360 = math.tanh %359 : vector<2x128xf32>
    %361 = arith.mulf %356, %360 : vector<2x128xf32>
    %362 = tpu.concatenate %336, %361 in 1 : vector<2x128xf32>, vector<2x128xf32> -> vector<2x256xf32>
    %363 = arith.truncf %362 : vector<2x256xf32> to vector<2x256xbf16>
    %c128_84 = arith.constant 128 : index
    %c0_85 = arith.constant 0 : index
    %364 = vector.load %arg4[%c128_84, %c0_85] : memref<384x512xbf16, #tpu.memory_space<vmem>>, vector<256x512xbf16>
    %cst_86 = arith.constant dense<0.000000e+00> : vector<2x512xf32>
    %365 = tpu.matmul %363, %364, %cst_86 {dimension_numbers = #tpu.dot_dimension_numbers<[1], [0], [0], [1], [0, 0, 1, 1], [], []>} : vector<2x256xbf16>, vector<256x512xbf16>, vector<2x512xf32> -> vector<2x512xf32>
    %366 = arith.addf %365, %8 : vector<2x512xf32>
    %367 = arith.truncf %336 : vector<2x128xf32> to vector<2x128xbf16>
    %c0_87 = arith.constant 0 : index
    %c0_88 = arith.constant 0 : index
    %368 = vector.load %arg4[%c0_87, %c0_88] : memref<384x512xbf16, #tpu.memory_space<vmem>>, vector<128x512xbf16>
    %cst_89 = arith.constant dense<0.000000e+00> : vector<2x512xf32>
    %369 = tpu.matmul %367, %368, %cst_89 {dimension_numbers = #tpu.dot_dimension_numbers<[1], [0], [0], [1], [0, 0, 1, 1], [], []>} : vector<2x128xbf16>, vector<128x512xbf16>, vector<2x512xf32> -> vector<2x512xf32>
    %c6 = arith.constant 6 : index
    %c0_90 = arith.constant 0 : index
    %c0_91 = arith.constant 0 : index
    %370 = vector.load %arg0[%c6, %c0_90, %c0_91] : memref<8x2x1xf32, #tpu.memory_space<vmem>>, vector<1x2x1xf32>
    %371 = vector.shape_cast %370 : vector<1x2x1xf32> to vector<2x1xf32>
    %372 = vector.broadcast %371 : vector<2x1xf32> to vector<2x512xf32>
    %373 = arith.mulf %372, %2 : vector<2x512xf32>
    %374 = arith.addf %373, %5 : vector<2x512xf32>
    %375 = arith.addf %369, %374 : vector<2x512xf32>
    %376 = vector.extract_strided_slice %375 {offsets = [0, 0], sizes = [2, 128], strides = [1, 1]} : vector<2x512xf32> to vector<2x128xf32>
    %377 = arith.negf %376 : vector<2x128xf32>
    %378 = math.exp %377 : vector<2x128xf32>
    %cst_92 = arith.constant 1.000000e+00 : f32
    %379 = vector.broadcast %cst_92 : f32 to vector<2x128xf32>
    %380 = arith.addf %379, %378 : vector<2x128xf32>
    %381 = arith.divf %379, %380 : vector<2x128xf32>
    %382 = vector.extract_strided_slice %375 {offsets = [0, 128], sizes = [2, 128], strides = [1, 1]} : vector<2x512xf32> to vector<2x128xf32>
    %383 = arith.negf %382 : vector<2x128xf32>
    %384 = math.exp %383 : vector<2x128xf32>
    %cst_93 = arith.constant 1.000000e+00 : f32
    %385 = vector.broadcast %cst_93 : f32 to vector<2x128xf32>
    %386 = arith.addf %385, %384 : vector<2x128xf32>
    %387 = arith.divf %385, %386 : vector<2x128xf32>
    %388 = vector.extract_strided_slice %375 {offsets = [0, 256], sizes = [2, 128], strides = [1, 1]} : vector<2x512xf32> to vector<2x128xf32>
    %389 = math.tanh %388 : vector<2x128xf32>
    %390 = vector.extract_strided_slice %375 {offsets = [0, 384], sizes = [2, 128], strides = [1, 1]} : vector<2x512xf32> to vector<2x128xf32>
    %391 = arith.negf %390 : vector<2x128xf32>
    %392 = math.exp %391 : vector<2x128xf32>
    %cst_94 = arith.constant 1.000000e+00 : f32
    %393 = vector.broadcast %cst_94 : f32 to vector<2x128xf32>
    %394 = arith.addf %393, %392 : vector<2x128xf32>
    %395 = arith.divf %393, %394 : vector<2x128xf32>
    %396 = arith.mulf %387, %334 : vector<2x128xf32>
    %397 = arith.mulf %381, %389 : vector<2x128xf32>
    %398 = arith.addf %396, %397 : vector<2x128xf32>
    %399 = math.tanh %398 : vector<2x128xf32>
    %400 = arith.mulf %395, %399 : vector<2x128xf32>
    %401 = vector.extract_strided_slice %366 {offsets = [0, 0], sizes = [2, 128], strides = [1, 1]} : vector<2x512xf32> to vector<2x128xf32>
    %402 = arith.negf %401 : vector<2x128xf32>
    %403 = math.exp %402 : vector<2x128xf32>
    %cst_95 = arith.constant 1.000000e+00 : f32
    %404 = vector.broadcast %cst_95 : f32 to vector<2x128xf32>
    %405 = arith.addf %404, %403 : vector<2x128xf32>
    %406 = arith.divf %404, %405 : vector<2x128xf32>
    %407 = vector.extract_strided_slice %366 {offsets = [0, 128], sizes = [2, 128], strides = [1, 1]} : vector<2x512xf32> to vector<2x128xf32>
    %408 = arith.negf %407 : vector<2x128xf32>
    %409 = math.exp %408 : vector<2x128xf32>
    %cst_96 = arith.constant 1.000000e+00 : f32
    %410 = vector.broadcast %cst_96 : f32 to vector<2x128xf32>
    %411 = arith.addf %410, %409 : vector<2x128xf32>
    %412 = arith.divf %410, %411 : vector<2x128xf32>
    %413 = vector.extract_strided_slice %366 {offsets = [0, 256], sizes = [2, 128], strides = [1, 1]} : vector<2x512xf32> to vector<2x128xf32>
    %414 = math.tanh %413 : vector<2x128xf32>
    %415 = vector.extract_strided_slice %366 {offsets = [0, 384], sizes = [2, 128], strides = [1, 1]} : vector<2x512xf32> to vector<2x128xf32>
    %416 = arith.negf %415 : vector<2x128xf32>
    %417 = math.exp %416 : vector<2x128xf32>
    %cst_97 = arith.constant 1.000000e+00 : f32
    %418 = vector.broadcast %cst_97 : f32 to vector<2x128xf32>
    %419 = arith.addf %418, %417 : vector<2x128xf32>
    %420 = arith.divf %418, %419 : vector<2x128xf32>
    %421 = arith.mulf %412, %359 : vector<2x128xf32>
    %422 = arith.mulf %406, %414 : vector<2x128xf32>
    %423 = arith.addf %421, %422 : vector<2x128xf32>
    %424 = math.tanh %423 : vector<2x128xf32>
    %425 = arith.mulf %420, %424 : vector<2x128xf32>
    %426 = tpu.concatenate %400, %425 in 1 : vector<2x128xf32>, vector<2x128xf32> -> vector<2x256xf32>
    %427 = arith.truncf %426 : vector<2x256xf32> to vector<2x256xbf16>
    %c128_98 = arith.constant 128 : index
    %c0_99 = arith.constant 0 : index
    %428 = vector.load %arg4[%c128_98, %c0_99] : memref<384x512xbf16, #tpu.memory_space<vmem>>, vector<256x512xbf16>
    %cst_100 = arith.constant dense<0.000000e+00> : vector<2x512xf32>
    %429 = tpu.matmul %427, %428, %cst_100 {dimension_numbers = #tpu.dot_dimension_numbers<[1], [0], [0], [1], [0, 0, 1, 1], [], []>} : vector<2x256xbf16>, vector<256x512xbf16>, vector<2x512xf32> -> vector<2x512xf32>
    %430 = arith.addf %429, %8 : vector<2x512xf32>
    %431 = arith.truncf %400 : vector<2x128xf32> to vector<2x128xbf16>
    %c0_101 = arith.constant 0 : index
    %c0_102 = arith.constant 0 : index
    %432 = vector.load %arg4[%c0_101, %c0_102] : memref<384x512xbf16, #tpu.memory_space<vmem>>, vector<128x512xbf16>
    %cst_103 = arith.constant dense<0.000000e+00> : vector<2x512xf32>
    %433 = tpu.matmul %431, %432, %cst_103 {dimension_numbers = #tpu.dot_dimension_numbers<[1], [0], [0], [1], [0, 0, 1, 1], [], []>} : vector<2x128xbf16>, vector<128x512xbf16>, vector<2x512xf32> -> vector<2x512xf32>
    %c7 = arith.constant 7 : index
    %c0_104 = arith.constant 0 : index
    %c0_105 = arith.constant 0 : index
    %434 = vector.load %arg0[%c7, %c0_104, %c0_105] : memref<8x2x1xf32, #tpu.memory_space<vmem>>, vector<1x2x1xf32>
    %435 = vector.shape_cast %434 : vector<1x2x1xf32> to vector<2x1xf32>
    %436 = vector.broadcast %435 : vector<2x1xf32> to vector<2x512xf32>
    %437 = arith.mulf %436, %2 : vector<2x512xf32>
    %438 = arith.addf %437, %5 : vector<2x512xf32>
    %439 = arith.addf %433, %438 : vector<2x512xf32>
    %440 = vector.extract_strided_slice %439 {offsets = [0, 0], sizes = [2, 128], strides = [1, 1]} : vector<2x512xf32> to vector<2x128xf32>
    %441 = arith.negf %440 : vector<2x128xf32>
    %442 = math.exp %441 : vector<2x128xf32>
    %cst_106 = arith.constant 1.000000e+00 : f32
    %443 = vector.broadcast %cst_106 : f32 to vector<2x128xf32>
    %444 = arith.addf %443, %442 : vector<2x128xf32>
    %445 = arith.divf %443, %444 : vector<2x128xf32>
    %446 = vector.extract_strided_slice %439 {offsets = [0, 128], sizes = [2, 128], strides = [1, 1]} : vector<2x512xf32> to vector<2x128xf32>
    %447 = arith.negf %446 : vector<2x128xf32>
    %448 = math.exp %447 : vector<2x128xf32>
    %cst_107 = arith.constant 1.000000e+00 : f32
    %449 = vector.broadcast %cst_107 : f32 to vector<2x128xf32>
    %450 = arith.addf %449, %448 : vector<2x128xf32>
    %451 = arith.divf %449, %450 : vector<2x128xf32>
    %452 = vector.extract_strided_slice %439 {offsets = [0, 256], sizes = [2, 128], strides = [1, 1]} : vector<2x512xf32> to vector<2x128xf32>
    %453 = math.tanh %452 : vector<2x128xf32>
    %454 = vector.extract_strided_slice %439 {offsets = [0, 384], sizes = [2, 128], strides = [1, 1]} : vector<2x512xf32> to vector<2x128xf32>
    %455 = arith.negf %454 : vector<2x128xf32>
    %456 = math.exp %455 : vector<2x128xf32>
    %cst_108 = arith.constant 1.000000e+00 : f32
    %457 = vector.broadcast %cst_108 : f32 to vector<2x128xf32>
    %458 = arith.addf %457, %456 : vector<2x128xf32>
    %459 = arith.divf %457, %458 : vector<2x128xf32>
    %460 = arith.mulf %451, %398 : vector<2x128xf32>
    %461 = arith.mulf %445, %453 : vector<2x128xf32>
    %462 = arith.addf %460, %461 : vector<2x128xf32>
    %463 = math.tanh %462 : vector<2x128xf32>
    %464 = arith.mulf %459, %463 : vector<2x128xf32>
    %465 = vector.extract_strided_slice %430 {offsets = [0, 0], sizes = [2, 128], strides = [1, 1]} : vector<2x512xf32> to vector<2x128xf32>
    %466 = arith.negf %465 : vector<2x128xf32>
    %467 = math.exp %466 : vector<2x128xf32>
    %cst_109 = arith.constant 1.000000e+00 : f32
    %468 = vector.broadcast %cst_109 : f32 to vector<2x128xf32>
    %469 = arith.addf %468, %467 : vector<2x128xf32>
    %470 = arith.divf %468, %469 : vector<2x128xf32>
    %471 = vector.extract_strided_slice %430 {offsets = [0, 128], sizes = [2, 128], strides = [1, 1]} : vector<2x512xf32> to vector<2x128xf32>
    %472 = arith.negf %471 : vector<2x128xf32>
    %473 = math.exp %472 : vector<2x128xf32>
    %cst_110 = arith.constant 1.000000e+00 : f32
    %474 = vector.broadcast %cst_110 : f32 to vector<2x128xf32>
    %475 = arith.addf %474, %473 : vector<2x128xf32>
    %476 = arith.divf %474, %475 : vector<2x128xf32>
    %477 = vector.extract_strided_slice %430 {offsets = [0, 256], sizes = [2, 128], strides = [1, 1]} : vector<2x512xf32> to vector<2x128xf32>
    %478 = math.tanh %477 : vector<2x128xf32>
    %479 = vector.extract_strided_slice %430 {offsets = [0, 384], sizes = [2, 128], strides = [1, 1]} : vector<2x512xf32> to vector<2x128xf32>
    %480 = arith.negf %479 : vector<2x128xf32>
    %481 = math.exp %480 : vector<2x128xf32>
    %cst_111 = arith.constant 1.000000e+00 : f32
    %482 = vector.broadcast %cst_111 : f32 to vector<2x128xf32>
    %483 = arith.addf %482, %481 : vector<2x128xf32>
    %484 = arith.divf %482, %483 : vector<2x128xf32>
    %485 = arith.mulf %476, %423 : vector<2x128xf32>
    %486 = arith.mulf %470, %478 : vector<2x128xf32>
    %487 = arith.addf %485, %486 : vector<2x128xf32>
    %488 = math.tanh %487 : vector<2x128xf32>
    %489 = arith.mulf %484, %488 : vector<2x128xf32>
    %490 = tpu.concatenate %464, %489 in 1 : vector<2x128xf32>, vector<2x128xf32> -> vector<2x256xf32>
    %491 = arith.truncf %490 : vector<2x256xf32> to vector<2x256xbf16>
    %c128_112 = arith.constant 128 : index
    %c0_113 = arith.constant 0 : index
    %492 = vector.load %arg4[%c128_112, %c0_113] : memref<384x512xbf16, #tpu.memory_space<vmem>>, vector<256x512xbf16>
    %cst_114 = arith.constant dense<0.000000e+00> : vector<2x512xf32>
    %493 = tpu.matmul %491, %492, %cst_114 {dimension_numbers = #tpu.dot_dimension_numbers<[1], [0], [0], [1], [0, 0, 1, 1], [], []>} : vector<2x256xbf16>, vector<256x512xbf16>, vector<2x512xf32> -> vector<2x512xf32>
    %494 = arith.addf %493, %8 : vector<2x512xf32>
    %495 = vector.extract_strided_slice %494 {offsets = [0, 0], sizes = [2, 128], strides = [1, 1]} : vector<2x512xf32> to vector<2x128xf32>
    %496 = arith.negf %495 : vector<2x128xf32>
    %497 = math.exp %496 : vector<2x128xf32>
    %cst_115 = arith.constant 1.000000e+00 : f32
    %498 = vector.broadcast %cst_115 : f32 to vector<2x128xf32>
    %499 = arith.addf %498, %497 : vector<2x128xf32>
    %500 = arith.divf %498, %499 : vector<2x128xf32>
    %501 = vector.extract_strided_slice %494 {offsets = [0, 128], sizes = [2, 128], strides = [1, 1]} : vector<2x512xf32> to vector<2x128xf32>
    %502 = arith.negf %501 : vector<2x128xf32>
    %503 = math.exp %502 : vector<2x128xf32>
    %cst_116 = arith.constant 1.000000e+00 : f32
    %504 = vector.broadcast %cst_116 : f32 to vector<2x128xf32>
    %505 = arith.addf %504, %503 : vector<2x128xf32>
    %506 = arith.divf %504, %505 : vector<2x128xf32>
    %507 = vector.extract_strided_slice %494 {offsets = [0, 256], sizes = [2, 128], strides = [1, 1]} : vector<2x512xf32> to vector<2x128xf32>
    %508 = math.tanh %507 : vector<2x128xf32>
    %509 = vector.extract_strided_slice %494 {offsets = [0, 384], sizes = [2, 128], strides = [1, 1]} : vector<2x512xf32> to vector<2x128xf32>
    %510 = arith.negf %509 : vector<2x128xf32>
    %511 = math.exp %510 : vector<2x128xf32>
    %cst_117 = arith.constant 1.000000e+00 : f32
    %512 = vector.broadcast %cst_117 : f32 to vector<2x128xf32>
    %513 = arith.addf %512, %511 : vector<2x128xf32>
    %514 = arith.divf %512, %513 : vector<2x128xf32>
    %515 = arith.mulf %506, %487 : vector<2x128xf32>
    %516 = arith.mulf %500, %508 : vector<2x128xf32>
    %517 = arith.addf %515, %516 : vector<2x128xf32>
    %518 = math.tanh %517 : vector<2x128xf32>
    %519 = arith.mulf %514, %518 : vector<2x128xf32>
    %520 = vector.broadcast %9 : vector<1x128xf32> to vector<2x128xf32>
    %521 = arith.mulf %519, %520 : vector<2x128xf32>
    %cst_118 = arith.constant dense<0.000000e+00> : vector<2xf32>
    %522 = vector.multi_reduction <add>, %521, %cst_118 [1] : vector<2x128xf32> to vector<2xf32>
    %523 = vector.shape_cast %522 : vector<2xf32> to vector<2x1xf32>
    %524 = vector.broadcast %10 : vector<1x1xf32> to vector<2x1xf32>
    %525 = arith.addf %523, %524 : vector<2x1xf32>
    %c0_119 = arith.constant 0 : index
    %c0_120 = arith.constant 0 : index
    %526 = vector.load %arg3[%c0_119, %c0_120] : memref<2x1xf32, #tpu.memory_space<vmem>>, vector<2x1xf32>
    tpu.vector_store %arg3[%c0_119, %c0_120], %525 {strides = array<i32>} : memref<2x1xf32, #tpu.memory_space<vmem>>, vector<2x1xf32>,
    return
  }
}

</mosaic_0001>

<bundles_post_ra>
// kernel: rate_lstm_forward.1
= control target key start
LH: loop header
LB: loop body
LE: loop exit
PB: predicated region body
PF: predicated region fallthrough
CT: control target
= control target key end

     0   :  { %8 = vsyncpa [#allocation5], 0  ;;  %s2545_s12 = smov [#allocation4]   ;;  %s4056_s0 = inlined_call_operand.vmem [shape: f32[8,2,1], index: 0, kind: input, shape index: {}]   ;;  %s4057_s1 = inlined_call_operand.hbm [shape: f32[8,512], index: 1, kind: input, shape index: {}]   ;;  %s4058_s2 = inlined_call_operand.hbm [shape: bf16[384,512], index: 2, kind: input, shape index: {}]   ;;  %s4059_s3 = inlined_call_operand.vmem [shape: f32[2,1], index: 3, kind: output, shape index: {}]  }
   0x1   :  { %s17_s13 = sshll.u32 %s2545_s12, 4  ;;  %s2519_s16 = scalar_lea.hbm %s4057_s1, 512  ;;  %s18_s13 = int_to_ptr.vmem [resolvable:$true] %s17_s13 }
   0x2   :  { %p2520_p0 = scmp.ne.s32.totalorder %s4057_s1, %s2519_s16  ;;  %p2523_p1 = scmp.lt.u32.totalorder %s2519_s16, %s4057_s1 }
   0x4   :  { %p2525_p2 = pnand %p2523_p1, %p2520_p0 }
   0x6   :  { %2528 = shalt.err (!%p2525_p2)
}
   0x7   :  { %s2529_s21 = scalar_lea.vmem %s18_s13, 512  ;;  %p2534_p4 = scmp.lt.s32.totalorder %s18_s13, %s18_s13 }
   0x8   :  { %p2530_p3 = scmp.ne.s32.totalorder %s18_s13, %s2529_s21  ;;  %p2535_p5 = scmp.lt.s32.totalorder %s2529_s21, %s2529_s21 }
   0xa   :  { %p2536_p6 = por %p2535_p5, %p2534_p4 }
   0xc   :  { %p2537_p7 = pnand %p2536_p6, %p2530_p3 }
   0xe   :  { %2540 = shalt.err (!%p2537_p7)
}
   0xf   :  { %20 = dma.hbm_to_vmem [thread:$0]  %s4057_s1, 512, %s18_s13, [#allocation5]  }
  0x10   :  { %2541 = dma.done.wait [#allocation5], 512  }
  0x11   :  { %2542 = vsyncadd [#allocation5], 4294966784  ;;  %s29_s24 = sld [smem:[#allocation0]]   ;;  %s2546_s25 = smov 512   ;;  %v4060_v0 = vmov 0   ;;  %v62_v1 = vlaneseq }
  0x12   :  { %41 = sst [smem:[#allocation7]] %s2546_s25  ;;  %2068 = vset.pattern.permute.xlu0 %v4060_v0  ;;  %s2548_s26 = smov 4  }
  0x13   :  { %43 = sst [smem:[#allocation7 + $0x1]] %s2546_s25  ;;  %s2549_s27 = smov 64   ;;  %v63_v2 = vshrl.u32 %v62_v1, 7 }
  0x14   :  { %45 = sst [smem:[#allocation7 + $0x2]] %s2548_s26  ;;  %s2550_s28 = smov 128  }
  0x15   :  { %47 = sst [smem:[#allocation7 + $0x3]] %s2549_s27  ;;  %s2551_s29 = smov 2   ;;  %v64_v6 = vsub.s32 0, %v63_v2  ;;  %v68_v7 = vsub.s32 1, %v63_v2  ;;  %v72_v8 = vsub.s32 2, %v63_v2  ;;  %v76_v9 = vsub.s32 3, %v63_v2 }
  0x16   :  { %49 = sst [smem:[#allocation7 + $0x4]] %s2550_s28  ;;  %s2552_s4 = smov 256  }
  0x17   :  { %51 = sst [smem:[#allocation7 + $0x5]] %s2551_s29  ;;  %s1998_s30 = sshll.u32 %s29_s24, 26 }
  0x18   :  { %53 = sst [smem:[#allocation7 + $0x6]] %s2552_s4  ;;  %s1999_s1 = sadd.s32 134217728, %s1998_s30 }
  0x19   :  { %55 = sst [smem:[#allocation7 + $0x7]] %s2549_s27  ;;  %s2553_s5 = smov [#allocation2]  }
  0x1a   :  { %57 = sst [smem:[#allocation7 + $0x8]] %s2548_s26  ;;  %s37_s6 = sshll.u32 %s2553_s5, 4  ;;  %s38_s6 = int_to_ptr.vmem [resolvable:$true] %s37_s6 }
  0x1b   :  { %s2554_s7 = smov [#allocation3]   ;;  %s2555_s8 = smov [#allocation6]  }
  0x1c   :  { %59 = dma.general %s4058_s2, 12288, %s38_s6, %s2554_s7, %s2555_s8, [#allocation7], %s1999_s1, 0  }
  0x1d   :  { %v2593_v3 = vld [vmem:[#allocation4 + $0x3] ss:$0 sm:$0xff]  ;;  %v2595_v4 = vld [vmem:[#allocation4 + $0x4] ss:$0 sm:$0xff]  ;;  %v130_v5 = vld [vmem:[%s4056_s0] sm:$0x3] }
  0x1e   :  { %4321 = vst [vmem:[#allocation10_spill] sm:$0xff] %v2593_v3  ;;  %4322 = vst [vmem:[#allocation11_spill] sm:$0xff] %v2595_v4  ;;  %133 = vperm.xlu0 %2068, %v130_v5   ;;  %v106_v10 = vld [vmem:[#allocation4 + $0x2] ss:$8 sm:$0xf] }
  0x1f   :  { %v2600_v11 = vrot.slane %v106_v10, %v64_v6  ;;  %v2602_v12 = vrot.slane %v106_v10, %v68_v7  ;;  %v2604_v13 = vrot.slane %v106_v10, %v72_v8  ;;  %v2606_v14 = vrot.slane %v106_v10, %v76_v9  ;;  %v60_v15 = vld [vmem:[#allocation4] ss:$8 sm:$0xf]  ;;  %v83_v16 = vld [vmem:[#allocation4 + $0x1] ss:$8 sm:$0xf] }
  0x20   :  { %v2608_v17 = vrot.slane %v60_v15, %v64_v6  ;;  %v2610_v18 = vrot.slane %v60_v15, %v68_v7  ;;  %v2612_v19 = vrot.slane %v83_v16, %v64_v6  ;;  %v2614_v20 = vrot.slane %v83_v16, %v68_v7 }
  0x21   :  { %4323 = vst [vmem:[#allocation12_spill] sm:$0xff] %v2600_v11  ;;  %4324 = vst [vmem:[#allocation13_spill] sm:$0xff] %v2602_v12  ;;  %v2618_v24 = vrot.slane %v60_v15, %v76_v9  ;;  %v2622_v29 = vrot.slane %v83_v16, %v76_v9  ;;  %v2625_v31 = vrot.slane %v60_v15, %v72_v8 }
  0x22   :  { %4325 = vst [vmem:[#allocation14_spill] sm:$0xff] %v2604_v13  ;;  %4326 = vst [vmem:[#allocation15_spill] sm:$0xff] %v2606_v14  ;;  %v2628_v33 = vrot.slane %v83_v16, %v72_v8 }
  0x23   :  { %4327 = vst [vmem:[#allocation16_spill] sm:$0xff] %v2608_v17  ;;  %4328 = vst [vmem:[#allocation17_spill] sm:$0xff] %v2610_v18 }
  0x24   :  { %4329 = vst [vmem:[#allocation18_spill] sm:$0xff] %v2612_v19  ;;  %4330 = vst [vmem:[#allocation19_spill] sm:$0xff] %v2614_v20 }
  0x25   :  { %4331 = vst [vmem:[#allocation20_spill] sm:$0xff] %v2618_v24  ;;  %4332 = vst [vmem:[#allocation21_spill] sm:$0xff] %v2622_v29 }
  0x26   :  { %4333 = vst [vmem:[#allocation22_spill] sm:$0xff] %v2625_v31  ;;  %4334 = vst [vmem:[#allocation23_spill] sm:$0xff] %v2628_v33 }
  0x9d   :  { %v134_v21 = vpop.permute.xlu0 %133 }
  0x9e   :  { %v136_v22 = vmul.f32 %v134_v21, %v2608_v17  ;;  %v137_v23 = vmul.f32 %v134_v21, %v2610_v18  ;;  %v139_v30 = vmul.f32 %v134_v21, %v2618_v24  ;;  %v138_v34 = vmul.f32 %v134_v21, %v2625_v31 }
  0xa0   :  { %v140_v25 = vadd.f32 %v136_v22, %v2612_v19  ;;  %v141_v26 = vadd.f32 %v137_v23, %v2614_v20  ;;  %v143_v32 = vadd.f32 %v139_v30, %v2622_v29  ;;  %v142_v36 = vadd.f32 %v138_v34, %v2628_v33 }
  0xa2   :  { %v2000_v27 = vmul.f32 -1.442695, %v140_v25  ;;  %v2001_v28 = vmul.f32 -1.442695, %v141_v26  ;;  %v2002_v35 = vmul.f32 -1.442695, %v143_v32 }
  0xa4   :  { %2069 = vpow2.f32 %v2000_v27 }
  0xa5   :  { %2071 = vpow2.f32 %v2001_v28 }
  0xa6   :  { %2073 = vpow2.f32 %v2002_v35 }
  0xa7   :  { %2075 = vtanh.f32 %v142_v36 }
  0xae   :  { %v2070_v37 = vpop.eup %2069 }
  0xaf   :  { %v2072_v38 = vpop.eup %2071  ;;  %v147_v39 = vadd.f32 1.0, %v2070_v37 }
  0xb0   :  { %v153_v40 = vadd.f32 1.0, %v2072_v38  ;;  %v2074_v41 = vpop.eup %2073 }
  0xb1   :  { %2077 = vrcp.f32 %v147_v39  ;;  %v2076_v42 = vpop.eup %2075  ;;  %v160_v45 = vadd.f32 1.0, %v2074_v41 }
  0xb2   :  { %2079 = vrcp.f32 %v153_v40 }
  0xb3   :  { %2081 = vrcp.f32 %v160_v45 }
  0xbb   :  { %v2078_v43 = vpop.eup %2077 }
  0xbc   :  { %v2080_v44 = vpop.eup %2079  ;;  %v164_v46 = vmul.f32 %v2078_v43, %v2076_v42 }
  0xbd   :  { %v163_v47 = vmul.f32 0.0, %v2080_v44  ;;  %v2082_v49 = vpop.eup %2081 }
  0xbf   :  { %v2632_v48 = vadd.f32 %v164_v46, %v163_v47 }
  0xc1   :  { %4335 = vst [vmem:[#allocation24_spill] sm:$0xff] %v2632_v48  ;;  %2083 = vtanh.f32 %v2632_v48 }
  0xcb   :  { %v2084_v50 = vpop.eup %2083 }
  0xcc   :  { %v2635_v51 = vmul.f32 %v2084_v50, %v2082_v49 }
  0xcd   :  { %2543 = dma.done.wait [#allocation3], 12288 }
  0xce   :  { %2544 = vsyncadd [#allocation3], 4294955008  ;;  %2085 = vset.pattern.permute.xlu0 %v4060_v0  ;;  %2086 = vset.pattern.permute.xlu1 %v4060_v0  ;;  %v2556_v52 = vmov 0.0|0.0   ;;  %v2639_v53 = vld [vmem:[#allocation2 + $0x108] sm:$0xff]  ;;  %v2641_v54 = vld [vmem:[#allocation2 + $0x118] sm:$0xff]  ;;  %vm1980_vm0 = vcmask 1041408  }
  0xcf   :  { %270 = vmatprep.mubr.bf16.mxu0 %v2556_v52  ;;  %311 = vmatprep.mubr.bf16.mxu1 %v2556_v52  ;;  %v2643_v55 = vld [vmem:[#allocation2 + $0x100] sm:$0xff]  ;;  %v2647_v56 = vld [vmem:[#allocation2 + $0x110] sm:$0xff]  ;;  %v2649_v57 = vld [vmem:[#allocation2 + $0x128] sm:$0xff]  ;;  %vm1985_vm1 = vcmask 1024  }
  0xd0   :  { %238 = vmatprep.subr.bf16.mxu0 %v2639_v53  ;;  %279 = vmatprep.subr.bf16.mxu1 %v2641_v54  ;;  %v2651_v58 = vld [vmem:[#allocation2 + $0x138] sm:$0xff]  ;;  %v2657_v59 = vld [vmem:[#allocation2 + $0x120] sm:$0xff]  ;;  %v2659_v60 = vld [vmem:[#allocation2 + $0x130] sm:$0xff] }
  0xd1   :  { %239 = vmatpush1.bf16.msra.mxu0 %v2643_v55  ;;  %280 = vmatpush1.bf16.msra.mxu1 %v2647_v56  ;;  %v2661_v61 = vld [vmem:[#allocation2 + $0x148] sm:$0xff]  ;;  %v2663_v62 = vld [vmem:[#allocation2 + $0x158] sm:$0xff]  ;;  %v2669_v63 = vld [vmem:[#allocation2 + $0x140] sm:$0xff] }
  0xd2   :  { %240 = vmatprep.subr.bf16.mxu0 %v2649_v57  ;;  %281 = vmatprep.subr.bf16.mxu1 %v2651_v58  ;;  %v2671_v1 = vld [vmem:[#allocation2 + $0x150] sm:$0xff]  ;;  %v2673_v2 = vld [vmem:[#allocation2 + $0x168] sm:$0xff]  ;;  %v2675_v5 = vld [vmem:[#allocation2 + $0x178] sm:$0xff] }
  0xd3   :  { %v2681_v6 = vld [vmem:[#allocation2 + $0x160] sm:$0xff]  ;;  %v2683_v7 = vld [vmem:[#allocation2 + $0x170] sm:$0xff]  ;;  %v2685_v8 = vld [vmem:[#allocation2 + $0x188] sm:$0xff] }
  0xd4   :  { %v2687_v9 = vld [vmem:[#allocation2 + $0x198] sm:$0xff]  ;;  %v2693_v10 = vld [vmem:[#allocation2 + $0x180] sm:$0xff]  ;;  %v2695_v15 = vld [vmem:[#allocation2 + $0x190] sm:$0xff] }
  0xd5   :  { %241 = vmatpush1.bf16.msra.mxu0 %v2657_v59  ;;  %282 = vmatpush1.bf16.msra.mxu1 %v2659_v60  ;;  %v2697_v16 = vld [vmem:[#allocation2 + $0x1a8] sm:$0xff]  ;;  %v2699_v21 = vld [vmem:[#allocation2 + $0x1b8] sm:$0xff]  ;;  %v2705_v22 = vld [vmem:[#allocation2 + $0x1a0] sm:$0xff] }
  0xd6   :  { %242 = vmatprep.subr.bf16.mxu0 %v2661_v61  ;;  %283 = vmatprep.subr.bf16.mxu1 %v2663_v62  ;;  %v2707_v23 = vld [vmem:[#allocation2 + $0x1b0] sm:$0xff]  ;;  %v2709_v25 = vld [vmem:[#allocation2 + $0x1c8] sm:$0xff]  ;;  %v2711_v26 = vld [vmem:[#allocation2 + $0x1d8] sm:$0xff] }
  0xd7   :  { %v2717_v27 = vld [vmem:[#allocation2 + $0x1c0] sm:$0xff]  ;;  %v2719_v28 = vld [vmem:[#allocation2 + $0x1d0] sm:$0xff]  ;;  %v2721_v30 = vld [vmem:[#allocation2 + $0x1e8] sm:$0xff] }
  0xd8   :  { %v2723_v32 = vld [vmem:[#allocation2 + $0x1f8] sm:$0xff]  ;;  %v2729_v34 = vld [vmem:[#allocation2 + $0x1e0] sm:$0xff]  ;;  %v2731_v35 = vld [vmem:[#allocation2 + $0x1f0] sm:$0xff] }
  0xd9   :  { %243 = vmatpush1.bf16.msra.mxu0 %v2669_v63  ;;  %284 = vmatpush1.bf16.msra.mxu1 %v2671_v1  ;;  %4336 = vst [vmem:[#allocation25_spill] sm:$0xff] %v2731_v35  ;;  %v2733_v36 = vld [vmem:[#allocation2 + $0x208] sm:$0xff]  ;;  %v2735_v37 = vld [vmem:[#allocation2 + $0x218] sm:$0xff]  ;;  %v2741_v38 = vld [vmem:[#allocation2 + $0x200] sm:$0xff] }
  0xda   :  { %244 = vmatprep.subr.bf16.mxu0 %v2673_v2  ;;  %285 = vmatprep.subr.bf16.mxu1 %v2675_v5  ;;  %4337 = vst [vmem:[#allocation26_spill] sm:$0xff] %v2733_v36  ;;  %4338 = vst [vmem:[#allocation27_spill] sm:$0xff] %v2735_v37  ;;  %v2743_v39 = vld [vmem:[#allocation2 + $0x210] sm:$0xff]  ;;  %v2745_v40 = vld [vmem:[#allocation2 + $0x228] sm:$0xff] }
  0xdb   :  { %4339 = vst [vmem:[#allocation28_spill] sm:$0xff] %v2741_v38  ;;  %4340 = vst [vmem:[#allocation29_spill] sm:$0xff] %v2743_v39  ;;  %v2747_v41 = vld [vmem:[#allocation2 + $0x238] sm:$0xff]  ;;  %v2003_v42 = vld [vmem:[%s4056_s0 + $0x2] sm:$0x3] }
  0xdc   :  { %4341 = vst [vmem:[#allocation30_spill] sm:$0xff] %v2745_v40  ;;  %4342 = vst [vmem:[#allocation31_spill] sm:$0xff] %v2747_v41  ;;  %356 = vperm.xlu0 %2085, %v2003_v42   ;;  %v2010_v43 = vld [vmem:[%s4056_s0 + $0x4] sm:$0x3]  ;;  %v2761_v45 = vld [vmem:[#allocation2 + $0x230] sm:$0xff] }
  0xdd   :  { %245 = vmatpush1.bf16.msra.mxu0 %v2681_v6  ;;  %286 = vmatpush1.bf16.msra.mxu1 %v2683_v7  ;;  %v2759_v44 = vld [vmem:[#allocation2 + $0x220] sm:$0xff]  ;;  %4344 = vst [vmem:[#allocation33_spill] sm:$0xff] %v2761_v45  ;;  %v2763_v46 = vld [vmem:[#allocation2 + $0x248] sm:$0xff]  ;;  %v2765_v47 = vld [vmem:[#allocation2 + $0x258] sm:$0xff] }
  0xde   :  { %246 = vmatprep.subr.bf16.mxu0 %v2685_v8  ;;  %287 = vmatprep.subr.bf16.mxu1 %v2687_v9  ;;  %4343 = vst [vmem:[#allocation32_spill] sm:$0xff] %v2759_v44  ;;  %4345 = vst [vmem:[#allocation34_spill] sm:$0xff] %v2763_v46  ;;  %v2031_v49 = vld [vmem:[%s4056_s0 + $0xa] sm:$0x3]  ;;  %v2774_v50 = vld [vmem:[#allocation2 + $0x240] sm:$0xff] }
  0xdf   :  { %4346 = vst [vmem:[#allocation35_spill] sm:$0xff] %v2765_v47  ;;  %4347 = vst [vmem:[#allocation36_spill] sm:$0xff] %v2774_v50  ;;  %v2776_v52 = vld [vmem:[#allocation2 + $0x250] sm:$0xff]  ;;  %v2778_v42 = vld [vmem:[#allocation2 + $0x268] sm:$0xff] }
  0xe0   :  { %585 = vperm.xlu0 %2085, %v2010_v43   ;;  %4348 = vst [vmem:[#allocation37_spill] sm:$0xff] %v2776_v52  ;;  %4349 = vst [vmem:[#allocation38_spill] sm:$0xff] %v2778_v42  ;;  %v2780_v0 = vld [vmem:[#allocation2 + $0x278] sm:$0xff]  ;;  %v2045_v43 = vld [vmem:[%s4056_s0 + $0xe] sm:$0x3] }
  0xe1   :  { %247 = vmatpush1.bf16.msra.mxu0 %v2693_v10  ;;  %288 = vmatpush1.bf16.msra.mxu1 %v2695_v15  ;;  %4350 = vst [vmem:[#allocation39_spill] sm:$0xff] %v2780_v0  ;;  %v2789_v4 = vld [vmem:[#allocation2 + $0x260] sm:$0xff]  ;;  %v2791_v3 = vld [vmem:[#allocation2 + $0x270] sm:$0xff]  ;;  %v2793_v48 = vld [vmem:[#allocation2 + $0x288] sm:$0xff] }
  0xe2   :  { %248 = vmatprep.subr.bf16.mxu0 %v2697_v16  ;;  %289 = vmatprep.subr.bf16.mxu1 %v2699_v21  ;;  %4351 = vst [vmem:[#allocation40_spill] sm:$0xff] %v2789_v4  ;;  %4352 = vst [vmem:[#allocation41_spill] sm:$0xff] %v2791_v3  ;;  %v2795_v33 = vld [vmem:[#allocation2 + $0x298] sm:$0xff]  ;;  %v2803_v31 = vld [vmem:[#allocation2 + $0x290] sm:$0xff] }
  0xe3   :  { %4353 = vst [vmem:[#allocation42_spill] sm:$0xff] %v2793_v48  ;;  %4354 = vst [vmem:[#allocation43_spill] sm:$0xff] %v2795_v33  ;;  %v2805_v29 = vld [vmem:[#allocation2 + $0x2a8] sm:$0xff]  ;;  %v2807_v24 = vld [vmem:[#allocation2 + $0x2b8] sm:$0xff] }
  0xe4   :  { %1272 = vperm.xlu0 %2085, %v2031_v49   ;;  %v2801_v49 = vld [vmem:[#allocation2 + $0x280] sm:$0xff]  ;;  %4356 = vst [vmem:[#allocation45_spill] sm:$0xff] %v2803_v31  ;;  %4357 = vst [vmem:[#allocation46_spill] sm:$0xff] %v2805_v29  ;;  %v2815_v20 = vld [vmem:[#allocation2 + $0x2b0] sm:$0xff] }
  0xe5   :  { %249 = vmatpush1.bf16.msra.mxu0 %v2705_v22  ;;  %290 = vmatpush1.bf16.msra.mxu1 %v2707_v23  ;;  %4355 = vst [vmem:[#allocation44_spill] sm:$0xff] %v2801_v49  ;;  %4358 = vst [vmem:[#allocation47_spill] sm:$0xff] %v2807_v24  ;;  %v2817_v19 = vld [vmem:[#allocation2 + $0x2c8] sm:$0xff]  ;;  %v2819_v18 = vld [vmem:[#allocation2 + $0x2d8] sm:$0xff] }
  0xe6   :  { %250 = vmatprep.subr.bf16.mxu0 %v2709_v25  ;;  %291 = vmatprep.subr.bf16.mxu1 %v2711_v26  ;;  %4360 = vst [vmem:[#allocation49_spill] sm:$0xff] %v2815_v20  ;;  %4361 = vst [vmem:[#allocation50_spill] sm:$0xff] %v2817_v19  ;;  %v2825_v17 = vld [vmem:[#allocation2 + $0x2c0] sm:$0xff]  ;;  %v2827_v13 = vld [vmem:[#allocation2 + $0x2d0] sm:$0xff] }
  0xe7   :  { %4362 = vst [vmem:[#allocation51_spill] sm:$0xff] %v2819_v18  ;;  %4363 = vst [vmem:[#allocation52_spill] sm:$0xff] %v2825_v17  ;;  %v2829_v14 = vld [vmem:[#allocation2 + $0x2e8] sm:$0xff]  ;;  %v2831_v12 = vld [vmem:[#allocation2 + $0x2f8] sm:$0xff] }
  0xe8   :  { %1730 = vperm.xlu0 %2085, %v2045_v43   ;;  %v2813_v43 = vld [vmem:[#allocation2 + $0x2a0] sm:$0xff]  ;;  %4364 = vst [vmem:[#allocation53_spill] sm:$0xff] %v2827_v13  ;;  %4365 = vst [vmem:[#allocation54_spill] sm:$0xff] %v2829_v14 }
  0xe9   :  { %251 = vmatpush1.bf16.msra.mxu0 %v2717_v27  ;;  %292 = vmatpush1.bf16.msra.mxu1 %v2719_v28  ;;  %4359 = vst [vmem:[#allocation48_spill] sm:$0xff] %v2813_v43  ;;  %4366 = vst [vmem:[#allocation55_spill] sm:$0xff] %v2831_v12  ;;  %v2837_v11 = vld [vmem:[#allocation2 + $0x2e0] sm:$0xff] }
  0xea   :  { %252 = vmatprep.subr.bf16.mxu0 %v2721_v30  ;;  %293 = vmatprep.subr.bf16.mxu1 %v2723_v32  ;;  %4367 = vst [vmem:[#allocation56_spill] sm:$0xff] %v2837_v11 }
  0xed   :  { %253 = vmatpush1.bf16.msra.mxu0 %v2729_v34  ;;  %294 = vmatpush1.bf16.msra.mxu1 %v2731_v35 }
  0xee   :  { %254 = vmatprep.subr.bf16.mxu0 %v2733_v36  ;;  %295 = vmatprep.subr.bf16.mxu1 %v2735_v37 }
  0xf1   :  { %255 = vmatpush1.bf16.msra.mxu0 %v2741_v38  ;;  %296 = vmatpush1.bf16.msra.mxu1 %v2743_v39 }
  0xf2   :  { %256 = vmatprep.subr.bf16.mxu0 %v2745_v40  ;;  %297 = vmatprep.subr.bf16.mxu1 %v2747_v41 }
  0xf5   :  { %257 = vmatpush1.bf16.msra.mxu0 %v2759_v44  ;;  %298 = vmatpush1.bf16.msra.mxu1 %v2761_v45 }
  0xf6   :  { %258 = vmatprep.subr.bf16.mxu0 %v2763_v46  ;;  %299 = vmatprep.subr.bf16.mxu1 %v2765_v47 }
  0xf9   :  { %259 = vmatpush1.bf16.msra.mxu0 %v2774_v50  ;;  %300 = vmatpush1.bf16.msra.mxu1 %v2776_v52 }
  0xfa   :  { %260 = vmatprep.subr.bf16.mxu0 %v2778_v42  ;;  %301 = vmatprep.subr.bf16.mxu1 %v2780_v0 }
  0xfd   :  { %261 = vmatpush1.bf16.msra.mxu0 %v2789_v4  ;;  %302 = vmatpush1.bf16.msra.mxu1 %v2791_v3 }
  0xfe   :  { %262 = vmatprep.subr.bf16.mxu0 %v2793_v48  ;;  %303 = vmatprep.subr.bf16.mxu1 %v2795_v33 }
 0x101   :  { %263 = vmatpush1.bf16.msra.mxu0 %v2801_v49  ;;  %304 = vmatpush1.bf16.msra.mxu1 %v2803_v31 }
 0x102   :  { %264 = vmatprep.subr.bf16.mxu0 %v2805_v29  ;;  %305 = vmatprep.subr.bf16.mxu1 %v2807_v24 }
 0x105   :  { %265 = vmatpush1.bf16.msra.mxu0 %v2813_v43  ;;  %306 = vmatpush1.bf16.msra.mxu1 %v2815_v20  ;;  %v2843_v20 = vld [vmem:[#allocation2 + $0x18] sm:$0xff]  ;;  %v2847_v43 = vpack.c.bf16 %v2635_v51, %v2635_v51  ;;  %v2867_v51 = vld [vmem:[#allocation2 + $0x20] sm:$0xff] }
 0x106   :  { %266 = vmatprep.subr.bf16.mxu0 %v2817_v19  ;;  %307 = vmatprep.subr.bf16.mxu1 %v2819_v18  ;;  %v2839_v19 = vld [vmem:[#allocation2 + $0x2f0] sm:$0xff]  ;;  %v2841_v18 = vld [vmem:[#allocation2 + $0x8] sm:$0xff]  ;;  %4370 = vst [vmem:[#allocation59_spill] sm:$0xff] %v2843_v20  ;;  %4375 = vst [vmem:[#allocation64_spill] sm:$0xff] %v2867_v51 }
 0x107   :  { %4368 = vst [vmem:[#allocation57_spill] sm:$0xff] %v2839_v19  ;;  %4369 = vst [vmem:[#allocation58_spill] sm:$0xff] %v2841_v18 }
 0x109   :  { %267 = vmatpush1.bf16.msra.mxu0 %v2825_v17  ;;  %308 = vmatpush1.bf16.msra.mxu1 %v2827_v13  ;;  %v2857_v13 = vld [vmem:[#allocation2 + $0x28] sm:$0xff]  ;;  %v2859_v17 = vld [vmem:[#allocation2 + $0x38] sm:$0xff] }
 0x10a   :  { %268 = vmatprep.subr.bf16.mxu0 %v2829_v14  ;;  %309 = vmatprep.subr.bf16.mxu1 %v2831_v12  ;;  %v2853_v12 = vld [vmem:[#allocation2] sm:$0xff]  ;;  %v2855_v14 = vld [vmem:[#allocation2 + $0x10] sm:$0xff]  ;;  %4373 = vst [vmem:[#allocation62_spill] sm:$0xff] %v2857_v13  ;;  %4374 = vst [vmem:[#allocation63_spill] sm:$0xff] %v2859_v17 }
 0x10b   :  { %4371 = vst [vmem:[#allocation60_spill] sm:$0xff] %v2853_v12  ;;  %4372 = vst [vmem:[#allocation61_spill] sm:$0xff] %v2855_v14 }
 0x10d   :  { %269 = vmatpush1.bf16.msra.mxu0 %v2837_v11  ;;  %310 = vmatpush1.bf16.msra.mxu1 %v2839_v19  ;;  %v2873_v19 = vld [vmem:[#allocation2 + $0x58] sm:$0xff]  ;;  %v4379_v11 = vmov 0  }
 0x10e   :  { %367 = vmatprep.subr.bf16.mxu0 %v2841_v18  ;;  %408 = vmatprep.subr.bf16.mxu1 %v2843_v20  ;;  %v2869_v20 = vld [vmem:[#allocation2 + $0x30] sm:$0xff]  ;;  %v2871_v18 = vld [vmem:[#allocation2 + $0x48] sm:$0xff]  ;;  %4378 = vst [vmem:[#allocation67_spill] sm:$0xff] %v2873_v19 }
 0x10f   :  { %4376 = vst [vmem:[#allocation65_spill] sm:$0xff] %v2869_v20  ;;  %4377 = vst [vmem:[#allocation66_spill] sm:$0xff] %v2871_v18 }
 0x110   :  { %271 = vmatmul.mubr.bf16.vlgmr.msra.gmra.mrb[0].mxu0 %v2847_v43  ;;  %312 = vmatmul.mubr.bf16.vlgmr.msra.gmra.mrb[0].mxu1 %v2847_v43 }
 0x111   :  { %368 = vmatpush1.bf16.msra.mxu0 %v2853_v12  ;;  %409 = vmatpush1.bf16.msra.mxu1 %v2855_v14  ;;  %v2885_v14 = vld [vmem:[#allocation2 + $0x68] sm:$0xff]  ;;  %v2887_v12 = vld [vmem:[#allocation2 + $0x78] sm:$0xff] }
 0x112   :  { %369 = vmatprep.subr.bf16.mxu0 %v2857_v13  ;;  %410 = vmatprep.subr.bf16.mxu1 %v2859_v17  ;;  %v2881_v17 = vld [vmem:[#allocation2 + $0x40] sm:$0xff]  ;;  %v2883_v13 = vld [vmem:[#allocation2 + $0x50] sm:$0xff]  ;;  %4382 = vst [vmem:[#allocation70_spill] sm:$0xff] %v2885_v14  ;;  %4383 = vst [vmem:[#allocation71_spill] sm:$0xff] %v2887_v12 }
 0x113   :  { %399 = vmatprep.mubr.bf16.mxu0 %v4379_v11  ;;  %440 = vmatprep.mubr.bf16.mxu1 %v4379_v11  ;;  %4380 = vst [vmem:[#allocation68_spill] sm:$0xff] %v2881_v17  ;;  %4381 = vst [vmem:[#allocation69_spill] sm:$0xff] %v2883_v13 }
 0x115   :  { %370 = vmatpush1.bf16.msra.mxu0 %v2867_v51  ;;  %411 = vmatpush1.bf16.msra.mxu1 %v2869_v20  ;;  %v2893_v20 = vld [vmem:[#allocation2 + $0x60] sm:$0xff]  ;;  %v2899_v51 = vld [vmem:[#allocation2 + $0x98] sm:$0xff] }
 0x116   :  { %371 = vmatprep.subr.bf16.mxu0 %v2871_v18  ;;  %412 = vmatprep.subr.bf16.mxu1 %v2873_v19  ;;  %4384 = vst [vmem:[#allocation72_spill] sm:$0xff] %v2893_v20  ;;  %v2895_v18 = vld [vmem:[#allocation2 + $0x70] sm:$0xff]  ;;  %v2897_v19 = vld [vmem:[#allocation2 + $0x88] sm:$0xff]  ;;  %4387 = vst [vmem:[#allocation75_spill] sm:$0xff] %v2899_v51 }
 0x117   :  { %4385 = vst [vmem:[#allocation73_spill] sm:$0xff] %v2895_v18  ;;  %4386 = vst [vmem:[#allocation74_spill] sm:$0xff] %v2897_v19 }
 0x119   :  { %372 = vmatpush1.bf16.msra.mxu0 %v2881_v17  ;;  %413 = vmatpush1.bf16.msra.mxu1 %v2883_v13  ;;  %v2905_v13 = vld [vmem:[#allocation2 + $0x80] sm:$0xff]  ;;  %v2911_v17 = vld [vmem:[#allocation2 + $0xb8] sm:$0xff] }
 0x11a   :  { %373 = vmatprep.subr.bf16.mxu0 %v2885_v14  ;;  %414 = vmatprep.subr.bf16.mxu1 %v2887_v12  ;;  %4388 = vst [vmem:[#allocation76_spill] sm:$0xff] %v2905_v13  ;;  %v2907_v14 = vld [vmem:[#allocation2 + $0x90] sm:$0xff]  ;;  %v2909_v12 = vld [vmem:[#allocation2 + $0xa8] sm:$0xff]  ;;  %4391 = vst [vmem:[#allocation79_spill] sm:$0xff] %v2911_v17 }
 0x11b   :  { %4389 = vst [vmem:[#allocation77_spill] sm:$0xff] %v2907_v14  ;;  %4390 = vst [vmem:[#allocation78_spill] sm:$0xff] %v2909_v12 }
 0x11d   :  { %374 = vmatpush1.bf16.msra.mxu0 %v2893_v20  ;;  %415 = vmatpush1.bf16.msra.mxu1 %v2895_v18  ;;  %v2917_v18 = vld [vmem:[#allocation2 + $0xa0] sm:$0xff]  ;;  %v2923_v20 = vld [vmem:[#allocation2 + $0xd8] sm:$0xff] }
 0x11e   :  { %375 = vmatprep.subr.bf16.mxu0 %v2897_v19  ;;  %416 = vmatprep.subr.bf16.mxu1 %v2899_v51  ;;  %v2919_v19 = vld [vmem:[#allocation2 + $0xb0] sm:$0xff]  ;;  %v2921_v51 = vld [vmem:[#allocation2 + $0xc8] sm:$0xff] }
 0x11f   :  { %4392 = vst [vmem:[#allocation80_spill] sm:$0xff] %v2919_v19  ;;  %4393 = vst [vmem:[#allocation81_spill] sm:$0xff] %v2921_v51 }
 0x121   :  { %376 = vmatpush1.bf16.msra.mxu0 %v2905_v13  ;;  %417 = vmatpush1.bf16.msra.mxu1 %v2907_v14  ;;  %v2929_v14 = vld [vmem:[#allocation2 + $0xc0] sm:$0xff]  ;;  %v2935_v13 = vld [vmem:[#allocation2 + $0xf8] sm:$0xff] }
 0x122   :  { %377 = vmatprep.subr.bf16.mxu0 %v2909_v12  ;;  %418 = vmatprep.subr.bf16.mxu1 %v2911_v17  ;;  %v2931_v12 = vld [vmem:[#allocation2 + $0xd0] sm:$0xff]  ;;  %v2933_v17 = vld [vmem:[#allocation2 + $0xe8] sm:$0xff] }
 0x125   :  { %378 = vmatpush1.bf16.msra.mxu0 %v2917_v18  ;;  %419 = vmatpush1.bf16.msra.mxu1 %v2919_v19  ;;  %v2941_v19 = vld [vmem:[#allocation2 + $0xe0] sm:$0xff] }
 0x126   :  { %379 = vmatprep.subr.bf16.mxu0 %v2921_v51  ;;  %420 = vmatprep.subr.bf16.mxu1 %v2923_v20  ;;  %v2943_v51 = vld [vmem:[#allocation2 + $0xf0] sm:$0xff] }
 0x129   :  { %380 = vmatpush1.bf16.msra.mxu0 %v2929_v14  ;;  %421 = vmatpush1.bf16.msra.mxu1 %v2931_v12 }
 0x12a   :  { %381 = vmatprep.subr.bf16.mxu0 %v2933_v17  ;;  %422 = vmatprep.subr.bf16.mxu1 %v2935_v13 }
 0x12d   :  { %382 = vmatpush1.bf16.msra.mxu0 %v2941_v19  ;;  %423 = vmatpush1.bf16.msra.mxu1 %v2943_v51 }
 0x12e   :  { %499 = vmatprep.subr.bf16.mxu0 %v2639_v53  ;;  %540 = vmatprep.subr.bf16.mxu1 %v2641_v54 }
 0x130   :  { %400 = vmatmul.mubr.bf16.vlgmr.msra.gmra.mrb[4].mxu0 %v2847_v43  ;;  %441 = vmatmul.mubr.bf16.vlgmr.msra.gmra.mrb[4].mxu1 %v2847_v43  ;;  %v4394_v43 = vld [vmem:[#allocation48_spill] sm:$0xff] }
 0x131   :  { %500 = vmatpush1.bf16.msra.mxu0 %v2643_v55  ;;  %541 = vmatpush1.bf16.msra.mxu1 %v2647_v56 }
 0x132   :  { %501 = vmatprep.subr.bf16.mxu0 %v2649_v57  ;;  %542 = vmatprep.subr.bf16.mxu1 %v2651_v58 }
 0x135   :  { %502 = vmatpush1.bf16.msra.mxu0 %v2657_v59  ;;  %543 = vmatpush1.bf16.msra.mxu1 %v2659_v60 }
 0x136   :  { %503 = vmatprep.subr.bf16.mxu0 %v2661_v61  ;;  %544 = vmatprep.subr.bf16.mxu1 %v2663_v62 }
 0x139   :  { %504 = vmatpush1.bf16.msra.mxu0 %v2669_v63  ;;  %545 = vmatpush1.bf16.msra.mxu1 %v2671_v1 }
 0x13a   :  { %505 = vmatprep.subr.bf16.mxu0 %v2673_v2  ;;  %546 = vmatprep.subr.bf16.mxu1 %v2675_v5 }
 0x13d   :  { %506 = vmatpush1.bf16.msra.mxu0 %v2681_v6  ;;  %547 = vmatpush1.bf16.msra.mxu1 %v2683_v7 }
 0x13e   :  { %507 = vmatprep.subr.bf16.mxu0 %v2685_v8  ;;  %548 = vmatprep.subr.bf16.mxu1 %v2687_v9 }
 0x141   :  { %508 = vmatpush1.bf16.msra.mxu0 %v2693_v10  ;;  %549 = vmatpush1.bf16.msra.mxu1 %v2695_v15 }
 0x142   :  { %509 = vmatprep.subr.bf16.mxu0 %v2697_v16  ;;  %550 = vmatprep.subr.bf16.mxu1 %v2699_v21 }
 0x145   :  { %510 = vmatpush1.bf16.msra.mxu0 %v2705_v22  ;;  %551 = vmatpush1.bf16.msra.mxu1 %v2707_v23 }
 0x146   :  { %511 = vmatprep.subr.bf16.mxu0 %v2709_v25  ;;  %552 = vmatprep.subr.bf16.mxu1 %v2711_v26 }
 0x149   :  { %512 = vmatpush1.bf16.msra.mxu0 %v2717_v27  ;;  %553 = vmatpush1.bf16.msra.mxu1 %v2719_v28 }
 0x14a   :  { %513 = vmatprep.subr.bf16.mxu0 %v2721_v30  ;;  %554 = vmatprep.subr.bf16.mxu1 %v2723_v32 }
 0x14d   :  { %514 = vmatpush1.bf16.msra.mxu0 %v2729_v34  ;;  %555 = vmatpush1.bf16.msra.mxu1 %v2731_v35 }
 0x14e   :  { %515 = vmatprep.subr.bf16.mxu0 %v2733_v36  ;;  %556 = vmatprep.subr.bf16.mxu1 %v2735_v37 }
 0x151   :  { %516 = vmatpush1.bf16.msra.mxu0 %v2741_v38  ;;  %557 = vmatpush1.bf16.msra.mxu1 %v2743_v39 }
 0x152   :  { %517 = vmatprep.subr.bf16.mxu0 %v2745_v40  ;;  %558 = vmatprep.subr.bf16.mxu1 %v2747_v41 }
 0x155   :  { %518 = vmatpush1.bf16.msra.mxu0 %v2759_v44  ;;  %559 = vmatpush1.bf16.msra.mxu1 %v2761_v45 }
 0x156   :  { %519 = vmatprep.subr.bf16.mxu0 %v2763_v46  ;;  %560 = vmatprep.subr.bf16.mxu1 %v2765_v47  ;;  %v4407_v47 = vld [vmem:[#allocation13_spill] sm:$0xff] }
 0x159   :  { %520 = vmatpush1.bf16.msra.mxu0 %v2774_v50  ;;  %561 = vmatpush1.bf16.msra.mxu1 %v2776_v52  ;;  %v4406_v52 = vld [vmem:[#allocation12_spill] sm:$0xff] }
 0x15a   :  { %521 = vmatprep.subr.bf16.mxu0 %v2778_v42  ;;  %562 = vmatprep.subr.bf16.mxu1 %v2780_v0  ;;  %v4395_v42 = vld [vmem:[#allocation49_spill] sm:$0xff]  ;;  %v4396_v0 = vld [vmem:[#allocation50_spill] sm:$0xff] }
 0x15d   :  { %522 = vmatpush1.bf16.msra.mxu0 %v2789_v4  ;;  %563 = vmatpush1.bf16.msra.mxu1 %v2791_v3  ;;  %v4397_v4 = vld [vmem:[#allocation51_spill] sm:$0xff]  ;;  %v4398_v3 = vld [vmem:[#allocation52_spill] sm:$0xff] }
 0x15e   :  { %523 = vmatprep.subr.bf16.mxu0 %v2793_v48  ;;  %564 = vmatprep.subr.bf16.mxu1 %v2795_v33  ;;  %v4399_v48 = vld [vmem:[#allocation53_spill] sm:$0xff]  ;;  %v4400_v33 = vld [vmem:[#allocation54_spill] sm:$0xff] }
 0x161   :  { %524 = vmatpush1.bf16.msra.mxu0 %v2801_v49  ;;  %565 = vmatpush1.bf16.msra.mxu1 %v2803_v31  ;;  %v4401_v49 = vld [vmem:[#allocation55_spill] sm:$0xff]  ;;  %v4402_v31 = vld [vmem:[#allocation56_spill] sm:$0xff] }
 0x162   :  { %525 = vmatprep.subr.bf16.mxu0 %v2805_v29  ;;  %566 = vmatprep.subr.bf16.mxu1 %v2807_v24  ;;  %v4403_v29 = vld [vmem:[#allocation57_spill] sm:$0xff]  ;;  %v4404_v24 = vld [vmem:[#allocation58_spill] sm:$0xff] }
 0x165   :  { %526 = vmatpush1.bf16.msra.mxu0 %v4394_v43  ;;  %567 = vmatpush1.bf16.msra.mxu1 %v4395_v42  ;;  %v4405_v43 = vld [vmem:[#allocation59_spill] sm:$0xff] }
 0x166   :  { %527 = vmatprep.subr.bf16.mxu0 %v4396_v0  ;;  %568 = vmatprep.subr.bf16.mxu1 %v4397_v4 }
 0x169   :  { %528 = vmatpush1.bf16.msra.mxu0 %v4398_v3  ;;  %569 = vmatpush1.bf16.msra.mxu1 %v4399_v48 }
 0x16a   :  { %529 = vmatprep.subr.bf16.mxu0 %v4400_v33  ;;  %570 = vmatprep.subr.bf16.mxu1 %v4401_v49 }
 0x16d   :  { %530 = vmatpush1.bf16.msra.mxu0 %v4402_v31  ;;  %571 = vmatpush1.bf16.msra.mxu1 %v4403_v29  ;;  %v4408_v29 = vld [vmem:[#allocation15_spill] sm:$0xff] }
 0x16e   :  { %596 = vmatprep.subr.bf16.mxu0 %v4404_v24  ;;  %637 = vmatprep.subr.bf16.mxu1 %v4405_v43  ;;  %v4409_v43 = vld [vmem:[#allocation14_spill] sm:$0xff] }
 0x1e3   :  { %v272_v42 = vpop.f32.mrb[0].mxu0  ;;  %v313_v0 = vpop.f32.mrb[0].mxu1 }
 0x1e4   :  { %v273_v4 = vadd.f32 %v272_v42, %v4406_v52  ;;  %v274_v50 = vpop.f32.mrb[1].mxu0  ;;  %v315_v3 = vpop.f32.mrb[1].mxu1  ;;  %v314_v40 = vadd.f32 %v313_v0, %v4409_v43  ;;  %v4412_v0 = vld [vmem:[#allocation18_spill] sm:$0xff] }
 0x1e5   :  { %v275_v48 = vadd.f32 %v274_v50, %v4407_v47  ;;  %v276_v46 = vpop.f32.mrb[2].mxu0  ;;  %v317_v33 = vpop.f32.mrb[2].mxu1  ;;  %v316_v24 = vadd.f32 %v315_v3, %v4408_v29  ;;  %v4413_v29 = vld [vmem:[#allocation19_spill] sm:$0xff] }
 0x1e6   :  { %v2007_v45 = vmul.f32 -1.442695, %v273_v4  ;;  %v277_v49 = vpop.f32.mrb[3].mxu0  ;;  %v318_v44 = vpop.f32.mrb[3].mxu1  ;;  %v4410_v46 = vld [vmem:[#allocation16_spill] sm:$0xff] }
 0x1e7   :  { %v2008_v31 = vmul.f32 -1.442695, %v275_v48  ;;  %v2009_v41 = vmul.f32 -1.442695, %v316_v24  ;;  %v357_v33 = vpop.permute.xlu0 %356 }
 0x1e8   :  { %2087 = vpow2.f32 %v2007_v45  ;;  %v359_v44 = vmul.f32 %v357_v33, %v4410_v46  ;;  %v4411_v45 = vld [vmem:[#allocation17_spill] sm:$0xff] }
 0x1e9   :  { %2089 = vpow2.f32 %v2008_v31  ;;  %v360_v31 = vmul.f32 %v357_v33, %v4411_v45 }
 0x1ea   :  { %2091 = vpow2.f32 %v2009_v41  ;;  %v363_v43 = vadd.f32 %v359_v44, %v4412_v0 }
 0x1eb   :  { %2093 = vtanh.f32 %v314_v40 }
 0x1f2   :  { %v2088_v39 = vpop.eup %2087 }
 0x1f3   :  { %v2090_v42 = vpop.eup %2089  ;;  %v476_v52 = vadd.f32 1.0, %v2088_v39  ;;  %v364_v39 = vadd.f32 %v360_v31, %v4413_v29  ;;  %v4416_v31 = vld [vmem:[#allocation21_spill] sm:$0xff] }
 0x1f4   :  { %v482_v38 = vadd.f32 1.0, %v2090_v42  ;;  %v2092_v4 = vpop.eup %2091  ;;  %v4415_v42 = vld [vmem:[#allocation20_spill] sm:$0xff] }
 0x1f5   :  { %2095 = vrcp.f32 %v476_v52  ;;  %v2094_v48 = vpop.eup %2093  ;;  %v489_v3 = vadd.f32 1.0, %v2092_v4  ;;  %v362_v47 = vmul.f32 %v357_v33, %v4415_v42  ;;  %v4418_v42 = vld [vmem:[#allocation23_spill] sm:$0xff] }
 0x1f6   :  { %2097 = vrcp.f32 %v482_v38 }
 0x1f7   :  { %2099 = vrcp.f32 %v489_v3  ;;  %v4417_v3 = vld [vmem:[#allocation22_spill] sm:$0xff] }
 0x1ff   :  { %v2096_v50 = vpop.eup %2095 }
 0x200   :  { %v2098_v24 = vpop.eup %2097  ;;  %v493_v49 = vmul.f32 %v2096_v50, %v2094_v48 }
 0x201   :  { %v492_v41 = vmul.f32 0.0, %v2098_v24 }
 0x203   :  { %v3023_v40 = vadd.f32 %v493_v49, %v492_v41  ;;  %v401_v38 = vpop.f32.mrb[4].mxu0  ;;  %v442_v52 = vpop.f32.mrb[4].mxu1  ;;  %v366_v49 = vadd.f32 %v362_v47, %v4416_v31  ;;  %v361_v41 = vmul.f32 %v357_v33, %v4417_v3 }
 0x204   :  { %v402_v46 = vadd.f32 %v401_v38, %v363_v43  ;;  %v403_v37 = vpop.f32.mrb[5].mxu0  ;;  %v444_v36 = vpop.f32.mrb[5].mxu1 }
 0x205   :  { %4414 = vst [vmem:[#allocation82_spill] sm:$0xff] %v3023_v40  ;;  %v404_v45 = vadd.f32 %v403_v37, %v364_v39  ;;  %v405_v35 = vpop.f32.mrb[6].mxu0  ;;  %v446_v4 = vpop.f32.mrb[6].mxu1  ;;  %2101 = vtanh.f32 %v3023_v40  ;;  %v445_v29 = vadd.f32 %v444_v36, %v366_v49  ;;  %v365_v43 = vadd.f32 %v361_v41, %v4418_v42 }
 0x206   :  { %v2004_v48 = vmul.f32 -1.442695, %v402_v46  ;;  %v406_v44 = vpop.f32.mrb[7].mxu0  ;;  %v447_v50 = vpop.f32.mrb[7].mxu1 }
 0x207   :  { %v2005_v24 = vmul.f32 -1.442695, %v404_v45  ;;  %v2100_v38 = vpop.eup %2099  ;;  %v2006_v37 = vmul.f32 -1.442695, %v445_v29  ;;  %v443_v35 = vadd.f32 %v442_v52, %v365_v43  ;;  %v4419_v29 = vld [vmem:[#allocation24_spill] sm:$0xff] }
 0x208   :  { %2103 = vpow2.f32 %v2004_v48 }
 0x209   :  { %2105 = vpow2.f32 %v2005_v24 }
 0x20a   :  { %2107 = vpow2.f32 %v2006_v37  ;;  %v4421_v37 = vld [vmem:[#allocation61_spill] sm:$0xff] }
 0x20b   :  { %2109 = vtanh.f32 %v443_v35  ;;  %v4422_v35 = vld [vmem:[#allocation62_spill] sm:$0xff] }
 0x20f   :  { %v2102_v0 = vpop.eup %2101 }
 0x210   :  { %v496_v39 = vmul.f32 %v2102_v0, %v2100_v38 }
 0x212   :  { %v2104_v4 = vpop.eup %2103  ;;  %v498_v40 = vpack.c.bf16 %v496_v39, %v496_v39  ;;  %v4423_v39 = vld [vmem:[#allocation63_spill] sm:$0xff] }
 0x213   :  { %v2106_v46 = vpop.eup %2105  ;;  %v452_v44 = vadd.f32 1.0, %v2104_v4  ;;  %v4424_v4 = vld [vmem:[#allocation64_spill] sm:$0xff] }
 0x214   :  { %v458_v45 = vadd.f32 1.0, %v2106_v46  ;;  %531 = vmatprep.mubr.bf16.mxu0 %v498_v40  ;;  %572 = vmatprep.mubr.bf16.mxu1 %v498_v40  ;;  %v2108_v47 = vpop.eup %2107  ;;  %v4420_v40 = vld [vmem:[#allocation60_spill] sm:$0xff]  ;;  %v4425_v46 = vld [vmem:[#allocation65_spill] sm:$0xff] }
 0x215   :  { %2111 = vrcp.f32 %v452_v44  ;;  %v2110_v36 = vpop.eup %2109  ;;  %v465_v24 = vadd.f32 1.0, %v2108_v47  ;;  %v4426_v44 = vld [vmem:[#allocation66_spill] sm:$0xff]  ;;  %v4428_v47 = vld [vmem:[#allocation68_spill] sm:$0xff] }
 0x216   :  { %2113 = vrcp.f32 %v458_v45  ;;  %v4427_v45 = vld [vmem:[#allocation67_spill] sm:$0xff] }
 0x217   :  { %2115 = vrcp.f32 %v465_v24  ;;  %v4433_v24 = vld [vmem:[#allocation73_spill] sm:$0xff] }
 0x21f   :  { %v2112_v33 = vpop.eup %2111 }
 0x220   :  { %v2114_v48 = vpop.eup %2113  ;;  %v469_v50 = vmul.f32 %v2112_v33, %v2110_v36  ;;  %v4429_v36 = vld [vmem:[#allocation69_spill] sm:$0xff]  ;;  %v4430_v33 = vld [vmem:[#allocation70_spill] sm:$0xff] }
 0x221   :  { %v468_v52 = vmul.f32 %v2114_v48, %v4419_v29  ;;  %v2116_v49 = vpop.eup %2115  ;;  %v4431_v48 = vld [vmem:[#allocation71_spill] sm:$0xff]  ;;  %v4434_v29 = vld [vmem:[#allocation74_spill] sm:$0xff] }
 0x223   :  { %v3031_v0 = vadd.f32 %v469_v50, %v468_v52  ;;  %v4432_v50 = vld [vmem:[#allocation72_spill] sm:$0xff]  ;;  %v4435_v52 = vld [vmem:[#allocation75_spill] sm:$0xff] }
 0x225   :  { %2117 = vtanh.f32 %v3031_v0 }
 0x22f   :  { %v2118_v41 = vpop.eup %2117 }
 0x230   :  { %v472_v43 = vmul.f32 %v2118_v41, %v2116_v49  ;;  %v4436_v49 = vld [vmem:[#allocation76_spill] sm:$0xff]  ;;  %v4437_v41 = vld [vmem:[#allocation77_spill] sm:$0xff] }
 0x232   :  { %v497_v38 = vpack.c.bf16 %v472_v43, %v472_v43  ;;  %v4438_v43 = vld [vmem:[#allocation78_spill] sm:$0xff] }
 0x234   :  { %532 = vmatmul.mubr.bf16.vlgmr.msra.gmra.mrb[8].mxu0 %v497_v38  ;;  %573 = vmatmul.mubr.bf16.vlgmr.msra.gmra.mrb[8].mxu1 %v497_v38 }
 0x235   :  { %597 = vmatpush1.bf16.msra.mxu0 %v4420_v40  ;;  %638 = vmatpush1.bf16.msra.mxu1 %v4421_v37 }
 0x236   :  { %598 = vmatprep.subr.bf16.mxu0 %v4422_v35  ;;  %639 = vmatprep.subr.bf16.mxu1 %v4423_v39 }
 0x237   :  { %628 = vmatprep.mubr.bf16.mxu0 %v4379_v11  ;;  %669 = vmatprep.mubr.bf16.mxu1 %v4379_v11 }
 0x239   :  { %599 = vmatpush1.bf16.msra.mxu0 %v4424_v4  ;;  %640 = vmatpush1.bf16.msra.mxu1 %v4425_v46 }
 0x23a   :  { %600 = vmatprep.subr.bf16.mxu0 %v4426_v44  ;;  %641 = vmatprep.subr.bf16.mxu1 %v4427_v45 }
 0x23d   :  { %601 = vmatpush1.bf16.msra.mxu0 %v4428_v47  ;;  %642 = vmatpush1.bf16.msra.mxu1 %v4429_v36  ;;  %v4439_v47 = vld [vmem:[#allocation79_spill] sm:$0xff] }
 0x23e   :  { %602 = vmatprep.subr.bf16.mxu0 %v4430_v33  ;;  %643 = vmatprep.subr.bf16.mxu1 %v4431_v48  ;;  %v4440_v33 = vld [vmem:[#allocation80_spill] sm:$0xff]  ;;  %v4441_v48 = vld [vmem:[#allocation81_spill] sm:$0xff] }
 0x241   :  { %603 = vmatpush1.bf16.msra.mxu0 %v4432_v50  ;;  %644 = vmatpush1.bf16.msra.mxu1 %v4433_v24 }
 0x242   :  { %604 = vmatprep.subr.bf16.mxu0 %v4434_v29  ;;  %645 = vmatprep.subr.bf16.mxu1 %v4435_v52 }
 0x245   :  { %605 = vmatpush1.bf16.msra.mxu0 %v4436_v49  ;;  %646 = vmatpush1.bf16.msra.mxu1 %v4437_v41 }
 0x246   :  { %606 = vmatprep.subr.bf16.mxu0 %v4438_v43  ;;  %647 = vmatprep.subr.bf16.mxu1 %v4439_v47 }
 0x249   :  { %607 = vmatpush1.bf16.msra.mxu0 %v2917_v18  ;;  %648 = vmatpush1.bf16.msra.mxu1 %v4440_v33 }
 0x24a   :  { %608 = vmatprep.subr.bf16.mxu0 %v4441_v48  ;;  %649 = vmatprep.subr.bf16.mxu1 %v2923_v20 }
 0x24d   :  { %609 = vmatpush1.bf16.msra.mxu0 %v2929_v14  ;;  %650 = vmatpush1.bf16.msra.mxu1 %v2931_v12 }
 0x24e   :  { %610 = vmatprep.subr.bf16.mxu0 %v2933_v17  ;;  %651 = vmatprep.subr.bf16.mxu1 %v2935_v13 }
 0x251   :  { %611 = vmatpush1.bf16.msra.mxu0 %v2941_v19  ;;  %652 = vmatpush1.bf16.msra.mxu1 %v2943_v51 }
 0x252   :  { %728 = vmatprep.subr.bf16.mxu0 %v2639_v53  ;;  %769 = vmatprep.subr.bf16.mxu1 %v2641_v54  ;;  %v4442_v53 = vld [vmem:[#allocation25_spill] sm:$0xff]  ;;  %v4443_v54 = vld [vmem:[#allocation26_spill] sm:$0xff] }
 0x254   :  { %629 = vmatmul.mubr.bf16.vlgmr.msra.gmra.mrb[12].mxu0 %v497_v38  ;;  %670 = vmatmul.mubr.bf16.vlgmr.msra.gmra.mrb[12].mxu1 %v497_v38  ;;  %v4473_v38 = vld [vmem:[#allocation56_spill] sm:$0xff] }
 0x255   :  { %729 = vmatpush1.bf16.msra.mxu0 %v2643_v55  ;;  %770 = vmatpush1.bf16.msra.mxu1 %v2647_v56  ;;  %v4444_v55 = vld [vmem:[#allocation27_spill] sm:$0xff]  ;;  %v4445_v56 = vld [vmem:[#allocation28_spill] sm:$0xff] }
 0x256   :  { %730 = vmatprep.subr.bf16.mxu0 %v2649_v57  ;;  %771 = vmatprep.subr.bf16.mxu1 %v2651_v58  ;;  %v4446_v57 = vld [vmem:[#allocation29_spill] sm:$0xff]  ;;  %v4447_v58 = vld [vmem:[#allocation30_spill] sm:$0xff] }
 0x259   :  { %731 = vmatpush1.bf16.msra.mxu0 %v2657_v59  ;;  %772 = vmatpush1.bf16.msra.mxu1 %v2659_v60  ;;  %v4448_v59 = vld [vmem:[#allocation31_spill] sm:$0xff]  ;;  %v4449_v60 = vld [vmem:[#allocation32_spill] sm:$0xff] }
 0x25a   :  { %732 = vmatprep.subr.bf16.mxu0 %v2661_v61  ;;  %773 = vmatprep.subr.bf16.mxu1 %v2663_v62  ;;  %v4450_v61 = vld [vmem:[#allocation33_spill] sm:$0xff]  ;;  %v4451_v62 = vld [vmem:[#allocation34_spill] sm:$0xff] }
 0x25d   :  { %733 = vmatpush1.bf16.msra.mxu0 %v2669_v63  ;;  %774 = vmatpush1.bf16.msra.mxu1 %v2671_v1  ;;  %v4452_v63 = vld [vmem:[#allocation35_spill] sm:$0xff]  ;;  %v4453_v1 = vld [vmem:[#allocation36_spill] sm:$0xff] }
 0x25e   :  { %734 = vmatprep.subr.bf16.mxu0 %v2673_v2  ;;  %775 = vmatprep.subr.bf16.mxu1 %v2675_v5  ;;  %v4454_v2 = vld [vmem:[#allocation37_spill] sm:$0xff]  ;;  %v4455_v5 = vld [vmem:[#allocation38_spill] sm:$0xff] }
 0x261   :  { %735 = vmatpush1.bf16.msra.mxu0 %v2681_v6  ;;  %776 = vmatpush1.bf16.msra.mxu1 %v2683_v7  ;;  %v4456_v6 = vld [vmem:[#allocation39_spill] sm:$0xff]  ;;  %v4457_v7 = vld [vmem:[#allocation40_spill] sm:$0xff] }
 0x262   :  { %736 = vmatprep.subr.bf16.mxu0 %v2685_v8  ;;  %777 = vmatprep.subr.bf16.mxu1 %v2687_v9  ;;  %v4458_v8 = vld [vmem:[#allocation41_spill] sm:$0xff]  ;;  %v4459_v9 = vld [vmem:[#allocation42_spill] sm:$0xff] }
 0x265   :  { %737 = vmatpush1.bf16.msra.mxu0 %v2693_v10  ;;  %778 = vmatpush1.bf16.msra.mxu1 %v2695_v15  ;;  %v4460_v10 = vld [vmem:[#allocation43_spill] sm:$0xff]  ;;  %v4461_v15 = vld [vmem:[#allocation44_spill] sm:$0xff] }
 0x266   :  { %738 = vmatprep.subr.bf16.mxu0 %v2697_v16  ;;  %779 = vmatprep.subr.bf16.mxu1 %v2699_v21  ;;  %v4462_v16 = vld [vmem:[#allocation45_spill] sm:$0xff]  ;;  %v4463_v21 = vld [vmem:[#allocation46_spill] sm:$0xff] }
 0x269   :  { %739 = vmatpush1.bf16.msra.mxu0 %v2705_v22  ;;  %780 = vmatpush1.bf16.msra.mxu1 %v2707_v23  ;;  %v4464_v22 = vld [vmem:[#allocation47_spill] sm:$0xff]  ;;  %v4465_v23 = vld [vmem:[#allocation48_spill] sm:$0xff] }
 0x26a   :  { %740 = vmatprep.subr.bf16.mxu0 %v2709_v25  ;;  %781 = vmatprep.subr.bf16.mxu1 %v2711_v26  ;;  %v4466_v25 = vld [vmem:[#allocation49_spill] sm:$0xff]  ;;  %v4467_v26 = vld [vmem:[#allocation50_spill] sm:$0xff] }
 0x26d   :  { %741 = vmatpush1.bf16.msra.mxu0 %v2717_v27  ;;  %782 = vmatpush1.bf16.msra.mxu1 %v2719_v28  ;;  %v4468_v27 = vld [vmem:[#allocation51_spill] sm:$0xff]  ;;  %v4469_v28 = vld [vmem:[#allocation52_spill] sm:$0xff] }
 0x26e   :  { %742 = vmatprep.subr.bf16.mxu0 %v2721_v30  ;;  %783 = vmatprep.subr.bf16.mxu1 %v2723_v32  ;;  %v4470_v30 = vld [vmem:[#allocation53_spill] sm:$0xff]  ;;  %v4471_v32 = vld [vmem:[#allocation54_spill] sm:$0xff] }
 0x271   :  { %743 = vmatpush1.bf16.msra.mxu0 %v2729_v34  ;;  %784 = vmatpush1.bf16.msra.mxu1 %v4442_v53  ;;  %v4472_v34 = vld [vmem:[#allocation55_spill] sm:$0xff]  ;;  %v4474_v53 = vld [vmem:[#allocation57_spill] sm:$0xff] }
 0x272   :  { %744 = vmatprep.subr.bf16.mxu0 %v4443_v54  ;;  %785 = vmatprep.subr.bf16.mxu1 %v4444_v55  ;;  %v4475_v54 = vld [vmem:[#allocation58_spill] sm:$0xff]  ;;  %v4476_v55 = vld [vmem:[#allocation59_spill] sm:$0xff] }
 0x275   :  { %745 = vmatpush1.bf16.msra.mxu0 %v4445_v56  ;;  %786 = vmatpush1.bf16.msra.mxu1 %v4446_v57  ;;  %v2017_v56 = vld [vmem:[%s4056_s0 + $0x6] sm:$0x3]  ;;  %v2024_v57 = vld [vmem:[%s4056_s0 + $0x8] sm:$0x3] }
 0x276   :  { %746 = vmatprep.subr.bf16.mxu0 %v4447_v58  ;;  %787 = vmatprep.subr.bf16.mxu1 %v4448_v59  ;;  %v2038_v58 = vld [vmem:[%s4056_s0 + $0xc] sm:$0x3] }
 0x277   :  { %814 = vperm.xlu1 %2086, %v2017_v56   ;;  %v4482_v56 = vld [vmem:[#allocation17_spill] sm:$0xff] }
 0x279   :  { %747 = vmatpush1.bf16.msra.mxu0 %v4449_v60  ;;  %788 = vmatpush1.bf16.msra.mxu1 %v4450_v61  ;;  %v4477_v61 = vld [vmem:[#allocation12_spill] sm:$0xff] }
 0x27a   :  { %748 = vmatprep.subr.bf16.mxu0 %v4451_v62  ;;  %789 = vmatprep.subr.bf16.mxu1 %v4452_v63 }
 0x27b   :  { %1043 = vperm.xlu1 %2086, %v2024_v57  }
 0x27d   :  { %749 = vmatpush1.bf16.msra.mxu0 %v4453_v1  ;;  %790 = vmatpush1.bf16.msra.mxu1 %v4454_v2  ;;  %v4478_v2 = vld [vmem:[#allocation13_spill] sm:$0xff] }
 0x27e   :  { %750 = vmatprep.subr.bf16.mxu0 %v4455_v5  ;;  %791 = vmatprep.subr.bf16.mxu1 %v4456_v6 }
 0x27f   :  { %1501 = vperm.xlu1 %2086, %v2038_v58  }
 0x281   :  { %751 = vmatpush1.bf16.msra.mxu0 %v4457_v7  ;;  %792 = vmatpush1.bf16.msra.mxu1 %v4458_v8 }
 0x282   :  { %752 = vmatprep.subr.bf16.mxu0 %v4459_v9  ;;  %793 = vmatprep.subr.bf16.mxu1 %v4460_v10 }
 0x285   :  { %753 = vmatpush1.bf16.msra.mxu0 %v4461_v15  ;;  %794 = vmatpush1.bf16.msra.mxu1 %v4462_v16  ;;  %v4479_v16 = vld [vmem:[#allocation15_spill] sm:$0xff] }
 0x286   :  { %754 = vmatprep.subr.bf16.mxu0 %v4463_v21  ;;  %795 = vmatprep.subr.bf16.mxu1 %v4464_v22 }
 0x289   :  { %755 = vmatpush1.bf16.msra.mxu0 %v4465_v23  ;;  %796 = vmatpush1.bf16.msra.mxu1 %v4466_v25  ;;  %v4480_v23 = vld [vmem:[#allocation14_spill] sm:$0xff] }
 0x28a   :  { %756 = vmatprep.subr.bf16.mxu0 %v4467_v26  ;;  %797 = vmatprep.subr.bf16.mxu1 %v4468_v27 }
 0x28d   :  { %757 = vmatpush1.bf16.msra.mxu0 %v4469_v28  ;;  %798 = vmatpush1.bf16.msra.mxu1 %v4470_v30 }
 0x28e   :  { %758 = vmatprep.subr.bf16.mxu0 %v4471_v32  ;;  %799 = vmatprep.subr.bf16.mxu1 %v4472_v34  ;;  %v586_v34 = vpop.permute.xlu0 %585 }
 0x28f   :  { %v589_v57 = vmul.f32 %v586_v34, %v4482_v56 }
 0x291   :  { %759 = vmatpush1.bf16.msra.mxu0 %v4473_v38  ;;  %800 = vmatpush1.bf16.msra.mxu1 %v4474_v53  ;;  %v4481_v53 = vld [vmem:[#allocation16_spill] sm:$0xff] }
 0x292   :  { %825 = vmatprep.subr.bf16.mxu0 %v4475_v54  ;;  %866 = vmatprep.subr.bf16.mxu1 %v4476_v55  ;;  %v588_v54 = vmul.f32 %v586_v34, %v4481_v53 }
 0x307   :  { %v533_v59 = vpop.f32.mrb[8].mxu0  ;;  %v574_v60 = vpop.f32.mrb[8].mxu1 }
 0x308   :  { %v534_v62 = vadd.f32 %v533_v59, %v4477_v61  ;;  %v535_v63 = vpop.f32.mrb[9].mxu0  ;;  %v576_v1 = vpop.f32.mrb[9].mxu1  ;;  %v575_v25 = vadd.f32 %v574_v60, %v4480_v23  ;;  %v4483_v60 = vld [vmem:[#allocation82_spill] sm:$0xff] }
 0x309   :  { %v536_v5 = vadd.f32 %v535_v63, %v4478_v2  ;;  %v537_v6 = vpop.f32.mrb[10].mxu0  ;;  %v578_v7 = vpop.f32.mrb[10].mxu1  ;;  %v577_v21 = vadd.f32 %v576_v1, %v4479_v16  ;;  %v4484_v1 = vld [vmem:[#allocation18_spill] sm:$0xff] }
 0x30a   :  { %v2014_v8 = vmul.f32 -1.442695, %v534_v62  ;;  %v538_v9 = vpop.f32.mrb[11].mxu0  ;;  %v579_v10 = vpop.f32.mrb[11].mxu1 }
 0x30b   :  { %v2015_v15 = vmul.f32 -1.442695, %v536_v5  ;;  %v2016_v22 = vmul.f32 -1.442695, %v577_v21  ;;  %v592_v5 = vadd.f32 %v588_v54, %v4484_v1 }
 0x30c   :  { %2119 = vpow2.f32 %v2014_v8  ;;  %v4485_v8 = vld [vmem:[#allocation19_spill] sm:$0xff] }
 0x30d   :  { %2121 = vpow2.f32 %v2015_v15  ;;  %v593_v9 = vadd.f32 %v589_v57, %v4485_v8 }
 0x30e   :  { %2123 = vpow2.f32 %v2016_v22 }
 0x30f   :  { %2125 = vtanh.f32 %v575_v25 }
 0x316   :  { %v2120_v26 = vpop.eup %2119 }
 0x317   :  { %v2122_v27 = vpop.eup %2121  ;;  %v705_v28 = vadd.f32 1.0, %v2120_v26  ;;  %v4486_v26 = vld [vmem:[#allocation20_spill] sm:$0xff] }
 0x318   :  { %v711_v30 = vadd.f32 1.0, %v2122_v27  ;;  %v2124_v32 = vpop.eup %2123  ;;  %v591_v27 = vmul.f32 %v586_v34, %v4486_v26 }
 0x319   :  { %2127 = vrcp.f32 %v705_v28  ;;  %v2126_v38 = vpop.eup %2125  ;;  %v718_v62 = vadd.f32 1.0, %v2124_v32 }
 0x31a   :  { %2129 = vrcp.f32 %v711_v30  ;;  %v595_v57 = vadd.f32 %v591_v27, %v4416_v31 }
 0x31b   :  { %2131 = vrcp.f32 %v718_v62 }
 0x323   :  { %v2128_v55 = vpop.eup %2127 }
 0x324   :  { %v2130_v58 = vpop.eup %2129  ;;  %v722_v59 = vmul.f32 %v2128_v55, %v2126_v38 }
 0x325   :  { %v721_v63 = vmul.f32 %v2130_v58, %v4483_v60  ;;  %v590_v58 = vmul.f32 %v586_v34, %v4417_v3  ;;  %v2132_v62 = vpop.eup %2131 }
 0x327   :  { %v630_v6 = vpop.f32.mrb[12].mxu0  ;;  %v671_v7 = vpop.f32.mrb[12].mxu1  ;;  %v3150_v10 = vadd.f32 %v722_v59, %v721_v63  ;;  %v594_v60 = vadd.f32 %v590_v58, %v4418_v42 }
 0x328   :  { %v631_v15 = vadd.f32 %v630_v6, %v592_v5  ;;  %v632_v21 = vpop.f32.mrb[13].mxu0  ;;  %v673_v22 = vpop.f32.mrb[13].mxu1 }
 0x329   :  { %v633_v25 = vadd.f32 %v632_v21, %v593_v9  ;;  %v634_v28 = vpop.f32.mrb[14].mxu0  ;;  %v675_v30 = vpop.f32.mrb[14].mxu1  ;;  %2133 = vtanh.f32 %v3150_v10  ;;  %v674_v59 = vadd.f32 %v673_v22, %v595_v57  ;;  %v672_v6 = vadd.f32 %v671_v7, %v594_v60  ;;  %v3268_v60 = vld [vmem:[#allocation2 + $0x1d8] sm:$0xff] }
 0x32a   :  { %v2011_v32 = vmul.f32 -1.442695, %v631_v15  ;;  %v635_v38 = vpop.f32.mrb[15].mxu0  ;;  %v676_v54 = vpop.f32.mrb[15].mxu1  ;;  %4501 = vst [vmem:[#allocation67_spill] sm:$0xff] %v3268_v60 }
 0x32b   :  { %v2012_v55 = vmul.f32 -1.442695, %v633_v25  ;;  %v2013_v5 = vmul.f32 -1.442695, %v674_v59 }
 0x32c   :  { %2135 = vpow2.f32 %v2011_v32 }
 0x32d   :  { %2137 = vpow2.f32 %v2012_v55 }
 0x32e   :  { %2139 = vpow2.f32 %v2013_v5  ;;  %v3274_v5 = vld [vmem:[#allocation2 + $0x1d0] sm:$0xff] }
 0x32f   :  { %2141 = vtanh.f32 %v672_v6  ;;  %4503 = vst [vmem:[#allocation72_spill] sm:$0xff] %v3274_v5  ;;  %v3277_v6 = vld [vmem:[#allocation2 + $0x1e8] sm:$0xff] }
 0x330   :  { %4504 = vst [vmem:[#allocation73_spill] sm:$0xff] %v3277_v6 }
 0x333   :  { %v2134_v63 = vpop.eup %2133 }
 0x334   :  { %v725_v9 = vmul.f32 %v2134_v63, %v2132_v62  ;;  %v3271_v63 = vld [vmem:[#allocation2 + $0x1c0] sm:$0xff] }
 0x335   :  { %4502 = vst [vmem:[#allocation69_spill] sm:$0xff] %v3271_v63 }
 0x336   :  { %v2136_v21 = vpop.eup %2135  ;;  %v727_v28 = vpack.c.bf16 %v725_v9, %v725_v9  ;;  %v3280_v9 = vld [vmem:[#allocation2 + $0x1f8] sm:$0xff] }
 0x337   :  { %v2138_v15 = vpop.eup %2137  ;;  %v681_v30 = vadd.f32 1.0, %v2136_v21  ;;  %4505 = vst [vmem:[#allocation74_spill] sm:$0xff] %v3280_v9  ;;  %v3283_v21 = vld [vmem:[#allocation2 + $0x1e0] sm:$0xff] }
 0x338   :  { %v687_v25 = vadd.f32 1.0, %v2138_v15  ;;  %760 = vmatprep.mubr.bf16.mxu0 %v727_v28  ;;  %801 = vmatprep.mubr.bf16.mxu1 %v727_v28  ;;  %v2140_v34 = vpop.eup %2139  ;;  %4506 = vst [vmem:[#allocation75_spill] sm:$0xff] %v3283_v21  ;;  %v3286_v28 = vld [vmem:[#allocation2 + $0x1f0] sm:$0xff]  ;;  %v3289_v15 = vld [vmem:[#allocation2 + $0x208] sm:$0xff] }
 0x339   :  { %2143 = vrcp.f32 %v681_v30  ;;  %v2142_v22 = vpop.eup %2141  ;;  %v694_v54 = vadd.f32 1.0, %v2140_v34  ;;  %4507 = vst [vmem:[#allocation76_spill] sm:$0xff] %v3286_v28  ;;  %4508 = vst [vmem:[#allocation77_spill] sm:$0xff] %v3289_v15  ;;  %v3292_v30 = vld [vmem:[#allocation2 + $0x218] sm:$0xff]  ;;  %v3298_v34 = vld [vmem:[#allocation2 + $0x210] sm:$0xff] }
 0x33a   :  { %2145 = vrcp.f32 %v687_v25  ;;  %4509 = vst [vmem:[#allocation78_spill] sm:$0xff] %v3292_v30  ;;  %v3295_v25 = vld [vmem:[#allocation2 + $0x200] sm:$0xff]  ;;  %4511 = vst [vmem:[#allocation80_spill] sm:$0xff] %v3298_v34 }
 0x33b   :  { %2147 = vrcp.f32 %v694_v54  ;;  %4510 = vst [vmem:[#allocation79_spill] sm:$0xff] %v3295_v25  ;;  %v3313_v54 = vld [vmem:[#allocation2 + $0x248] sm:$0xff] }
 0x33c   :  { %4516 = vst [vmem:[#allocation28_spill] sm:$0xff] %v3313_v54 }
 0x343   :  { %v2144_v27 = vpop.eup %2143 }
 0x344   :  { %v2146_v32 = vpop.eup %2145  ;;  %v698_v38 = vmul.f32 %v2144_v27, %v2142_v22  ;;  %v3301_v22 = vld [vmem:[#allocation2 + $0x228] sm:$0xff]  ;;  %v3304_v27 = vld [vmem:[#allocation2 + $0x238] sm:$0xff] }
 0x345   :  { %v697_v7 = vmul.f32 %v2146_v32, %v3031_v0  ;;  %v2148_v57 = vpop.eup %2147  ;;  %v4487_v0 = vld [vmem:[#allocation68_spill] sm:$0xff]  ;;  %4512 = vst [vmem:[#allocation81_spill] sm:$0xff] %v3301_v22  ;;  %4513 = vst [vmem:[#allocation25_spill] sm:$0xff] %v3304_v27  ;;  %v3307_v32 = vld [vmem:[#allocation2 + $0x220] sm:$0xff] }
 0x346   :  { %4514 = vst [vmem:[#allocation26_spill] sm:$0xff] %v3307_v32 }
 0x347   :  { %v3158_v55 = vadd.f32 %v698_v38, %v697_v7  ;;  %v3310_v38 = vld [vmem:[#allocation2 + $0x230] sm:$0xff]  ;;  %v3316_v7 = vld [vmem:[#allocation2 + $0x258] sm:$0xff] }
 0x348   :  { %4515 = vst [vmem:[#allocation27_spill] sm:$0xff] %v3310_v38  ;;  %4517 = vst [vmem:[#allocation29_spill] sm:$0xff] %v3316_v7 }
 0x349   :  { %2149 = vtanh.f32 %v3158_v55 }
 0x353   :  { %v2150_v58 = vpop.eup %2149 }
 0x354   :  { %v701_v59 = vmul.f32 %v2150_v58, %v2148_v57  ;;  %v3319_v57 = vld [vmem:[#allocation2 + $0x240] sm:$0xff]  ;;  %v3322_v58 = vld [vmem:[#allocation2 + $0x250] sm:$0xff] }
 0x355   :  { %4518 = vst [vmem:[#allocation30_spill] sm:$0xff] %v3319_v57  ;;  %4519 = vst [vmem:[#allocation31_spill] sm:$0xff] %v3322_v58 }
 0x356   :  { %v726_v62 = vpack.c.bf16 %v701_v59, %v701_v59  ;;  %v3325_v59 = vld [vmem:[#allocation2 + $0x268] sm:$0xff] }
 0x357   :  { %4520 = vst [vmem:[#allocation32_spill] sm:$0xff] %v3325_v59 }
 0x358   :  { %761 = vmatmul.mubr.bf16.vlgmr.msra.gmra.mrb[16].mxu0 %v726_v62  ;;  %802 = vmatmul.mubr.bf16.vlgmr.msra.gmra.mrb[16].mxu1 %v726_v62 }
 0x359   :  { %826 = vmatpush1.bf16.msra.mxu0 %v4420_v40  ;;  %867 = vmatpush1.bf16.msra.mxu1 %v4421_v37  ;;  %v4488_v40 = vld [vmem:[#allocation70_spill] sm:$0xff]  ;;  %v4489_v37 = vld [vmem:[#allocation71_spill] sm:$0xff] }
 0x35a   :  { %827 = vmatprep.subr.bf16.mxu0 %v4422_v35  ;;  %868 = vmatprep.subr.bf16.mxu1 %v4423_v39  ;;  %v3193_v35 = vld [vmem:[#allocation2 + $0x108] sm:$0xff]  ;;  %v3220_v39 = vld [vmem:[#allocation2 + $0x158] sm:$0xff] }
 0x35b   :  { %857 = vmatprep.mubr.bf16.mxu0 %v4379_v11  ;;  %898 = vmatprep.mubr.bf16.mxu1 %v4379_v11 }
 0x35d   :  { %828 = vmatpush1.bf16.msra.mxu0 %v4424_v4  ;;  %869 = vmatpush1.bf16.msra.mxu1 %v4425_v46  ;;  %v3223_v4 = vld [vmem:[#allocation2 + $0x140] sm:$0xff]  ;;  %v3226_v46 = vld [vmem:[#allocation2 + $0x150] sm:$0xff] }
 0x35e   :  { %829 = vmatprep.subr.bf16.mxu0 %v4426_v44  ;;  %870 = vmatprep.subr.bf16.mxu1 %v4427_v45  ;;  %v3229_v44 = vld [vmem:[#allocation2 + $0x168] sm:$0xff]  ;;  %v3232_v45 = vld [vmem:[#allocation2 + $0x178] sm:$0xff] }
 0x361   :  { %830 = vmatpush1.bf16.msra.mxu0 %v4487_v0  ;;  %871 = vmatpush1.bf16.msra.mxu1 %v4429_v36  ;;  %v3238_v36 = vld [vmem:[#allocation2 + $0x170] sm:$0xff]  ;;  %v3331_v0 = vld [vmem:[#allocation2 + $0x260] sm:$0xff] }
 0x362   :  { %831 = vmatprep.subr.bf16.mxu0 %v4488_v40  ;;  %872 = vmatprep.subr.bf16.mxu1 %v4489_v37  ;;  %4491 = vst [vmem:[#allocation22_spill] sm:$0xff] %v3238_v36  ;;  %4522 = vst [vmem:[#allocation34_spill] sm:$0xff] %v3331_v0  ;;  %v3334_v40 = vld [vmem:[#allocation2 + $0x270] sm:$0xff]  ;;  %v3337_v37 = vld [vmem:[#allocation2 + $0x288] sm:$0xff] }
 0x363   :  { %4523 = vst [vmem:[#allocation35_spill] sm:$0xff] %v3334_v40  ;;  %4524 = vst [vmem:[#allocation36_spill] sm:$0xff] %v3337_v37 }
 0x365   :  { %832 = vmatpush1.bf16.msra.mxu0 %v4432_v50  ;;  %873 = vmatpush1.bf16.msra.mxu1 %v4433_v24  ;;  %v3247_v50 = vld [vmem:[#allocation2 + $0x180] sm:$0xff]  ;;  %v3250_v24 = vld [vmem:[#allocation2 + $0x190] sm:$0xff] }
 0x366   :  { %833 = vmatprep.subr.bf16.mxu0 %v4434_v29  ;;  %874 = vmatprep.subr.bf16.mxu1 %v4435_v52  ;;  %4494 = vst [vmem:[#allocation60_spill] sm:$0xff] %v3247_v50  ;;  %4495 = vst [vmem:[#allocation61_spill] sm:$0xff] %v3250_v24  ;;  %v3253_v29 = vld [vmem:[#allocation2 + $0x1a8] sm:$0xff]  ;;  %v3256_v52 = vld [vmem:[#allocation2 + $0x1b8] sm:$0xff] }
 0x367   :  { %4496 = vst [vmem:[#allocation62_spill] sm:$0xff] %v3253_v29  ;;  %4497 = vst [vmem:[#allocation63_spill] sm:$0xff] %v3256_v52 }
 0x369   :  { %834 = vmatpush1.bf16.msra.mxu0 %v4436_v49  ;;  %875 = vmatpush1.bf16.msra.mxu1 %v4437_v41  ;;  %v3259_v49 = vld [vmem:[#allocation2 + $0x1a0] sm:$0xff]  ;;  %v3262_v41 = vld [vmem:[#allocation2 + $0x1b0] sm:$0xff] }
 0x36a   :  { %835 = vmatprep.subr.bf16.mxu0 %v4438_v43  ;;  %876 = vmatprep.subr.bf16.mxu1 %v4439_v47  ;;  %v3235_v47 = vld [vmem:[#allocation2 + $0x160] sm:$0xff]  ;;  %4498 = vst [vmem:[#allocation64_spill] sm:$0xff] %v3259_v49  ;;  %4499 = vst [vmem:[#allocation65_spill] sm:$0xff] %v3262_v41  ;;  %v3265_v43 = vld [vmem:[#allocation2 + $0x1c8] sm:$0xff] }
 0x36b   :  { %4490 = vst [vmem:[#allocation21_spill] sm:$0xff] %v3235_v47  ;;  %4500 = vst [vmem:[#allocation66_spill] sm:$0xff] %v3265_v43 }
 0x36d   :  { %836 = vmatpush1.bf16.msra.mxu0 %v2917_v18  ;;  %877 = vmatpush1.bf16.msra.mxu1 %v4440_v33  ;;  %v3196_v18 = vld [vmem:[#allocation2 + $0x118] sm:$0xff]  ;;  %v3241_v33 = vld [vmem:[#allocation2 + $0x188] sm:$0xff] }
 0x36e   :  { %837 = vmatprep.subr.bf16.mxu0 %v4441_v48  ;;  %878 = vmatprep.subr.bf16.mxu1 %v2923_v20  ;;  %v3214_v20 = vld [vmem:[#allocation2 + $0x130] sm:$0xff]  ;;  %4492 = vst [vmem:[#allocation23_spill] sm:$0xff] %v3241_v33  ;;  %v3244_v48 = vld [vmem:[#allocation2 + $0x198] sm:$0xff] }
 0x36f   :  { %4493 = vst [vmem:[#allocation24_spill] sm:$0xff] %v3244_v48 }
 0x371   :  { %838 = vmatpush1.bf16.msra.mxu0 %v2929_v14  ;;  %879 = vmatpush1.bf16.msra.mxu1 %v2931_v12  ;;  %v3199_v14 = vld [vmem:[#allocation2 + $0x100] sm:$0xff]  ;;  %v3202_v12 = vld [vmem:[#allocation2 + $0x110] sm:$0xff] }
 0x372   :  { %839 = vmatprep.subr.bf16.mxu0 %v2933_v17  ;;  %880 = vmatprep.subr.bf16.mxu1 %v2935_v13  ;;  %v3205_v13 = vld [vmem:[#allocation2 + $0x128] sm:$0xff]  ;;  %v3208_v17 = vld [vmem:[#allocation2 + $0x138] sm:$0xff] }
 0x375   :  { %840 = vmatpush1.bf16.msra.mxu0 %v2941_v19  ;;  %881 = vmatpush1.bf16.msra.mxu1 %v2943_v51  ;;  %v3211_v19 = vld [vmem:[#allocation2 + $0x120] sm:$0xff]  ;;  %v3217_v51 = vld [vmem:[#allocation2 + $0x148] sm:$0xff] }
 0x376   :  { %957 = vmatprep.subr.bf16.mxu0 %v3193_v35  ;;  %998 = vmatprep.subr.bf16.mxu1 %v3196_v18 }
 0x378   :  { %858 = vmatmul.mubr.bf16.vlgmr.msra.gmra.mrb[20].mxu0 %v726_v62  ;;  %899 = vmatmul.mubr.bf16.vlgmr.msra.gmra.mrb[20].mxu1 %v726_v62  ;;  %v3328_v62 = vld [vmem:[#allocation2 + $0x278] sm:$0xff] }
 0x379   :  { %958 = vmatpush1.bf16.msra.mxu0 %v3199_v14  ;;  %999 = vmatpush1.bf16.msra.mxu1 %v3202_v12  ;;  %4521 = vst [vmem:[#allocation33_spill] sm:$0xff] %v3328_v62 }
 0x37a   :  { %959 = vmatprep.subr.bf16.mxu0 %v3205_v13  ;;  %1000 = vmatprep.subr.bf16.mxu1 %v3208_v17 }
 0x37d   :  { %960 = vmatpush1.bf16.msra.mxu0 %v3211_v19  ;;  %1001 = vmatpush1.bf16.msra.mxu1 %v3214_v20 }
 0x37e   :  { %961 = vmatprep.subr.bf16.mxu0 %v3217_v51  ;;  %1002 = vmatprep.subr.bf16.mxu1 %v3220_v39 }
 0x381   :  { %962 = vmatpush1.bf16.msra.mxu0 %v3223_v4  ;;  %1003 = vmatpush1.bf16.msra.mxu1 %v3226_v46 }
 0x382   :  { %963 = vmatprep.subr.bf16.mxu0 %v3229_v44  ;;  %1004 = vmatprep.subr.bf16.mxu1 %v3232_v45 }
 0x385   :  { %964 = vmatpush1.bf16.msra.mxu0 %v3235_v47  ;;  %1005 = vmatpush1.bf16.msra.mxu1 %v3238_v36 }
 0x386   :  { %965 = vmatprep.subr.bf16.mxu0 %v3241_v33  ;;  %1006 = vmatprep.subr.bf16.mxu1 %v3244_v48 }
 0x389   :  { %966 = vmatpush1.bf16.msra.mxu0 %v3247_v50  ;;  %1007 = vmatpush1.bf16.msra.mxu1 %v3250_v24 }
 0x38a   :  { %967 = vmatprep.subr.bf16.mxu0 %v3253_v29  ;;  %1008 = vmatprep.subr.bf16.mxu1 %v3256_v52 }
 0x38d   :  { %968 = vmatpush1.bf16.msra.mxu0 %v3259_v49  ;;  %1009 = vmatpush1.bf16.msra.mxu1 %v3262_v41 }
 0x38e   :  { %969 = vmatprep.subr.bf16.mxu0 %v3265_v43  ;;  %1010 = vmatprep.subr.bf16.mxu1 %v3268_v60 }
 0x391   :  { %970 = vmatpush1.bf16.msra.mxu0 %v3271_v63  ;;  %1011 = vmatpush1.bf16.msra.mxu1 %v3274_v5 }
 0x392   :  { %971 = vmatprep.subr.bf16.mxu0 %v3277_v6  ;;  %1012 = vmatprep.subr.bf16.mxu1 %v3280_v9 }
 0x395   :  { %972 = vmatpush1.bf16.msra.mxu0 %v3283_v21  ;;  %1013 = vmatpush1.bf16.msra.mxu1 %v3286_v28 }
 0x396   :  { %973 = vmatprep.subr.bf16.mxu0 %v3289_v15  ;;  %1014 = vmatprep.subr.bf16.mxu1 %v3292_v30 }
 0x399   :  { %974 = vmatpush1.bf16.msra.mxu0 %v3295_v25  ;;  %1015 = vmatpush1.bf16.msra.mxu1 %v3298_v34 }
 0x39a   :  { %975 = vmatprep.subr.bf16.mxu0 %v3301_v22  ;;  %1016 = vmatprep.subr.bf16.mxu1 %v3304_v27 }
 0x39d   :  { %976 = vmatpush1.bf16.msra.mxu0 %v3307_v32  ;;  %1017 = vmatpush1.bf16.msra.mxu1 %v3310_v38 }
 0x39e   :  { %977 = vmatprep.subr.bf16.mxu0 %v3313_v54  ;;  %1018 = vmatprep.subr.bf16.mxu1 %v3316_v7 }
 0x3a1   :  { %978 = vmatpush1.bf16.msra.mxu0 %v3319_v57  ;;  %1019 = vmatpush1.bf16.msra.mxu1 %v3322_v58  ;;  %v3340_v58 = vld [vmem:[#allocation2 + $0x298] sm:$0xff] }
 0x3a2   :  { %979 = vmatprep.subr.bf16.mxu0 %v3325_v59  ;;  %1020 = vmatprep.subr.bf16.mxu1 %v3328_v62  ;;  %4525 = vst [vmem:[#allocation37_spill] sm:$0xff] %v3340_v58  ;;  %v3343_v59 = vld [vmem:[#allocation2 + $0x280] sm:$0xff]  ;;  %v3346_v62 = vld [vmem:[#allocation2 + $0x290] sm:$0xff] }
 0x3a3   :  { %4526 = vst [vmem:[#allocation38_spill] sm:$0xff] %v3343_v59  ;;  %4527 = vst [vmem:[#allocation39_spill] sm:$0xff] %v3346_v62 }
 0x3a5   :  { %980 = vmatpush1.bf16.msra.mxu0 %v3331_v0  ;;  %1021 = vmatpush1.bf16.msra.mxu1 %v3334_v40  ;;  %v3349_v0 = vld [vmem:[#allocation2 + $0x2a8] sm:$0xff]  ;;  %v3352_v40 = vld [vmem:[#allocation2 + $0x2b8] sm:$0xff] }
 0x3a6   :  { %981 = vmatprep.subr.bf16.mxu0 %v3337_v37  ;;  %1022 = vmatprep.subr.bf16.mxu1 %v3340_v58  ;;  %4528 = vst [vmem:[#allocation40_spill] sm:$0xff] %v3349_v0  ;;  %4529 = vst [vmem:[#allocation41_spill] sm:$0xff] %v3352_v40  ;;  %v3355_v37 = vld [vmem:[#allocation2 + $0x2a0] sm:$0xff]  ;;  %v3358_v58 = vld [vmem:[#allocation2 + $0x2b0] sm:$0xff] }
 0x3a7   :  { %4530 = vst [vmem:[#allocation42_spill] sm:$0xff] %v3355_v37  ;;  %4531 = vst [vmem:[#allocation43_spill] sm:$0xff] %v3358_v58 }
 0x3a9   :  { %982 = vmatpush1.bf16.msra.mxu0 %v3343_v59  ;;  %1023 = vmatpush1.bf16.msra.mxu1 %v3346_v62  ;;  %v3361_v59 = vld [vmem:[#allocation2 + $0x2c8] sm:$0xff]  ;;  %v3364_v62 = vld [vmem:[#allocation2 + $0x2d8] sm:$0xff] }
 0x3aa   :  { %983 = vmatprep.subr.bf16.mxu0 %v3349_v0  ;;  %1024 = vmatprep.subr.bf16.mxu1 %v3352_v40  ;;  %4532 = vst [vmem:[#allocation44_spill] sm:$0xff] %v3361_v59  ;;  %4533 = vst [vmem:[#allocation45_spill] sm:$0xff] %v3364_v62  ;;  %v3367_v0 = vld [vmem:[#allocation2 + $0x2c0] sm:$0xff]  ;;  %v3370_v40 = vld [vmem:[#allocation2 + $0x2d0] sm:$0xff] }
 0x3ab   :  { %4534 = vst [vmem:[#allocation46_spill] sm:$0xff] %v3367_v0  ;;  %4535 = vst [vmem:[#allocation47_spill] sm:$0xff] %v3370_v40 }
 0x3ad   :  { %984 = vmatpush1.bf16.msra.mxu0 %v3355_v37  ;;  %1025 = vmatpush1.bf16.msra.mxu1 %v3358_v58  ;;  %v3373_v37 = vld [vmem:[#allocation2 + $0x2e8] sm:$0xff]  ;;  %v3376_v58 = vld [vmem:[#allocation2 + $0x2f8] sm:$0xff] }
 0x3ae   :  { %985 = vmatprep.subr.bf16.mxu0 %v3361_v59  ;;  %1026 = vmatprep.subr.bf16.mxu1 %v3364_v62  ;;  %4536 = vst [vmem:[#allocation48_spill] sm:$0xff] %v3373_v37  ;;  %4537 = vst [vmem:[#allocation49_spill] sm:$0xff] %v3376_v58  ;;  %v3379_v59 = vld [vmem:[#allocation2 + $0x2e0] sm:$0xff]  ;;  %v3382_v62 = vld [vmem:[#allocation2 + $0x2f0] sm:$0xff] }
 0x3af   :  { %4538 = vst [vmem:[#allocation50_spill] sm:$0xff] %v3379_v59  ;;  %4539 = vst [vmem:[#allocation51_spill] sm:$0xff] %v3382_v62 }
 0x3b1   :  { %986 = vmatpush1.bf16.msra.mxu0 %v3367_v0  ;;  %1027 = vmatpush1.bf16.msra.mxu1 %v3370_v40  ;;  %v3385_v0 = vld [vmem:[#allocation2 + $0x8] sm:$0xff]  ;;  %v3388_v40 = vld [vmem:[#allocation2 + $0x18] sm:$0xff] }
 0x3b2   :  { %987 = vmatprep.subr.bf16.mxu0 %v3373_v37  ;;  %1028 = vmatprep.subr.bf16.mxu1 %v3376_v58  ;;  %4540 = vst [vmem:[#allocation52_spill] sm:$0xff] %v3385_v0  ;;  %4541 = vst [vmem:[#allocation53_spill] sm:$0xff] %v3388_v40 }
 0x3b5   :  { %988 = vmatpush1.bf16.msra.mxu0 %v3379_v59  ;;  %1029 = vmatpush1.bf16.msra.mxu1 %v3382_v62 }
 0x3b6   :  { %1054 = vmatprep.subr.bf16.mxu0 %v3385_v0  ;;  %1095 = vmatprep.subr.bf16.mxu1 %v3388_v40 }
 0x42b   :  { %v762_v37 = vpop.f32.mrb[16].mxu0  ;;  %v803_v57 = vpop.f32.mrb[16].mxu1 }
 0x42c   :  { %v763_v58 = vadd.f32 %v762_v37, %v4477_v61  ;;  %v764_v7 = vpop.f32.mrb[17].mxu0  ;;  %v805_v54 = vpop.f32.mrb[17].mxu1  ;;  %v804_v40 = vadd.f32 %v803_v57, %v4480_v23 }
 0x42d   :  { %v765_v59 = vadd.f32 %v764_v7, %v4478_v2  ;;  %v766_v38 = vpop.f32.mrb[18].mxu0  ;;  %v807_v32 = vpop.f32.mrb[18].mxu1  ;;  %v806_v0 = vadd.f32 %v805_v54, %v4479_v16 }
 0x42e   :  { %v2021_v27 = vmul.f32 -1.442695, %v763_v58  ;;  %v767_v62 = vpop.f32.mrb[19].mxu0  ;;  %v808_v22 = vpop.f32.mrb[19].mxu1 }
 0x42f   :  { %v2022_v34 = vmul.f32 -1.442695, %v765_v59  ;;  %v2023_v25 = vmul.f32 -1.442695, %v806_v0  ;;  %v815_v32 = vpop.permute.xlu1 %814 }
 0x430   :  { %2151 = vpow2.f32 %v2021_v27  ;;  %v817_v38 = vmul.f32 %v815_v32, %v4481_v53  ;;  %v818_v27 = vmul.f32 %v815_v32, %v4482_v56 }
 0x431   :  { %2153 = vpow2.f32 %v2022_v34 }
 0x432   :  { %2155 = vpow2.f32 %v2023_v25  ;;  %v821_v57 = vadd.f32 %v817_v38, %v4484_v1  ;;  %v822_v25 = vadd.f32 %v818_v27, %v4485_v8 }
 0x433   :  { %2157 = vtanh.f32 %v804_v40 }
 0x43a   :  { %v2152_v30 = vpop.eup %2151 }
 0x43b   :  { %v2154_v15 = vpop.eup %2153  ;;  %v934_v37 = vadd.f32 1.0, %v2152_v30 }
 0x43c   :  { %v940_v61 = vadd.f32 1.0, %v2154_v15  ;;  %v2156_v22 = vpop.eup %2155 }
 0x43d   :  { %2159 = vrcp.f32 %v934_v37  ;;  %v2158_v34 = vpop.eup %2157  ;;  %v947_v59 = vadd.f32 1.0, %v2156_v22 }
 0x43e   :  { %2161 = vrcp.f32 %v940_v61  ;;  %v820_v61 = vmul.f32 %v815_v32, %v4486_v26 }
 0x43f   :  { %2163 = vrcp.f32 %v947_v59 }
 0x440   :  { %v824_v27 = vadd.f32 %v820_v61, %v4416_v31 }
 0x447   :  { %v2160_v7 = vpop.eup %2159 }
 0x448   :  { %v2162_v54 = vpop.eup %2161  ;;  %v951_v58 = vmul.f32 %v2160_v7, %v2158_v34 }
 0x449   :  { %v950_v30 = vmul.f32 %v2162_v54, %v3150_v10  ;;  %v819_v54 = vmul.f32 %v815_v32, %v4417_v3 }
 0x44b   :  { %v859_v15 = vpop.f32.mrb[20].mxu0  ;;  %v900_v62 = vpop.f32.mrb[20].mxu1  ;;  %v3401_v0 = vadd.f32 %v951_v58, %v950_v30  ;;  %v823_v59 = vadd.f32 %v819_v54, %v4418_v42 }
 0x44c   :  { %v860_v40 = vadd.f32 %v859_v15, %v821_v57  ;;  %v861_v37 = vpop.f32.mrb[21].mxu0  ;;  %v902_v56 = vpop.f32.mrb[21].mxu1 }
 0x44d   :  { %v862_v53 = vadd.f32 %v861_v37, %v822_v25  ;;  %v863_v23 = vpop.f32.mrb[22].mxu0  ;;  %v904_v34 = vpop.f32.mrb[22].mxu1  ;;  %2165 = vtanh.f32 %v3401_v0  ;;  %v903_v58 = vadd.f32 %v902_v56, %v824_v27 }
 0x44e   :  { %v2018_v38 = vmul.f32 -1.442695, %v860_v40  ;;  %v864_v22 = vpop.f32.mrb[23].mxu0  ;;  %v905_v10 = vpop.f32.mrb[23].mxu1  ;;  %v901_v23 = vadd.f32 %v900_v62, %v823_v59 }
 0x44f   :  { %v2019_v7 = vmul.f32 -1.442695, %v862_v53  ;;  %v2164_v57 = vpop.eup %2163  ;;  %v2020_v25 = vmul.f32 -1.442695, %v903_v58 }
 0x450   :  { %2167 = vpow2.f32 %v2018_v38 }
 0x451   :  { %2169 = vpow2.f32 %v2019_v7 }
 0x452   :  { %2171 = vpow2.f32 %v2020_v25  ;;  %v3418_v25 = vld [vmem:[#allocation2 + $0x10] sm:$0xff] }
 0x453   :  { %2173 = vtanh.f32 %v901_v23  ;;  %v3424_v23 = vld [vmem:[#allocation2 + $0x38] sm:$0xff] }
 0x457   :  { %v2166_v30 = vpop.eup %2165 }
 0x458   :  { %v954_v15 = vmul.f32 %v2166_v30, %v2164_v57  ;;  %v3415_v30 = vld [vmem:[#allocation2] sm:$0xff] }
 0x45a   :  { %v2168_v37 = vpop.eup %2167  ;;  %v956_v34 = vpack.c.bf16 %v954_v15, %v954_v15  ;;  %v3429_v15 = vld [vmem:[#allocation2 + $0x20] sm:$0xff] }
 0x45b   :  { %v2170_v40 = vpop.eup %2169  ;;  %v910_v22 = vadd.f32 1.0, %v2168_v37  ;;  %v3432_v37 = vld [vmem:[#allocation2 + $0x30] sm:$0xff] }
 0x45c   :  { %v916_v53 = vadd.f32 1.0, %v2170_v40  ;;  %989 = vmatprep.mubr.bf16.mxu0 %v956_v34  ;;  %1030 = vmatprep.mubr.bf16.mxu1 %v956_v34  ;;  %v2172_v32 = vpop.eup %2171  ;;  %v3435_v34 = vld [vmem:[#allocation2 + $0x48] sm:$0xff]  ;;  %v3438_v40 = vld [vmem:[#allocation2 + $0x58] sm:$0xff] }
 0x45d   :  { %2175 = vrcp.f32 %v910_v22  ;;  %v2174_v56 = vpop.eup %2173  ;;  %v923_v7 = vadd.f32 1.0, %v2172_v32  ;;  %v3441_v22 = vld [vmem:[#allocation2 + $0x40] sm:$0xff]  ;;  %v3447_v32 = vld [vmem:[#allocation2 + $0x68] sm:$0xff] }
 0x45e   :  { %2177 = vrcp.f32 %v916_v53  ;;  %v3444_v53 = vld [vmem:[#allocation2 + $0x50] sm:$0xff] }
 0x45f   :  { %2179 = vrcp.f32 %v923_v7  ;;  %v3462_v7 = vld [vmem:[#allocation2 + $0x98] sm:$0xff] }
 0x460   :  { %4543 = vst [vmem:[#allocation55_spill] sm:$0xff] %v3462_v7 }
 0x467   :  { %v2176_v61 = vpop.eup %2175 }
 0x468   :  { %v2178_v38 = vpop.eup %2177  ;;  %v927_v10 = vmul.f32 %v2176_v61, %v2174_v56  ;;  %v3450_v56 = vld [vmem:[#allocation2 + $0x78] sm:$0xff]  ;;  %v3453_v61 = vld [vmem:[#allocation2 + $0x60] sm:$0xff] }
 0x469   :  { %v926_v62 = vmul.f32 %v2178_v38, %v3158_v55  ;;  %v2180_v54 = vpop.eup %2179  ;;  %v3421_v55 = vld [vmem:[#allocation2 + $0x28] sm:$0xff]  ;;  %v3456_v38 = vld [vmem:[#allocation2 + $0x70] sm:$0xff] }
 0x46b   :  { %v3408_v27 = vadd.f32 %v927_v10, %v926_v62  ;;  %v3459_v10 = vld [vmem:[#allocation2 + $0x88] sm:$0xff]  ;;  %v3465_v62 = vld [vmem:[#allocation2 + $0x80] sm:$0xff] }
 0x46c   :  { %4542 = vst [vmem:[#allocation54_spill] sm:$0xff] %v3459_v10  ;;  %4544 = vst [vmem:[#allocation56_spill] sm:$0xff] %v3465_v62 }
 0x46d   :  { %2181 = vtanh.f32 %v3408_v27 }
 0x477   :  { %v2182_v58 = vpop.eup %2181 }
 0x478   :  { %v930_v59 = vmul.f32 %v2182_v58, %v2180_v54  ;;  %v3468_v54 = vld [vmem:[#allocation2 + $0x90] sm:$0xff]  ;;  %v3471_v58 = vld [vmem:[#allocation2 + $0xa8] sm:$0xff] }
 0x479   :  { %4545 = vst [vmem:[#allocation57_spill] sm:$0xff] %v3468_v54  ;;  %4546 = vst [vmem:[#allocation58_spill] sm:$0xff] %v3471_v58 }
 0x47a   :  { %v3411_v57 = vpack.c.bf16 %v930_v59, %v930_v59  ;;  %v3474_v59 = vld [vmem:[#allocation2 + $0xb8] sm:$0xff] }
 0x47b   :  { %4547 = vst [vmem:[#allocation59_spill] sm:$0xff] %v3474_v59 }
 0x47c   :  { %990 = vmatmul.mubr.bf16.vlgmr.msra.gmra.mrb[24].mxu0 %v3411_v57  ;;  %1031 = vmatmul.mubr.bf16.vlgmr.msra.gmra.mrb[24].mxu1 %v3411_v57 }
 0x47d   :  { %1055 = vmatpush1.bf16.msra.mxu0 %v3415_v30  ;;  %1096 = vmatpush1.bf16.msra.mxu1 %v3418_v25 }
 0x47e   :  { %1056 = vmatprep.subr.bf16.mxu0 %v3421_v55  ;;  %1097 = vmatprep.subr.bf16.mxu1 %v3424_v23 }
 0x47f   :  { %1086 = vmatprep.mubr.bf16.mxu0 %v4379_v11  ;;  %1127 = vmatprep.mubr.bf16.mxu1 %v4379_v11 }
 0x481   :  { %1057 = vmatpush1.bf16.msra.mxu0 %v3429_v15  ;;  %1098 = vmatpush1.bf16.msra.mxu1 %v3432_v37 }
 0x482   :  { %1058 = vmatprep.subr.bf16.mxu0 %v3435_v34  ;;  %1099 = vmatprep.subr.bf16.mxu1 %v3438_v40 }
 0x485   :  { %1059 = vmatpush1.bf16.msra.mxu0 %v3441_v22  ;;  %1100 = vmatpush1.bf16.msra.mxu1 %v3444_v53 }
 0x486   :  { %1060 = vmatprep.subr.bf16.mxu0 %v3447_v32  ;;  %1101 = vmatprep.subr.bf16.mxu1 %v3450_v56 }
 0x489   :  { %1061 = vmatpush1.bf16.msra.mxu0 %v3453_v61  ;;  %1102 = vmatpush1.bf16.msra.mxu1 %v3456_v38 }
 0x48a   :  { %1062 = vmatprep.subr.bf16.mxu0 %v3459_v10  ;;  %1103 = vmatprep.subr.bf16.mxu1 %v3462_v7  ;;  %v3477_v10 = vld [vmem:[#allocation2 + $0xa0] sm:$0xff]  ;;  %v3480_v7 = vld [vmem:[#allocation2 + $0xb0] sm:$0xff] }
 0x48b   :  { %4548 = vst [vmem:[#allocation82_spill] sm:$0xff] %v3477_v10  ;;  %4549 = vst [vmem:[#allocation18_spill] sm:$0xff] %v3480_v7 }
 0x48d   :  { %1063 = vmatpush1.bf16.msra.mxu0 %v3465_v62  ;;  %1104 = vmatpush1.bf16.msra.mxu1 %v3468_v54  ;;  %v3483_v62 = vld [vmem:[#allocation2 + $0xc8] sm:$0xff]  ;;  %v3486_v54 = vld [vmem:[#allocation2 + $0xd8] sm:$0xff] }
 0x48e   :  { %1064 = vmatprep.subr.bf16.mxu0 %v3471_v58  ;;  %1105 = vmatprep.subr.bf16.mxu1 %v3474_v59  ;;  %4550 = vst [vmem:[#allocation19_spill] sm:$0xff] %v3483_v62  ;;  %4551 = vst [vmem:[#allocation20_spill] sm:$0xff] %v3486_v54  ;;  %v3489_v58 = vld [vmem:[#allocation2 + $0xc0] sm:$0xff]  ;;  %v3492_v59 = vld [vmem:[#allocation2 + $0xd0] sm:$0xff] }
 0x491   :  { %1065 = vmatpush1.bf16.msra.mxu0 %v3477_v10  ;;  %1106 = vmatpush1.bf16.msra.mxu1 %v3480_v7  ;;  %v3495_v10 = vld [vmem:[#allocation2 + $0xe8] sm:$0xff]  ;;  %v3498_v7 = vld [vmem:[#allocation2 + $0xf8] sm:$0xff] }
 0x492   :  { %1066 = vmatprep.subr.bf16.mxu0 %v3483_v62  ;;  %1107 = vmatprep.subr.bf16.mxu1 %v3486_v54  ;;  %v3501_v62 = vld [vmem:[#allocation2 + $0xe0] sm:$0xff]  ;;  %v3504_v54 = vld [vmem:[#allocation2 + $0xf0] sm:$0xff] }
 0x495   :  { %1067 = vmatpush1.bf16.msra.mxu0 %v3489_v58  ;;  %1108 = vmatpush1.bf16.msra.mxu1 %v3492_v59 }
 0x496   :  { %1068 = vmatprep.subr.bf16.mxu0 %v3495_v10  ;;  %1109 = vmatprep.subr.bf16.mxu1 %v3498_v7 }
 0x499   :  { %1069 = vmatpush1.bf16.msra.mxu0 %v3501_v62  ;;  %1110 = vmatpush1.bf16.msra.mxu1 %v3504_v54 }
 0x49a   :  { %1186 = vmatprep.subr.bf16.mxu0 %v3193_v35  ;;  %1227 = vmatprep.subr.bf16.mxu1 %v3196_v18 }
 0x49c   :  { %1087 = vmatmul.mubr.bf16.vlgmr.msra.gmra.mrb[28].mxu0 %v3411_v57  ;;  %1128 = vmatmul.mubr.bf16.vlgmr.msra.gmra.mrb[28].mxu1 %v3411_v57  ;;  %v4552_v57 = vld [vmem:[#allocation77_spill] sm:$0xff] }
 0x49d   :  { %1187 = vmatpush1.bf16.msra.mxu0 %v3199_v14  ;;  %1228 = vmatpush1.bf16.msra.mxu1 %v3202_v12 }
 0x49e   :  { %1188 = vmatprep.subr.bf16.mxu0 %v3205_v13  ;;  %1229 = vmatprep.subr.bf16.mxu1 %v3208_v17 }
 0x4a1   :  { %1189 = vmatpush1.bf16.msra.mxu0 %v3211_v19  ;;  %1230 = vmatpush1.bf16.msra.mxu1 %v3214_v20 }
 0x4a2   :  { %1190 = vmatprep.subr.bf16.mxu0 %v3217_v51  ;;  %1231 = vmatprep.subr.bf16.mxu1 %v3220_v39 }
 0x4a5   :  { %1191 = vmatpush1.bf16.msra.mxu0 %v3223_v4  ;;  %1232 = vmatpush1.bf16.msra.mxu1 %v3226_v46 }
 0x4a6   :  { %1192 = vmatprep.subr.bf16.mxu0 %v3229_v44  ;;  %1233 = vmatprep.subr.bf16.mxu1 %v3232_v45 }
 0x4a9   :  { %1193 = vmatpush1.bf16.msra.mxu0 %v3235_v47  ;;  %1234 = vmatpush1.bf16.msra.mxu1 %v3238_v36 }
 0x4aa   :  { %1194 = vmatprep.subr.bf16.mxu0 %v3241_v33  ;;  %1235 = vmatprep.subr.bf16.mxu1 %v3244_v48 }
 0x4ad   :  { %1195 = vmatpush1.bf16.msra.mxu0 %v3247_v50  ;;  %1236 = vmatpush1.bf16.msra.mxu1 %v3250_v24 }
 0x4ae   :  { %1196 = vmatprep.subr.bf16.mxu0 %v3253_v29  ;;  %1237 = vmatprep.subr.bf16.mxu1 %v3256_v52  ;;  %v4586_v52 = vld [vmem:[#allocation12_spill] sm:$0xff] }
 0x4b1   :  { %1197 = vmatpush1.bf16.msra.mxu0 %v3259_v49  ;;  %1238 = vmatpush1.bf16.msra.mxu1 %v3262_v41  ;;  %v4553_v49 = vld [vmem:[#allocation78_spill] sm:$0xff]  ;;  %v4554_v41 = vld [vmem:[#allocation79_spill] sm:$0xff] }
 0x4b2   :  { %1198 = vmatprep.subr.bf16.mxu0 %v3265_v43  ;;  %1239 = vmatprep.subr.bf16.mxu1 %v3268_v60  ;;  %v4555_v43 = vld [vmem:[#allocation80_spill] sm:$0xff]  ;;  %v4556_v60 = vld [vmem:[#allocation81_spill] sm:$0xff] }
 0x4b5   :  { %1199 = vmatpush1.bf16.msra.mxu0 %v3271_v63  ;;  %1240 = vmatpush1.bf16.msra.mxu1 %v3274_v5  ;;  %v4557_v63 = vld [vmem:[#allocation25_spill] sm:$0xff]  ;;  %v4558_v5 = vld [vmem:[#allocation26_spill] sm:$0xff] }
 0x4b6   :  { %1200 = vmatprep.subr.bf16.mxu0 %v3277_v6  ;;  %1241 = vmatprep.subr.bf16.mxu1 %v3280_v9  ;;  %v4559_v6 = vld [vmem:[#allocation27_spill] sm:$0xff]  ;;  %v4560_v9 = vld [vmem:[#allocation28_spill] sm:$0xff] }
 0x4b9   :  { %1201 = vmatpush1.bf16.msra.mxu0 %v3283_v21  ;;  %1242 = vmatpush1.bf16.msra.mxu1 %v3286_v28  ;;  %v4561_v21 = vld [vmem:[#allocation29_spill] sm:$0xff]  ;;  %v4562_v28 = vld [vmem:[#allocation30_spill] sm:$0xff] }
 0x4ba   :  { %1202 = vmatprep.subr.bf16.mxu0 %v4552_v57  ;;  %1243 = vmatprep.subr.bf16.mxu1 %v4553_v49  ;;  %v4563_v57 = vld [vmem:[#allocation31_spill] sm:$0xff]  ;;  %v4564_v49 = vld [vmem:[#allocation32_spill] sm:$0xff] }
 0x4bd   :  { %1203 = vmatpush1.bf16.msra.mxu0 %v4554_v41  ;;  %1244 = vmatpush1.bf16.msra.mxu1 %v4555_v43  ;;  %v4565_v41 = vld [vmem:[#allocation33_spill] sm:$0xff]  ;;  %v4566_v43 = vld [vmem:[#allocation34_spill] sm:$0xff] }
 0x4be   :  { %1204 = vmatprep.subr.bf16.mxu0 %v4556_v60  ;;  %1245 = vmatprep.subr.bf16.mxu1 %v4557_v63  ;;  %v4567_v60 = vld [vmem:[#allocation35_spill] sm:$0xff]  ;;  %v4568_v63 = vld [vmem:[#allocation36_spill] sm:$0xff] }
 0x4c1   :  { %1205 = vmatpush1.bf16.msra.mxu0 %v4558_v5  ;;  %1246 = vmatpush1.bf16.msra.mxu1 %v4559_v6  ;;  %v4569_v5 = vld [vmem:[#allocation37_spill] sm:$0xff]  ;;  %v4570_v6 = vld [vmem:[#allocation38_spill] sm:$0xff] }
 0x4c2   :  { %1206 = vmatprep.subr.bf16.mxu0 %v4560_v9  ;;  %1247 = vmatprep.subr.bf16.mxu1 %v4561_v21  ;;  %v4571_v9 = vld [vmem:[#allocation39_spill] sm:$0xff]  ;;  %v4572_v21 = vld [vmem:[#allocation40_spill] sm:$0xff] }
 0x4c5   :  { %1207 = vmatpush1.bf16.msra.mxu0 %v4562_v28  ;;  %1248 = vmatpush1.bf16.msra.mxu1 %v4563_v57  ;;  %v4573_v28 = vld [vmem:[#allocation41_spill] sm:$0xff]  ;;  %v4574_v57 = vld [vmem:[#allocation42_spill] sm:$0xff] }
 0x4c6   :  { %1208 = vmatprep.subr.bf16.mxu0 %v4564_v49  ;;  %1249 = vmatprep.subr.bf16.mxu1 %v4565_v41  ;;  %v4575_v49 = vld [vmem:[#allocation43_spill] sm:$0xff]  ;;  %v4576_v41 = vld [vmem:[#allocation44_spill] sm:$0xff] }
 0x4c9   :  { %1209 = vmatpush1.bf16.msra.mxu0 %v4566_v43  ;;  %1250 = vmatpush1.bf16.msra.mxu1 %v4567_v60  ;;  %v4577_v43 = vld [vmem:[#allocation45_spill] sm:$0xff]  ;;  %v4578_v60 = vld [vmem:[#allocation46_spill] sm:$0xff] }
 0x4ca   :  { %1210 = vmatprep.subr.bf16.mxu0 %v4568_v63  ;;  %1251 = vmatprep.subr.bf16.mxu1 %v4569_v5  ;;  %v4579_v63 = vld [vmem:[#allocation47_spill] sm:$0xff]  ;;  %v4580_v5 = vld [vmem:[#allocation48_spill] sm:$0xff] }
 0x4cd   :  { %1211 = vmatpush1.bf16.msra.mxu0 %v4570_v6  ;;  %1252 = vmatpush1.bf16.msra.mxu1 %v4571_v9  ;;  %v4581_v6 = vld [vmem:[#allocation49_spill] sm:$0xff]  ;;  %v4582_v9 = vld [vmem:[#allocation50_spill] sm:$0xff] }
 0x4ce   :  { %1212 = vmatprep.subr.bf16.mxu0 %v4572_v21  ;;  %1253 = vmatprep.subr.bf16.mxu1 %v4573_v28  ;;  %v4583_v21 = vld [vmem:[#allocation51_spill] sm:$0xff]  ;;  %v4584_v28 = vld [vmem:[#allocation52_spill] sm:$0xff] }
 0x4d1   :  { %1213 = vmatpush1.bf16.msra.mxu0 %v4574_v57  ;;  %1254 = vmatpush1.bf16.msra.mxu1 %v4575_v49  ;;  %v4585_v57 = vld [vmem:[#allocation53_spill] sm:$0xff] }
 0x4d2   :  { %1214 = vmatprep.subr.bf16.mxu0 %v4576_v41  ;;  %1255 = vmatprep.subr.bf16.mxu1 %v4577_v43 }
 0x4d5   :  { %1215 = vmatpush1.bf16.msra.mxu0 %v4578_v60  ;;  %1256 = vmatpush1.bf16.msra.mxu1 %v4579_v63 }
 0x4d6   :  { %1216 = vmatprep.subr.bf16.mxu0 %v4580_v5  ;;  %1257 = vmatprep.subr.bf16.mxu1 %v4581_v6 }
 0x4d9   :  { %1217 = vmatpush1.bf16.msra.mxu0 %v4582_v9  ;;  %1258 = vmatpush1.bf16.msra.mxu1 %v4583_v21 }
 0x4da   :  { %1283 = vmatprep.subr.bf16.mxu0 %v4584_v28  ;;  %1324 = vmatprep.subr.bf16.mxu1 %v4585_v57  ;;  %v4587_v57 = vld [vmem:[#allocation14_spill] sm:$0xff] }
 0x54f   :  { %v991_v49 = vpop.f32.mrb[24].mxu0  ;;  %v1032_v41 = vpop.f32.mrb[24].mxu1 }
 0x550   :  { %v992_v43 = vadd.f32 %v991_v49, %v4586_v52  ;;  %v993_v29 = vpop.f32.mrb[25].mxu0  ;;  %v1034_v60 = vpop.f32.mrb[25].mxu1  ;;  %v1033_v33 = vadd.f32 %v1032_v41, %v4587_v57 }
 0x551   :  { %v994_v63 = vadd.f32 %v993_v29, %v4478_v2  ;;  %v995_v24 = vpop.f32.mrb[26].mxu0  ;;  %v1036_v5 = vpop.f32.mrb[26].mxu1  ;;  %v1035_v28 = vadd.f32 %v1034_v60, %v4479_v16 }
 0x552   :  { %v2028_v50 = vmul.f32 -1.442695, %v992_v43  ;;  %v996_v6 = vpop.f32.mrb[27].mxu0  ;;  %v1037_v48 = vpop.f32.mrb[27].mxu1  ;;  %v4589_v5 = vld [vmem:[#allocation17_spill] sm:$0xff] }
 0x553   :  { %v2029_v9 = vmul.f32 -1.442695, %v994_v63  ;;  %v2030_v21 = vmul.f32 -1.442695, %v1035_v28  ;;  %v1044_v29 = vpop.permute.xlu1 %1043  ;;  %v4588_v48 = vld [vmem:[#allocation16_spill] sm:$0xff] }
 0x554   :  { %2183 = vpow2.f32 %v2028_v50  ;;  %v1046_v63 = vmul.f32 %v1044_v29, %v4588_v48  ;;  %v1047_v6 = vmul.f32 %v1044_v29, %v4589_v5  ;;  %v1049_v5 = vmul.f32 %v1044_v29, %v4486_v26 }
 0x555   :  { %2185 = vpow2.f32 %v2029_v9 }
 0x556   :  { %2187 = vpow2.f32 %v2030_v21 }
 0x557   :  { %2189 = vtanh.f32 %v1033_v33 }
 0x55e   :  { %v2184_v36 = vpop.eup %2183 }
 0x55f   :  { %v2186_v47 = vpop.eup %2185  ;;  %v1163_v49 = vadd.f32 1.0, %v2184_v36  ;;  %v1050_v36 = vadd.f32 %v1046_v63, %v4484_v1 }
 0x560   :  { %v1169_v52 = vadd.f32 1.0, %v2186_v47  ;;  %v2188_v24 = vpop.eup %2187  ;;  %v1051_v47 = vadd.f32 %v1047_v6, %v4485_v8  ;;  %v1053_v6 = vadd.f32 %v1049_v5, %v4416_v31 }
 0x561   :  { %2191 = vrcp.f32 %v1163_v49  ;;  %v2190_v43 = vpop.eup %2189  ;;  %v1176_v28 = vadd.f32 1.0, %v2188_v24 }
 0x562   :  { %2193 = vrcp.f32 %v1169_v52 }
 0x563   :  { %2195 = vrcp.f32 %v1176_v28 }
 0x56b   :  { %v2192_v50 = vpop.eup %2191 }
 0x56c   :  { %v2194_v60 = vpop.eup %2193  ;;  %v1180_v9 = vmul.f32 %v2192_v50, %v2190_v43 }
 0x56d   :  { %v1179_v41 = vmul.f32 %v2194_v60, %v3401_v0  ;;  %v1048_v60 = vmul.f32 %v1044_v29, %v4417_v3  ;;  %v2196_v28 = vpop.eup %2195 }
 0x56f   :  { %v1088_v21 = vpop.f32.mrb[28].mxu0  ;;  %v1129_v33 = vpop.f32.mrb[28].mxu1  ;;  %v3584_v52 = vadd.f32 %v1180_v9, %v1179_v41 }
 0x570   :  { %v1089_v49 = vadd.f32 %v1088_v21, %v1050_v36  ;;  %v1090_v57 = vpop.f32.mrb[29].mxu0  ;;  %v1131_v48 = vpop.f32.mrb[29].mxu1 }
 0x571   :  { %v1091_v16 = vadd.f32 %v1090_v57, %v1051_v47  ;;  %v1092_v2 = vpop.f32.mrb[30].mxu0  ;;  %v1133_v43 = vpop.f32.mrb[30].mxu1  ;;  %2197 = vtanh.f32 %v3584_v52  ;;  %v1132_v9 = vadd.f32 %v1131_v48, %v1053_v6  ;;  %v1052_v57 = vadd.f32 %v1048_v60, %v4418_v42 }
 0x572   :  { %v2025_v0 = vmul.f32 -1.442695, %v1089_v49  ;;  %v1093_v24 = vpop.f32.mrb[31].mxu0  ;;  %v1134_v63 = vpop.f32.mrb[31].mxu1 }
 0x573   :  { %v2026_v50 = vmul.f32 -1.442695, %v1091_v16  ;;  %v2027_v36 = vmul.f32 -1.442695, %v1132_v9  ;;  %v1130_v2 = vadd.f32 %v1129_v33, %v1052_v57 }
 0x574   :  { %2199 = vpow2.f32 %v2025_v0 }
 0x575   :  { %2201 = vpow2.f32 %v2026_v50 }
 0x576   :  { %2203 = vpow2.f32 %v2027_v36  ;;  %v4592_v36 = vld [vmem:[#allocation56_spill] sm:$0xff] }
 0x577   :  { %2205 = vtanh.f32 %v1130_v2  ;;  %v4593_v2 = vld [vmem:[#allocation57_spill] sm:$0xff] }
 0x57b   :  { %v2198_v41 = vpop.eup %2197 }
 0x57c   :  { %v1183_v21 = vmul.f32 %v2198_v41, %v2196_v28  ;;  %v4591_v41 = vld [vmem:[#allocation55_spill] sm:$0xff] }
 0x57e   :  { %v2200_v47 = vpop.eup %2199  ;;  %v1185_v43 = vpack.c.bf16 %v1183_v21, %v1183_v21  ;;  %v4594_v21 = vld [vmem:[#allocation58_spill] sm:$0xff] }
 0x57f   :  { %v2202_v49 = vpop.eup %2201  ;;  %v1139_v24 = vadd.f32 1.0, %v2200_v47  ;;  %v4595_v47 = vld [vmem:[#allocation59_spill] sm:$0xff] }
 0x580   :  { %v1145_v16 = vadd.f32 1.0, %v2202_v49  ;;  %1218 = vmatprep.mubr.bf16.mxu0 %v1185_v43  ;;  %1259 = vmatprep.mubr.bf16.mxu1 %v1185_v43  ;;  %v2204_v29 = vpop.eup %2203  ;;  %v4596_v43 = vld [vmem:[#allocation82_spill] sm:$0xff] }
 0x581   :  { %2207 = vrcp.f32 %v1139_v24  ;;  %v2206_v48 = vpop.eup %2205  ;;  %v1152_v50 = vadd.f32 1.0, %v2204_v29  ;;  %v4597_v49 = vld [vmem:[#allocation18_spill] sm:$0xff]  ;;  %v4598_v24 = vld [vmem:[#allocation19_spill] sm:$0xff]  ;;  %v4614_v29 = vld [vmem:[#allocation73_spill] sm:$0xff] }
 0x582   :  { %2209 = vrcp.f32 %v1145_v16  ;;  %v4599_v16 = vld [vmem:[#allocation20_spill] sm:$0xff] }
 0x583   :  { %2211 = vrcp.f32 %v1152_v50  ;;  %v4619_v50 = vld [vmem:[#allocation78_spill] sm:$0xff] }
 0x58b   :  { %v2208_v5 = vpop.eup %2207 }
 0x58c   :  { %v2210_v0 = vpop.eup %2209  ;;  %v1156_v63 = vmul.f32 %v2208_v5, %v2206_v48  ;;  %v4615_v48 = vld [vmem:[#allocation74_spill] sm:$0xff]  ;;  %v4616_v5 = vld [vmem:[#allocation75_spill] sm:$0xff] }
 0x58d   :  { %v1155_v33 = vmul.f32 %v2210_v0, %v3408_v27  ;;  %v2212_v60 = vpop.eup %2211  ;;  %v4590_v27 = vld [vmem:[#allocation54_spill] sm:$0xff]  ;;  %v4617_v0 = vld [vmem:[#allocation76_spill] sm:$0xff] }
 0x58f   :  { %v3592_v6 = vadd.f32 %v1156_v63, %v1155_v33  ;;  %v4618_v63 = vld [vmem:[#allocation77_spill] sm:$0xff]  ;;  %v4620_v33 = vld [vmem:[#allocation79_spill] sm:$0xff] }
 0x591   :  { %2213 = vtanh.f32 %v3592_v6 }
 0x59b   :  { %v2214_v9 = vpop.eup %2213 }
 0x59c   :  { %v1159_v28 = vmul.f32 %v2214_v9, %v2212_v60  ;;  %v4621_v60 = vld [vmem:[#allocation80_spill] sm:$0xff]  ;;  %v4622_v9 = vld [vmem:[#allocation81_spill] sm:$0xff] }
 0x59e   :  { %v1184_v57 = vpack.c.bf16 %v1159_v28, %v1159_v28  ;;  %v4623_v28 = vld [vmem:[#allocation25_spill] sm:$0xff] }
 0x5a0   :  { %1219 = vmatmul.mubr.bf16.vlgmr.msra.gmra.mrb[32].mxu0 %v1184_v57  ;;  %1260 = vmatmul.mubr.bf16.vlgmr.msra.gmra.mrb[32].mxu1 %v1184_v57 }
 0x5a1   :  { %1284 = vmatpush1.bf16.msra.mxu0 %v3415_v30  ;;  %1325 = vmatpush1.bf16.msra.mxu1 %v3418_v25 }
 0x5a2   :  { %1285 = vmatprep.subr.bf16.mxu0 %v3421_v55  ;;  %1326 = vmatprep.subr.bf16.mxu1 %v3424_v23 }
 0x5a3   :  { %1315 = vmatprep.mubr.bf16.mxu0 %v4379_v11  ;;  %1356 = vmatprep.mubr.bf16.mxu1 %v4379_v11 }
 0x5a5   :  { %1286 = vmatpush1.bf16.msra.mxu0 %v3429_v15  ;;  %1327 = vmatpush1.bf16.msra.mxu1 %v3432_v37 }
 0x5a6   :  { %1287 = vmatprep.subr.bf16.mxu0 %v3435_v34  ;;  %1328 = vmatprep.subr.bf16.mxu1 %v3438_v40 }
 0x5a9   :  { %1288 = vmatpush1.bf16.msra.mxu0 %v3441_v22  ;;  %1329 = vmatpush1.bf16.msra.mxu1 %v3444_v53 }
 0x5aa   :  { %1289 = vmatprep.subr.bf16.mxu0 %v3447_v32  ;;  %1330 = vmatprep.subr.bf16.mxu1 %v3450_v56 }
 0x5ad   :  { %1290 = vmatpush1.bf16.msra.mxu0 %v3453_v61  ;;  %1331 = vmatpush1.bf16.msra.mxu1 %v3456_v38 }
 0x5ae   :  { %1291 = vmatprep.subr.bf16.mxu0 %v4590_v27  ;;  %1332 = vmatprep.subr.bf16.mxu1 %v4591_v41 }
 0x5b1   :  { %1292 = vmatpush1.bf16.msra.mxu0 %v4592_v36  ;;  %1333 = vmatpush1.bf16.msra.mxu1 %v4593_v2 }
 0x5b2   :  { %1293 = vmatprep.subr.bf16.mxu0 %v4594_v21  ;;  %1334 = vmatprep.subr.bf16.mxu1 %v4595_v47 }
 0x5b5   :  { %1294 = vmatpush1.bf16.msra.mxu0 %v4596_v43  ;;  %1335 = vmatpush1.bf16.msra.mxu1 %v4597_v49 }
 0x5b6   :  { %1295 = vmatprep.subr.bf16.mxu0 %v4598_v24  ;;  %1336 = vmatprep.subr.bf16.mxu1 %v4599_v16 }
 0x5b9   :  { %1296 = vmatpush1.bf16.msra.mxu0 %v3489_v58  ;;  %1337 = vmatpush1.bf16.msra.mxu1 %v3492_v59 }
 0x5ba   :  { %1297 = vmatprep.subr.bf16.mxu0 %v3495_v10  ;;  %1338 = vmatprep.subr.bf16.mxu1 %v3498_v7 }
 0x5bd   :  { %1298 = vmatpush1.bf16.msra.mxu0 %v3501_v62  ;;  %1339 = vmatpush1.bf16.msra.mxu1 %v3504_v54 }
 0x5be   :  { %1415 = vmatprep.subr.bf16.mxu0 %v3193_v35  ;;  %1456 = vmatprep.subr.bf16.mxu1 %v3196_v18  ;;  %v4600_v35 = vld [vmem:[#allocation21_spill] sm:$0xff]  ;;  %v4601_v18 = vld [vmem:[#allocation22_spill] sm:$0xff] }
 0x5c0   :  { %1316 = vmatmul.mubr.bf16.vlgmr.msra.gmra.mrb[36].mxu0 %v1184_v57  ;;  %1357 = vmatmul.mubr.bf16.vlgmr.msra.gmra.mrb[36].mxu1 %v1184_v57  ;;  %v4624_v57 = vld [vmem:[#allocation26_spill] sm:$0xff] }
 0x5c1   :  { %1416 = vmatpush1.bf16.msra.mxu0 %v3199_v14  ;;  %1457 = vmatpush1.bf16.msra.mxu1 %v3202_v12  ;;  %v4602_v14 = vld [vmem:[#allocation23_spill] sm:$0xff]  ;;  %v4603_v12 = vld [vmem:[#allocation24_spill] sm:$0xff] }
 0x5c2   :  { %1417 = vmatprep.subr.bf16.mxu0 %v3205_v13  ;;  %1458 = vmatprep.subr.bf16.mxu1 %v3208_v17  ;;  %v4604_v13 = vld [vmem:[#allocation60_spill] sm:$0xff]  ;;  %v4605_v17 = vld [vmem:[#allocation61_spill] sm:$0xff] }
 0x5c5   :  { %1418 = vmatpush1.bf16.msra.mxu0 %v3211_v19  ;;  %1459 = vmatpush1.bf16.msra.mxu1 %v3214_v20  ;;  %v4606_v19 = vld [vmem:[#allocation62_spill] sm:$0xff]  ;;  %v4607_v20 = vld [vmem:[#allocation63_spill] sm:$0xff] }
 0x5c6   :  { %1419 = vmatprep.subr.bf16.mxu0 %v3217_v51  ;;  %1460 = vmatprep.subr.bf16.mxu1 %v3220_v39  ;;  %v4608_v51 = vld [vmem:[#allocation64_spill] sm:$0xff]  ;;  %v4609_v39 = vld [vmem:[#allocation65_spill] sm:$0xff] }
 0x5c9   :  { %1420 = vmatpush1.bf16.msra.mxu0 %v3223_v4  ;;  %1461 = vmatpush1.bf16.msra.mxu1 %v3226_v46  ;;  %v4610_v4 = vld [vmem:[#allocation66_spill] sm:$0xff]  ;;  %v4611_v46 = vld [vmem:[#allocation67_spill] sm:$0xff] }
 0x5ca   :  { %1421 = vmatprep.subr.bf16.mxu0 %v3229_v44  ;;  %1462 = vmatprep.subr.bf16.mxu1 %v3232_v45  ;;  %v4612_v44 = vld [vmem:[#allocation69_spill] sm:$0xff]  ;;  %v4613_v45 = vld [vmem:[#allocation72_spill] sm:$0xff] }
 0x5cd   :  { %1422 = vmatpush1.bf16.msra.mxu0 %v4600_v35  ;;  %1463 = vmatpush1.bf16.msra.mxu1 %v4601_v18  ;;  %v4625_v35 = vld [vmem:[#allocation27_spill] sm:$0xff]  ;;  %v4626_v18 = vld [vmem:[#allocation28_spill] sm:$0xff] }
 0x5ce   :  { %1423 = vmatprep.subr.bf16.mxu0 %v4602_v14  ;;  %1464 = vmatprep.subr.bf16.mxu1 %v4603_v12  ;;  %v4627_v14 = vld [vmem:[#allocation29_spill] sm:$0xff]  ;;  %v4628_v12 = vld [vmem:[#allocation30_spill] sm:$0xff] }
 0x5d1   :  { %1424 = vmatpush1.bf16.msra.mxu0 %v4604_v13  ;;  %1465 = vmatpush1.bf16.msra.mxu1 %v4605_v17  ;;  %v4629_v13 = vld [vmem:[#allocation31_spill] sm:$0xff]  ;;  %v4630_v17 = vld [vmem:[#allocation32_spill] sm:$0xff] }
 0x5d2   :  { %1425 = vmatprep.subr.bf16.mxu0 %v4606_v19  ;;  %1466 = vmatprep.subr.bf16.mxu1 %v4607_v20  ;;  %v4631_v19 = vld [vmem:[#allocation33_spill] sm:$0xff]  ;;  %v4632_v20 = vld [vmem:[#allocation34_spill] sm:$0xff] }
 0x5d5   :  { %1426 = vmatpush1.bf16.msra.mxu0 %v4608_v51  ;;  %1467 = vmatpush1.bf16.msra.mxu1 %v4609_v39  ;;  %v4633_v51 = vld [vmem:[#allocation35_spill] sm:$0xff]  ;;  %v4634_v39 = vld [vmem:[#allocation36_spill] sm:$0xff] }
 0x5d6   :  { %1427 = vmatprep.subr.bf16.mxu0 %v4610_v4  ;;  %1468 = vmatprep.subr.bf16.mxu1 %v4611_v46  ;;  %v4635_v4 = vld [vmem:[#allocation37_spill] sm:$0xff]  ;;  %v4636_v46 = vld [vmem:[#allocation38_spill] sm:$0xff] }
 0x5d9   :  { %1428 = vmatpush1.bf16.msra.mxu0 %v4612_v44  ;;  %1469 = vmatpush1.bf16.msra.mxu1 %v4613_v45  ;;  %v4637_v44 = vld [vmem:[#allocation39_spill] sm:$0xff]  ;;  %v4638_v45 = vld [vmem:[#allocation40_spill] sm:$0xff] }
 0x5da   :  { %1429 = vmatprep.subr.bf16.mxu0 %v4614_v29  ;;  %1470 = vmatprep.subr.bf16.mxu1 %v4615_v48  ;;  %v4639_v29 = vld [vmem:[#allocation41_spill] sm:$0xff]  ;;  %v4640_v48 = vld [vmem:[#allocation42_spill] sm:$0xff] }
 0x5dd   :  { %1430 = vmatpush1.bf16.msra.mxu0 %v4616_v5  ;;  %1471 = vmatpush1.bf16.msra.mxu1 %v4617_v0  ;;  %v4641_v5 = vld [vmem:[#allocation43_spill] sm:$0xff]  ;;  %v4642_v0 = vld [vmem:[#allocation44_spill] sm:$0xff] }
 0x5de   :  { %1431 = vmatprep.subr.bf16.mxu0 %v4618_v63  ;;  %1472 = vmatprep.subr.bf16.mxu1 %v4619_v50  ;;  %v4643_v63 = vld [vmem:[#allocation45_spill] sm:$0xff]  ;;  %v4644_v50 = vld [vmem:[#allocation46_spill] sm:$0xff] }
 0x5e1   :  { %1432 = vmatpush1.bf16.msra.mxu0 %v4620_v33  ;;  %1473 = vmatpush1.bf16.msra.mxu1 %v4621_v60  ;;  %v4645_v33 = vld [vmem:[#allocation47_spill] sm:$0xff]  ;;  %v4646_v60 = vld [vmem:[#allocation48_spill] sm:$0xff] }
 0x5e2   :  { %1433 = vmatprep.subr.bf16.mxu0 %v4622_v9  ;;  %1474 = vmatprep.subr.bf16.mxu1 %v4623_v28  ;;  %v4647_v9 = vld [vmem:[#allocation49_spill] sm:$0xff]  ;;  %v4648_v28 = vld [vmem:[#allocation50_spill] sm:$0xff] }
 0x5e5   :  { %1434 = vmatpush1.bf16.msra.mxu0 %v4624_v57  ;;  %1475 = vmatpush1.bf16.msra.mxu1 %v4625_v35  ;;  %v4649_v57 = vld [vmem:[#allocation51_spill] sm:$0xff]  ;;  %v4650_v35 = vld [vmem:[#allocation52_spill] sm:$0xff] }
 0x5e6   :  { %1435 = vmatprep.subr.bf16.mxu0 %v4626_v18  ;;  %1476 = vmatprep.subr.bf16.mxu1 %v4627_v14  ;;  %v4651_v18 = vld [vmem:[#allocation53_spill] sm:$0xff] }
 0x5e9   :  { %1436 = vmatpush1.bf16.msra.mxu0 %v4628_v12  ;;  %1477 = vmatpush1.bf16.msra.mxu1 %v4629_v13  ;;  %v4652_v13 = vld [vmem:[#allocation12_spill] sm:$0xff] }
 0x5ea   :  { %1437 = vmatprep.subr.bf16.mxu0 %v4630_v17  ;;  %1478 = vmatprep.subr.bf16.mxu1 %v4631_v19 }
 0x5ed   :  { %1438 = vmatpush1.bf16.msra.mxu0 %v4632_v20  ;;  %1479 = vmatpush1.bf16.msra.mxu1 %v4633_v51  ;;  %v4653_v51 = vld [vmem:[#allocation13_spill] sm:$0xff] }
 0x5ee   :  { %1439 = vmatprep.subr.bf16.mxu0 %v4634_v39  ;;  %1480 = vmatprep.subr.bf16.mxu1 %v4635_v4 }
 0x5f1   :  { %1440 = vmatpush1.bf16.msra.mxu0 %v4636_v46  ;;  %1481 = vmatpush1.bf16.msra.mxu1 %v4637_v44 }
 0x5f2   :  { %1441 = vmatprep.subr.bf16.mxu0 %v4638_v45  ;;  %1482 = vmatprep.subr.bf16.mxu1 %v4639_v29 }
 0x5f5   :  { %1442 = vmatpush1.bf16.msra.mxu0 %v4640_v48  ;;  %1483 = vmatpush1.bf16.msra.mxu1 %v4641_v5  ;;  %v4654_v5 = vld [vmem:[#allocation15_spill] sm:$0xff] }
 0x5f6   :  { %1443 = vmatprep.subr.bf16.mxu0 %v4642_v0  ;;  %1484 = vmatprep.subr.bf16.mxu1 %v4643_v63 }
 0x5f9   :  { %1444 = vmatpush1.bf16.msra.mxu0 %v4644_v50  ;;  %1485 = vmatpush1.bf16.msra.mxu1 %v4645_v33  ;;  %v4655_v50 = vld [vmem:[#allocation14_spill] sm:$0xff] }
 0x5fa   :  { %1445 = vmatprep.subr.bf16.mxu0 %v4646_v60  ;;  %1486 = vmatprep.subr.bf16.mxu1 %v4647_v9 }
 0x5fd   :  { %1446 = vmatpush1.bf16.msra.mxu0 %v4648_v28  ;;  %1487 = vmatpush1.bf16.msra.mxu1 %v4649_v57 }
 0x5fe   :  { %1512 = vmatprep.subr.bf16.mxu0 %v4650_v35  ;;  %1553 = vmatprep.subr.bf16.mxu1 %v4651_v18  ;;  %v1273_v18 = vpop.permute.xlu0 %1272 }
 0x673   :  { %v1220_v14 = vpop.f32.mrb[32].mxu0  ;;  %v1261_v12 = vpop.f32.mrb[32].mxu1 }
 0x674   :  { %v1221_v17 = vadd.f32 %v1220_v14, %v4652_v13  ;;  %v1222_v19 = vpop.f32.mrb[33].mxu0  ;;  %v1263_v20 = vpop.f32.mrb[33].mxu1  ;;  %v1262_v33 = vadd.f32 %v1261_v12, %v4655_v50 }
 0x675   :  { %v1223_v39 = vadd.f32 %v1222_v19, %v4653_v51  ;;  %v1224_v4 = vpop.f32.mrb[34].mxu0  ;;  %v1265_v46 = vpop.f32.mrb[34].mxu1  ;;  %v1264_v0 = vadd.f32 %v1263_v20, %v4654_v5 }
 0x676   :  { %v2035_v44 = vmul.f32 -1.442695, %v1221_v17  ;;  %v1225_v45 = vpop.f32.mrb[35].mxu0  ;;  %v1266_v29 = vpop.f32.mrb[35].mxu1  ;;  %v4656_v17 = vld [vmem:[#allocation16_spill] sm:$0xff]  ;;  %v4657_v4 = vld [vmem:[#allocation17_spill] sm:$0xff] }
 0x677   :  { %v2036_v48 = vmul.f32 -1.442695, %v1223_v39  ;;  %v2037_v63 = vmul.f32 -1.442695, %v1264_v0  ;;  %v1275_v19 = vmul.f32 %v1273_v18, %v4656_v17  ;;  %v1276_v46 = vmul.f32 %v1273_v18, %v4657_v4 }
 0x678   :  { %2215 = vpow2.f32 %v2035_v44  ;;  %v1278_v4 = vmul.f32 %v1273_v18, %v4486_v26 }
 0x679   :  { %2217 = vpow2.f32 %v2036_v48  ;;  %v1279_v29 = vadd.f32 %v1275_v19, %v4484_v1 }
 0x67a   :  { %2219 = vpow2.f32 %v2037_v63  ;;  %v1280_v63 = vadd.f32 %v1276_v46, %v4485_v8  ;;  %v1282_v46 = vadd.f32 %v1278_v4, %v4416_v31 }
 0x67b   :  { %2221 = vtanh.f32 %v1262_v33 }
 0x682   :  { %v2216_v60 = vpop.eup %2215 }
 0x683   :  { %v2218_v9 = vpop.eup %2217  ;;  %v1392_v28 = vadd.f32 1.0, %v2216_v60 }
 0x684   :  { %v1398_v57 = vadd.f32 1.0, %v2218_v9  ;;  %v2220_v35 = vpop.eup %2219 }
 0x685   :  { %2223 = vrcp.f32 %v1392_v28  ;;  %v2222_v14 = vpop.eup %2221  ;;  %v1405_v45 = vadd.f32 1.0, %v2220_v35 }
 0x686   :  { %2225 = vrcp.f32 %v1398_v57 }
 0x687   :  { %2227 = vrcp.f32 %v1405_v45 }
 0x68f   :  { %v2224_v39 = vpop.eup %2223 }
 0x690   :  { %v2226_v20 = vpop.eup %2225  ;;  %v1409_v44 = vmul.f32 %v2224_v39, %v2222_v14 }
 0x691   :  { %v1408_v12 = vmul.f32 %v2226_v20, %v3584_v52  ;;  %v1277_v20 = vmul.f32 %v1273_v18, %v4417_v3  ;;  %v2228_v45 = vpop.eup %2227 }
 0x693   :  { %v1317_v48 = vpop.f32.mrb[36].mxu0  ;;  %v1358_v0 = vpop.f32.mrb[36].mxu1  ;;  %v3702_v33 = vadd.f32 %v1409_v44, %v1408_v12  ;;  %v1281_v12 = vadd.f32 %v1277_v20, %v4418_v42 }
 0x694   :  { %v1318_v60 = vadd.f32 %v1317_v48, %v1279_v29  ;;  %v1319_v9 = vpop.f32.mrb[37].mxu0  ;;  %v1360_v28 = vpop.f32.mrb[37].mxu1 }
 0x695   :  { %v1320_v57 = vadd.f32 %v1319_v9, %v1280_v63  ;;  %v1321_v17 = vpop.f32.mrb[38].mxu0  ;;  %v1362_v14 = vpop.f32.mrb[38].mxu1  ;;  %2229 = vtanh.f32 %v3702_v33  ;;  %v1361_v44 = vadd.f32 %v1360_v28, %v1282_v46 }
 0x696   :  { %v2032_v52 = vmul.f32 -1.442695, %v1318_v60  ;;  %v1322_v35 = vpop.f32.mrb[39].mxu0  ;;  %v1363_v19 = vpop.f32.mrb[39].mxu1  ;;  %v1359_v17 = vadd.f32 %v1358_v0, %v1281_v12 }
 0x697   :  { %v2033_v39 = vmul.f32 -1.442695, %v1320_v57  ;;  %v2034_v48 = vmul.f32 -1.442695, %v1361_v44 }
 0x698   :  { %2231 = vpow2.f32 %v2032_v52 }
 0x699   :  { %2233 = vpow2.f32 %v2033_v39 }
 0x69a   :  { %2235 = vpow2.f32 %v2034_v48  ;;  %v3841_v48 = vld [vmem:[#allocation2 + $0x208] sm:$0xff] }
 0x69b   :  { %2237 = vtanh.f32 %v1359_v17  ;;  %v3844_v17 = vld [vmem:[#allocation2 + $0x218] sm:$0xff] }
 0x69f   :  { %v2230_v29 = vpop.eup %2229 }
 0x6a0   :  { %v1412_v63 = vmul.f32 %v2230_v29, %v2228_v45  ;;  %v3838_v29 = vld [vmem:[#allocation2 + $0x1f0] sm:$0xff] }
 0x6a2   :  { %v2232_v9 = vpop.eup %2231  ;;  %v1414_v14 = vpack.c.bf16 %v1412_v63, %v1412_v63  ;;  %v3847_v63 = vld [vmem:[#allocation2 + $0x200] sm:$0xff] }
 0x6a3   :  { %v2234_v60 = vpop.eup %2233  ;;  %v1368_v35 = vadd.f32 1.0, %v2232_v9  ;;  %4658 = vst [vmem:[#allocation68_spill] sm:$0xff] %v3847_v63  ;;  %v3850_v9 = vld [vmem:[#allocation2 + $0x210] sm:$0xff] }
 0x6a4   :  { %v1374_v57 = vadd.f32 1.0, %v2234_v60  ;;  %1447 = vmatprep.mubr.bf16.mxu0 %v1414_v14  ;;  %1488 = vmatprep.mubr.bf16.mxu1 %v1414_v14  ;;  %v2236_v18 = vpop.eup %2235  ;;  %4659 = vst [vmem:[#allocation70_spill] sm:$0xff] %v3850_v9  ;;  %v3853_v14 = vld [vmem:[#allocation2 + $0x228] sm:$0xff]  ;;  %v3856_v60 = vld [vmem:[#allocation2 + $0x238] sm:$0xff] }
 0x6a5   :  { %2239 = vrcp.f32 %v1368_v35  ;;  %v2238_v4 = vpop.eup %2237  ;;  %v1381_v39 = vadd.f32 1.0, %v2236_v18  ;;  %4660 = vst [vmem:[#allocation71_spill] sm:$0xff] %v3853_v14  ;;  %4661 = vst [vmem:[#allocation54_spill] sm:$0xff] %v3856_v60  ;;  %v3859_v35 = vld [vmem:[#allocation2 + $0x220] sm:$0xff]  ;;  %v3865_v18 = vld [vmem:[#allocation2 + $0x248] sm:$0xff] }
 0x6a6   :  { %2241 = vrcp.f32 %v1374_v57  ;;  %4662 = vst [vmem:[#allocation55_spill] sm:$0xff] %v3859_v35  ;;  %v3862_v57 = vld [vmem:[#allocation2 + $0x230] sm:$0xff]  ;;  %4664 = vst [vmem:[#allocation57_spill] sm:$0xff] %v3865_v18 }
 0x6a7   :  { %2243 = vrcp.f32 %v1381_v39  ;;  %4663 = vst [vmem:[#allocation56_spill] sm:$0xff] %v3862_v57  ;;  %v3880_v39 = vld [vmem:[#allocation2 + $0x278] sm:$0xff] }
 0x6a8   :  { %4669 = vst [vmem:[#allocation19_spill] sm:$0xff] %v3880_v39 }
 0x6af   :  { %v2240_v28 = vpop.eup %2239 }
 0x6b0   :  { %v2242_v52 = vpop.eup %2241  ;;  %v1385_v19 = vmul.f32 %v2240_v28, %v2238_v4  ;;  %v3868_v4 = vld [vmem:[#allocation2 + $0x258] sm:$0xff]  ;;  %v3871_v28 = vld [vmem:[#allocation2 + $0x240] sm:$0xff] }
 0x6b1   :  { %v1384_v0 = vmul.f32 %v2242_v52, %v3592_v6  ;;  %v2244_v20 = vpop.eup %2243  ;;  %v3805_v6 = vld [vmem:[#allocation2 + $0x1a8] sm:$0xff]  ;;  %4665 = vst [vmem:[#allocation58_spill] sm:$0xff] %v3868_v4  ;;  %4666 = vst [vmem:[#allocation59_spill] sm:$0xff] %v3871_v28  ;;  %v3874_v52 = vld [vmem:[#allocation2 + $0x250] sm:$0xff] }
 0x6b2   :  { %4667 = vst [vmem:[#allocation82_spill] sm:$0xff] %v3874_v52 }
 0x6b3   :  { %v3710_v46 = vadd.f32 %v1385_v19, %v1384_v0  ;;  %v3877_v19 = vld [vmem:[#allocation2 + $0x268] sm:$0xff]  ;;  %v3883_v0 = vld [vmem:[#allocation2 + $0x260] sm:$0xff] }
 0x6b4   :  { %4668 = vst [vmem:[#allocation18_spill] sm:$0xff] %v3877_v19  ;;  %4670 = vst [vmem:[#allocation20_spill] sm:$0xff] %v3883_v0 }
 0x6b5   :  { %2245 = vtanh.f32 %v3710_v46 }
 0x6bf   :  { %v2246_v44 = vpop.eup %2245 }
 0x6c0   :  { %v1388_v45 = vmul.f32 %v2246_v44, %v2244_v20  ;;  %v3886_v20 = vld [vmem:[#allocation2 + $0x270] sm:$0xff]  ;;  %v3889_v44 = vld [vmem:[#allocation2 + $0x288] sm:$0xff] }
 0x6c1   :  { %4671 = vst [vmem:[#allocation21_spill] sm:$0xff] %v3886_v20  ;;  %4672 = vst [vmem:[#allocation22_spill] sm:$0xff] %v3889_v44 }
 0x6c2   :  { %v1413_v12 = vpack.c.bf16 %v1388_v45, %v1388_v45  ;;  %v3892_v45 = vld [vmem:[#allocation2 + $0x298] sm:$0xff] }
 0x6c3   :  { %4673 = vst [vmem:[#allocation23_spill] sm:$0xff] %v3892_v45 }
 0x6c4   :  { %1448 = vmatmul.mubr.bf16.vlgmr.msra.gmra.mrb[40].mxu0 %v1413_v12  ;;  %1489 = vmatmul.mubr.bf16.vlgmr.msra.gmra.mrb[40].mxu1 %v1413_v12 }
 0x6c5   :  { %1513 = vmatpush1.bf16.msra.mxu0 %v3415_v30  ;;  %1554 = vmatpush1.bf16.msra.mxu1 %v3418_v25  ;;  %v3745_v30 = vld [vmem:[#allocation2 + $0x108] sm:$0xff]  ;;  %v3748_v25 = vld [vmem:[#allocation2 + $0x118] sm:$0xff] }
 0x6c6   :  { %1514 = vmatprep.subr.bf16.mxu0 %v3421_v55  ;;  %1555 = vmatprep.subr.bf16.mxu1 %v3424_v23  ;;  %v3751_v55 = vld [vmem:[#allocation2 + $0x100] sm:$0xff]  ;;  %v3754_v23 = vld [vmem:[#allocation2 + $0x110] sm:$0xff] }
 0x6c7   :  { %1544 = vmatprep.mubr.bf16.mxu0 %v4379_v11  ;;  %1585 = vmatprep.mubr.bf16.mxu1 %v4379_v11 }
 0x6c9   :  { %1515 = vmatpush1.bf16.msra.mxu0 %v3429_v15  ;;  %1556 = vmatpush1.bf16.msra.mxu1 %v3432_v37  ;;  %v3757_v15 = vld [vmem:[#allocation2 + $0x128] sm:$0xff]  ;;  %v3760_v37 = vld [vmem:[#allocation2 + $0x138] sm:$0xff] }
 0x6ca   :  { %1516 = vmatprep.subr.bf16.mxu0 %v3435_v34  ;;  %1557 = vmatprep.subr.bf16.mxu1 %v3438_v40  ;;  %v3763_v34 = vld [vmem:[#allocation2 + $0x120] sm:$0xff]  ;;  %v3766_v40 = vld [vmem:[#allocation2 + $0x130] sm:$0xff] }
 0x6cd   :  { %1517 = vmatpush1.bf16.msra.mxu0 %v3441_v22  ;;  %1558 = vmatpush1.bf16.msra.mxu1 %v3444_v53  ;;  %v3769_v22 = vld [vmem:[#allocation2 + $0x148] sm:$0xff]  ;;  %v3772_v53 = vld [vmem:[#allocation2 + $0x158] sm:$0xff] }
 0x6ce   :  { %1518 = vmatprep.subr.bf16.mxu0 %v3447_v32  ;;  %1559 = vmatprep.subr.bf16.mxu1 %v3450_v56  ;;  %v3775_v32 = vld [vmem:[#allocation2 + $0x140] sm:$0xff]  ;;  %v3778_v56 = vld [vmem:[#allocation2 + $0x150] sm:$0xff] }
 0x6d1   :  { %1519 = vmatpush1.bf16.msra.mxu0 %v3453_v61  ;;  %1560 = vmatpush1.bf16.msra.mxu1 %v3456_v38  ;;  %v3781_v61 = vld [vmem:[#allocation2 + $0x168] sm:$0xff]  ;;  %v3784_v38 = vld [vmem:[#allocation2 + $0x178] sm:$0xff] }
 0x6d2   :  { %1520 = vmatprep.subr.bf16.mxu0 %v4590_v27  ;;  %1561 = vmatprep.subr.bf16.mxu1 %v4591_v41  ;;  %v3808_v27 = vld [vmem:[#allocation2 + $0x1b8] sm:$0xff]  ;;  %v3811_v41 = vld [vmem:[#allocation2 + $0x1a0] sm:$0xff] }
 0x6d5   :  { %1521 = vmatpush1.bf16.msra.mxu0 %v4592_v36  ;;  %1562 = vmatpush1.bf16.msra.mxu1 %v4593_v2  ;;  %v3814_v36 = vld [vmem:[#allocation2 + $0x1b0] sm:$0xff]  ;;  %v3817_v2 = vld [vmem:[#allocation2 + $0x1c8] sm:$0xff] }
 0x6d6   :  { %1522 = vmatprep.subr.bf16.mxu0 %v4594_v21  ;;  %1563 = vmatprep.subr.bf16.mxu1 %v4595_v47  ;;  %v3820_v21 = vld [vmem:[#allocation2 + $0x1d8] sm:$0xff]  ;;  %v3823_v47 = vld [vmem:[#allocation2 + $0x1c0] sm:$0xff] }
 0x6d9   :  { %1523 = vmatpush1.bf16.msra.mxu0 %v4596_v43  ;;  %1564 = vmatpush1.bf16.msra.mxu1 %v4597_v49  ;;  %v3826_v43 = vld [vmem:[#allocation2 + $0x1d0] sm:$0xff]  ;;  %v3829_v49 = vld [vmem:[#allocation2 + $0x1e8] sm:$0xff] }
 0x6da   :  { %1524 = vmatprep.subr.bf16.mxu0 %v4598_v24  ;;  %1565 = vmatprep.subr.bf16.mxu1 %v4599_v16  ;;  %v3832_v24 = vld [vmem:[#allocation2 + $0x1f8] sm:$0xff]  ;;  %v3835_v16 = vld [vmem:[#allocation2 + $0x1e0] sm:$0xff] }
 0x6dd   :  { %1525 = vmatpush1.bf16.msra.mxu0 %v3489_v58  ;;  %1566 = vmatpush1.bf16.msra.mxu1 %v3492_v59  ;;  %v3799_v58 = vld [vmem:[#allocation2 + $0x180] sm:$0xff]  ;;  %v3802_v59 = vld [vmem:[#allocation2 + $0x190] sm:$0xff] }
 0x6de   :  { %1526 = vmatprep.subr.bf16.mxu0 %v3495_v10  ;;  %1567 = vmatprep.subr.bf16.mxu1 %v3498_v7  ;;  %v3787_v10 = vld [vmem:[#allocation2 + $0x160] sm:$0xff]  ;;  %v3790_v7 = vld [vmem:[#allocation2 + $0x170] sm:$0xff] }
 0x6e1   :  { %1527 = vmatpush1.bf16.msra.mxu0 %v3501_v62  ;;  %1568 = vmatpush1.bf16.msra.mxu1 %v3504_v54  ;;  %v3793_v62 = vld [vmem:[#allocation2 + $0x188] sm:$0xff]  ;;  %v3796_v54 = vld [vmem:[#allocation2 + $0x198] sm:$0xff] }
 0x6e2   :  { %1644 = vmatprep.subr.bf16.mxu0 %v3745_v30  ;;  %1685 = vmatprep.subr.bf16.mxu1 %v3748_v25 }
 0x6e4   :  { %1545 = vmatmul.mubr.bf16.vlgmr.msra.gmra.mrb[44].mxu0 %v1413_v12  ;;  %1586 = vmatmul.mubr.bf16.vlgmr.msra.gmra.mrb[44].mxu1 %v1413_v12  ;;  %v3895_v12 = vld [vmem:[#allocation2 + $0x280] sm:$0xff] }
 0x6e5   :  { %1645 = vmatpush1.bf16.msra.mxu0 %v3751_v55  ;;  %1686 = vmatpush1.bf16.msra.mxu1 %v3754_v23  ;;  %4674 = vst [vmem:[#allocation24_spill] sm:$0xff] %v3895_v12 }
 0x6e6   :  { %1646 = vmatprep.subr.bf16.mxu0 %v3757_v15  ;;  %1687 = vmatprep.subr.bf16.mxu1 %v3760_v37 }
 0x6e9   :  { %1647 = vmatpush1.bf16.msra.mxu0 %v3763_v34  ;;  %1688 = vmatpush1.bf16.msra.mxu1 %v3766_v40 }
 0x6ea   :  { %1648 = vmatprep.subr.bf16.mxu0 %v3769_v22  ;;  %1689 = vmatprep.subr.bf16.mxu1 %v3772_v53 }
 0x6ed   :  { %1649 = vmatpush1.bf16.msra.mxu0 %v3775_v32  ;;  %1690 = vmatpush1.bf16.msra.mxu1 %v3778_v56 }
 0x6ee   :  { %1650 = vmatprep.subr.bf16.mxu0 %v3781_v61  ;;  %1691 = vmatprep.subr.bf16.mxu1 %v3784_v38 }
 0x6f1   :  { %1651 = vmatpush1.bf16.msra.mxu0 %v3787_v10  ;;  %1692 = vmatpush1.bf16.msra.mxu1 %v3790_v7 }
 0x6f2   :  { %1652 = vmatprep.subr.bf16.mxu0 %v3793_v62  ;;  %1693 = vmatprep.subr.bf16.mxu1 %v3796_v54 }
 0x6f5   :  { %1653 = vmatpush1.bf16.msra.mxu0 %v3799_v58  ;;  %1694 = vmatpush1.bf16.msra.mxu1 %v3802_v59 }
 0x6f6   :  { %1654 = vmatprep.subr.bf16.mxu0 %v3805_v6  ;;  %1695 = vmatprep.subr.bf16.mxu1 %v3808_v27 }
 0x6f9   :  { %1655 = vmatpush1.bf16.msra.mxu0 %v3811_v41  ;;  %1696 = vmatpush1.bf16.msra.mxu1 %v3814_v36 }
 0x6fa   :  { %1656 = vmatprep.subr.bf16.mxu0 %v3817_v2  ;;  %1697 = vmatprep.subr.bf16.mxu1 %v3820_v21 }
 0x6fd   :  { %1657 = vmatpush1.bf16.msra.mxu0 %v3823_v47  ;;  %1698 = vmatpush1.bf16.msra.mxu1 %v3826_v43 }
 0x6fe   :  { %1658 = vmatprep.subr.bf16.mxu0 %v3829_v49  ;;  %1699 = vmatprep.subr.bf16.mxu1 %v3832_v24 }
 0x701   :  { %1659 = vmatpush1.bf16.msra.mxu0 %v3835_v16  ;;  %1700 = vmatpush1.bf16.msra.mxu1 %v3838_v29 }
 0x702   :  { %1660 = vmatprep.subr.bf16.mxu0 %v3841_v48  ;;  %1701 = vmatprep.subr.bf16.mxu1 %v3844_v17 }
 0x705   :  { %1661 = vmatpush1.bf16.msra.mxu0 %v3847_v63  ;;  %1702 = vmatpush1.bf16.msra.mxu1 %v3850_v9 }
 0x706   :  { %1662 = vmatprep.subr.bf16.mxu0 %v3853_v14  ;;  %1703 = vmatprep.subr.bf16.mxu1 %v3856_v60 }
 0x709   :  { %1663 = vmatpush1.bf16.msra.mxu0 %v3859_v35  ;;  %1704 = vmatpush1.bf16.msra.mxu1 %v3862_v57 }
 0x70a   :  { %1664 = vmatprep.subr.bf16.mxu0 %v3865_v18  ;;  %1705 = vmatprep.subr.bf16.mxu1 %v3868_v4 }
 0x70d   :  { %1665 = vmatpush1.bf16.msra.mxu0 %v3871_v28  ;;  %1706 = vmatpush1.bf16.msra.mxu1 %v3874_v52 }
 0x70e   :  { %1666 = vmatprep.subr.bf16.mxu0 %v3877_v19  ;;  %1707 = vmatprep.subr.bf16.mxu1 %v3880_v39  ;;  %v3898_v39 = vld [vmem:[#allocation2 + $0x290] sm:$0xff]  ;;  %v2488_v19 = vld [vmem:[#allocation2 + $0x18] sm:$0xff] }
 0x70f   :  { %4675 = vst [vmem:[#allocation60_spill] sm:$0xff] %v3898_v39 }
 0x711   :  { %1667 = vmatpush1.bf16.msra.mxu0 %v3883_v0  ;;  %1708 = vmatpush1.bf16.msra.mxu1 %v3886_v20  ;;  %v3901_v0 = vld [vmem:[#allocation2 + $0x2a8] sm:$0xff]  ;;  %v3904_v20 = vld [vmem:[#allocation2 + $0x2b8] sm:$0xff] }
 0x712   :  { %1668 = vmatprep.subr.bf16.mxu0 %v3889_v44  ;;  %1709 = vmatprep.subr.bf16.mxu1 %v3892_v45  ;;  %4676 = vst [vmem:[#allocation61_spill] sm:$0xff] %v3901_v0  ;;  %4677 = vst [vmem:[#allocation62_spill] sm:$0xff] %v3904_v20  ;;  %v3907_v44 = vld [vmem:[#allocation2 + $0x2a0] sm:$0xff]  ;;  %v3910_v45 = vld [vmem:[#allocation2 + $0x2b0] sm:$0xff] }
 0x713   :  { %4678 = vst [vmem:[#allocation63_spill] sm:$0xff] %v3907_v44  ;;  %4679 = vst [vmem:[#allocation64_spill] sm:$0xff] %v3910_v45 }
 0x715   :  { %1669 = vmatpush1.bf16.msra.mxu0 %v3895_v12  ;;  %1710 = vmatpush1.bf16.msra.mxu1 %v3898_v39  ;;  %v3913_v12 = vld [vmem:[#allocation2 + $0x2c8] sm:$0xff]  ;;  %v3916_v39 = vld [vmem:[#allocation2 + $0x2d8] sm:$0xff] }
 0x716   :  { %1670 = vmatprep.subr.bf16.mxu0 %v3901_v0  ;;  %1711 = vmatprep.subr.bf16.mxu1 %v3904_v20  ;;  %4680 = vst [vmem:[#allocation65_spill] sm:$0xff] %v3913_v12  ;;  %4681 = vst [vmem:[#allocation66_spill] sm:$0xff] %v3916_v39  ;;  %v3919_v0 = vld [vmem:[#allocation2 + $0x2c0] sm:$0xff]  ;;  %v3922_v20 = vld [vmem:[#allocation2 + $0x2d0] sm:$0xff] }
 0x717   :  { %4682 = vst [vmem:[#allocation67_spill] sm:$0xff] %v3919_v0  ;;  %4683 = vst [vmem:[#allocation69_spill] sm:$0xff] %v3922_v20 }
 0x719   :  { %1671 = vmatpush1.bf16.msra.mxu0 %v3907_v44  ;;  %1712 = vmatpush1.bf16.msra.mxu1 %v3910_v45  ;;  %v3925_v44 = vld [vmem:[#allocation2 + $0x2e8] sm:$0xff]  ;;  %v3928_v45 = vld [vmem:[#allocation2 + $0x2f8] sm:$0xff] }
 0x71a   :  { %1672 = vmatprep.subr.bf16.mxu0 %v3913_v12  ;;  %1713 = vmatprep.subr.bf16.mxu1 %v3916_v39  ;;  %4684 = vst [vmem:[#allocation72_spill] sm:$0xff] %v3925_v44  ;;  %4685 = vst [vmem:[#allocation73_spill] sm:$0xff] %v3928_v45  ;;  %v3931_v12 = vld [vmem:[#allocation2 + $0x2e0] sm:$0xff]  ;;  %v3934_v39 = vld [vmem:[#allocation2 + $0x2f0] sm:$0xff] }
 0x71b   :  { %4686 = vst [vmem:[#allocation74_spill] sm:$0xff] %v3931_v12  ;;  %4687 = vst [vmem:[#allocation75_spill] sm:$0xff] %v3934_v39 }
 0x71d   :  { %1673 = vmatpush1.bf16.msra.mxu0 %v3919_v0  ;;  %1714 = vmatpush1.bf16.msra.mxu1 %v3922_v20  ;;  %v2487_v0 = vld [vmem:[#allocation2 + $0x8] sm:$0xff] }
 0x71e   :  { %1674 = vmatprep.subr.bf16.mxu0 %v3925_v44  ;;  %1715 = vmatprep.subr.bf16.mxu1 %v3928_v45 }
 0x721   :  { %1675 = vmatpush1.bf16.msra.mxu0 %v3931_v12  ;;  %1716 = vmatpush1.bf16.msra.mxu1 %v3934_v39 }
 0x722   :  { %1741 = vmatprep.subr.bf16.mxu0 %v2487_v0  ;;  %1782 = vmatprep.subr.bf16.mxu1 %v2488_v19 }
 0x797   :  { %v1449_v20 = vpop.f32.mrb[40].mxu0  ;;  %v1490_v52 = vpop.f32.mrb[40].mxu1 }
 0x798   :  { %v1450_v44 = vadd.f32 %v1449_v20, %v4652_v13  ;;  %v1451_v28 = vpop.f32.mrb[41].mxu0  ;;  %v1492_v4 = vpop.f32.mrb[41].mxu1  ;;  %v1491_v19 = vadd.f32 %v1490_v52, %v4655_v50 }
 0x799   :  { %v1452_v45 = vadd.f32 %v1451_v28, %v4653_v51  ;;  %v1453_v18 = vpop.f32.mrb[42].mxu0  ;;  %v1494_v57 = vpop.f32.mrb[42].mxu1  ;;  %v1493_v0 = vadd.f32 %v1492_v4, %v4654_v5 }
 0x79a   :  { %v2042_v35 = vmul.f32 -1.442695, %v1450_v44  ;;  %v1454_v12 = vpop.f32.mrb[43].mxu0  ;;  %v1495_v60 = vpop.f32.mrb[43].mxu1 }
 0x79b   :  { %v2043_v14 = vmul.f32 -1.442695, %v1452_v45  ;;  %v2044_v39 = vmul.f32 -1.442695, %v1493_v0  ;;  %v1502_v57 = vpop.permute.xlu1 %1501  ;;  %v4688_v60 = vld [vmem:[#allocation16_spill] sm:$0xff] }
 0x79c   :  { %2247 = vpow2.f32 %v2042_v35  ;;  %v1504_v44 = vmul.f32 %v1502_v57, %v4688_v60 }
 0x79d   :  { %2249 = vpow2.f32 %v2043_v14  ;;  %v4689_v14 = vld [vmem:[#allocation17_spill] sm:$0xff] }
 0x79e   :  { %2251 = vpow2.f32 %v2044_v39  ;;  %v1505_v45 = vmul.f32 %v1502_v57, %v4689_v14  ;;  %v1507_v14 = vmul.f32 %v1502_v57, %v4486_v26 }
 0x79f   :  { %2253 = vtanh.f32 %v1491_v19 }
 0x7a6   :  { %v2248_v9 = vpop.eup %2247 }
 0x7a7   :  { %v2250_v63 = vpop.eup %2249  ;;  %v1621_v20 = vadd.f32 1.0, %v2248_v9  ;;  %v1508_v9 = vadd.f32 %v1504_v44, %v4484_v1 }
 0x7a8   :  { %v1627_v13 = vadd.f32 1.0, %v2250_v63  ;;  %v2252_v18 = vpop.eup %2251  ;;  %v1509_v63 = vadd.f32 %v1505_v45, %v4485_v8  ;;  %v1511_v45 = vadd.f32 %v1507_v14, %v4416_v31 }
 0x7a9   :  { %2255 = vrcp.f32 %v1621_v20  ;;  %v2254_v28 = vpop.eup %2253  ;;  %v1634_v0 = vadd.f32 1.0, %v2252_v18 }
 0x7aa   :  { %2257 = vrcp.f32 %v1627_v13 }
 0x7ab   :  { %2259 = vrcp.f32 %v1634_v0 }
 0x7b3   :  { %v2256_v35 = vpop.eup %2255 }
 0x7b4   :  { %v2258_v4 = vpop.eup %2257  ;;  %v1638_v12 = vmul.f32 %v2256_v35, %v2254_v28 }
 0x7b5   :  { %v1637_v52 = vmul.f32 %v2258_v4, %v3702_v33  ;;  %v1506_v4 = vmul.f32 %v1502_v57, %v4417_v3  ;;  %v2260_v0 = vpop.eup %2259 }
 0x7b7   :  { %v1546_v39 = vpop.f32.mrb[44].mxu0  ;;  %v1587_v19 = vpop.f32.mrb[44].mxu1  ;;  %v3946_v13 = vadd.f32 %v1638_v12, %v1637_v52 }
 0x7b8   :  { %v1547_v20 = vadd.f32 %v1546_v39, %v1508_v9  ;;  %v1548_v50 = vpop.f32.mrb[45].mxu0  ;;  %v1589_v60 = vpop.f32.mrb[45].mxu1 }
 0x7b9   :  { %v1549_v5 = vadd.f32 %v1548_v50, %v1509_v63  ;;  %v1550_v51 = vpop.f32.mrb[46].mxu0  ;;  %v1591_v28 = vpop.f32.mrb[46].mxu1  ;;  %2261 = vtanh.f32 %v3946_v13  ;;  %v1590_v12 = vadd.f32 %v1589_v60, %v1511_v45  ;;  %v1510_v50 = vadd.f32 %v1506_v4, %v4418_v42 }
 0x7ba   :  { %v2039_v33 = vmul.f32 -1.442695, %v1547_v20  ;;  %v1551_v18 = vpop.f32.mrb[47].mxu0  ;;  %v1592_v44 = vpop.f32.mrb[47].mxu1 }
 0x7bb   :  { %v2040_v35 = vmul.f32 -1.442695, %v1549_v5  ;;  %v2041_v9 = vmul.f32 -1.442695, %v1590_v12  ;;  %v1588_v51 = vadd.f32 %v1587_v19, %v1510_v50 }
 0x7bc   :  { %2263 = vpow2.f32 %v2039_v33 }
 0x7bd   :  { %2265 = vpow2.f32 %v2040_v35 }
 0x7be   :  { %2267 = vpow2.f32 %v2041_v9  ;;  %v2490_v9 = vld [vmem:[#allocation2 + $0x10] sm:$0xff] }
 0x7bf   :  { %2269 = vtanh.f32 %v1588_v51  ;;  %v2491_v51 = vld [vmem:[#allocation2 + $0x28] sm:$0xff] }
 0x7c3   :  { %v2262_v52 = vpop.eup %2261 }
 0x7c4   :  { %v1641_v39 = vmul.f32 %v2262_v52, %v2260_v0  ;;  %v2489_v52 = vld [vmem:[#allocation2] sm:$0xff] }
 0x7c6   :  { %v2264_v63 = vpop.eup %2263  ;;  %v1643_v28 = vpack.c.bf16 %v1641_v39, %v1641_v39  ;;  %v2493_v39 = vld [vmem:[#allocation2 + $0x20] sm:$0xff] }
 0x7c7   :  { %v2266_v20 = vpop.eup %2265  ;;  %v1597_v18 = vadd.f32 1.0, %v2264_v63  ;;  %v2494_v63 = vld [vmem:[#allocation2 + $0x30] sm:$0xff] }
 0x7c8   :  { %v1603_v5 = vadd.f32 1.0, %v2266_v20  ;;  %1676 = vmatprep.mubr.bf16.mxu0 %v1643_v28  ;;  %1717 = vmatprep.mubr.bf16.mxu1 %v1643_v28  ;;  %v2268_v57 = vpop.eup %2267  ;;  %v2495_v28 = vld [vmem:[#allocation2 + $0x48] sm:$0xff]  ;;  %v2496_v20 = vld [vmem:[#allocation2 + $0x58] sm:$0xff] }
 0x7c9   :  { %2271 = vrcp.f32 %v1597_v18  ;;  %v2270_v60 = vpop.eup %2269  ;;  %v1610_v35 = vadd.f32 1.0, %v2268_v57  ;;  %v2497_v18 = vld [vmem:[#allocation2 + $0x40] sm:$0xff]  ;;  %v2499_v57 = vld [vmem:[#allocation2 + $0x68] sm:$0xff] }
 0x7ca   :  { %2273 = vrcp.f32 %v1603_v5  ;;  %v2498_v5 = vld [vmem:[#allocation2 + $0x50] sm:$0xff] }
 0x7cb   :  { %2275 = vrcp.f32 %v1610_v35  ;;  %v2505_v35 = vld [vmem:[#allocation2 + $0x80] sm:$0xff] }
 0x7d3   :  { %v2272_v14 = vpop.eup %2271 }
 0x7d4   :  { %v2274_v33 = vpop.eup %2273  ;;  %v1614_v44 = vmul.f32 %v2272_v14, %v2270_v60  ;;  %v2500_v60 = vld [vmem:[#allocation2 + $0x78] sm:$0xff]  ;;  %v2501_v14 = vld [vmem:[#allocation2 + $0x60] sm:$0xff] }
 0x7d5   :  { %v1613_v19 = vmul.f32 %v2274_v33, %v3710_v46  ;;  %v2276_v4 = vpop.eup %2275  ;;  %v2492_v46 = vld [vmem:[#allocation2 + $0x38] sm:$0xff]  ;;  %v2502_v33 = vld [vmem:[#allocation2 + $0x70] sm:$0xff] }
 0x7d7   :  { %v3954_v45 = vadd.f32 %v1614_v44, %v1613_v19  ;;  %v2504_v44 = vld [vmem:[#allocation2 + $0x98] sm:$0xff]  ;;  %v2506_v19 = vld [vmem:[#allocation2 + $0x90] sm:$0xff] }
 0x7d9   :  { %2277 = vtanh.f32 %v3954_v45 }
 0x7e3   :  { %v2278_v12 = vpop.eup %2277 }
 0x7e4   :  { %v1617_v0 = vmul.f32 %v2278_v12, %v2276_v4  ;;  %v2507_v4 = vld [vmem:[#allocation2 + $0xa8] sm:$0xff]  ;;  %v2508_v12 = vld [vmem:[#allocation2 + $0xb8] sm:$0xff] }
 0x7e6   :  { %v3957_v50 = vpack.c.bf16 %v1617_v0, %v1617_v0  ;;  %v2509_v0 = vld [vmem:[#allocation2 + $0xa0] sm:$0xff] }
 0x7e8   :  { %1677 = vmatmul.mubr.bf16.vlgmr.msra.gmra.mrb[48].mxu0 %v3957_v50  ;;  %1718 = vmatmul.mubr.bf16.vlgmr.msra.gmra.mrb[48].mxu1 %v3957_v50 }
 0x7e9   :  { %1742 = vmatpush1.bf16.msra.mxu0 %v2489_v52  ;;  %1783 = vmatpush1.bf16.msra.mxu1 %v2490_v9  ;;  %v2510_v52 = vld [vmem:[#allocation2 + $0xb0] sm:$0xff]  ;;  %v2511_v9 = vld [vmem:[#allocation2 + $0xc8] sm:$0xff] }
 0x7ea   :  { %1743 = vmatprep.subr.bf16.mxu0 %v2491_v51  ;;  %1784 = vmatprep.subr.bf16.mxu1 %v2492_v46  ;;  %v2512_v51 = vld [vmem:[#allocation2 + $0xd8] sm:$0xff]  ;;  %v2513_v46 = vld [vmem:[#allocation2 + $0xc0] sm:$0xff] }
 0x7eb   :  { %1773 = vmatprep.mubr.bf16.mxu0 %v4379_v11  ;;  %1814 = vmatprep.mubr.bf16.mxu1 %v4379_v11  ;;  %v2503_v11 = vld [vmem:[#allocation2 + $0x88] sm:$0xff] }
 0x7ed   :  { %1744 = vmatpush1.bf16.msra.mxu0 %v2493_v39  ;;  %1785 = vmatpush1.bf16.msra.mxu1 %v2494_v63  ;;  %v2514_v39 = vld [vmem:[#allocation2 + $0xd0] sm:$0xff]  ;;  %v2515_v63 = vld [vmem:[#allocation2 + $0xe8] sm:$0xff] }
 0x7ee   :  { %1745 = vmatprep.subr.bf16.mxu0 %v2495_v28  ;;  %1786 = vmatprep.subr.bf16.mxu1 %v2496_v20  ;;  %v2516_v28 = vld [vmem:[#allocation2 + $0xf8] sm:$0xff]  ;;  %v2517_v20 = vld [vmem:[#allocation2 + $0xe0] sm:$0xff] }
 0x7f1   :  { %1746 = vmatpush1.bf16.msra.mxu0 %v2497_v18  ;;  %1787 = vmatpush1.bf16.msra.mxu1 %v2498_v5  ;;  %v2518_v18 = vld [vmem:[#allocation2 + $0xf0] sm:$0xff] }
 0x7f2   :  { %1747 = vmatprep.subr.bf16.mxu0 %v2499_v57  ;;  %1788 = vmatprep.subr.bf16.mxu1 %v2500_v60  ;;  %v4721_v57 = vld [vmem:[#allocation13_spill] sm:$0xff] }
 0x7f5   :  { %1748 = vmatpush1.bf16.msra.mxu0 %v2501_v14  ;;  %1789 = vmatpush1.bf16.msra.mxu1 %v2502_v33 }
 0x7f6   :  { %1749 = vmatprep.subr.bf16.mxu0 %v2503_v11  ;;  %1790 = vmatprep.subr.bf16.mxu1 %v2504_v44 }
 0x7f9   :  { %1750 = vmatpush1.bf16.msra.mxu0 %v2505_v35  ;;  %1791 = vmatpush1.bf16.msra.mxu1 %v2506_v19 }
 0x7fa   :  { %1751 = vmatprep.subr.bf16.mxu0 %v2507_v4  ;;  %1792 = vmatprep.subr.bf16.mxu1 %v2508_v12  ;;  %v4722_v4 = vld [vmem:[#allocation15_spill] sm:$0xff] }
 0x7fd   :  { %1752 = vmatpush1.bf16.msra.mxu0 %v2509_v0  ;;  %1793 = vmatpush1.bf16.msra.mxu1 %v2510_v52  ;;  %v4723_v52 = vld [vmem:[#allocation14_spill] sm:$0xff] }
 0x7fe   :  { %1753 = vmatprep.subr.bf16.mxu0 %v2511_v9  ;;  %1794 = vmatprep.subr.bf16.mxu1 %v2512_v51 }
 0x801   :  { %1754 = vmatpush1.bf16.msra.mxu0 %v2513_v46  ;;  %1795 = vmatpush1.bf16.msra.mxu1 %v2514_v39 }
 0x802   :  { %1755 = vmatprep.subr.bf16.mxu0 %v2515_v63  ;;  %1796 = vmatprep.subr.bf16.mxu1 %v2516_v28  ;;  %v1731_v28 = vpop.permute.xlu0 %1730 }
 0x805   :  { %1756 = vmatpush1.bf16.msra.mxu0 %v2517_v20  ;;  %1797 = vmatpush1.bf16.msra.mxu1 %v2518_v18 }
 0x806   :  { %1873 = vmatprep.subr.bf16.mxu0 %v3745_v30  ;;  %1914 = vmatprep.subr.bf16.mxu1 %v3748_v25  ;;  %v4690_v30 = vld [vmem:[#allocation68_spill] sm:$0xff]  ;;  %v4691_v25 = vld [vmem:[#allocation70_spill] sm:$0xff] }
 0x808   :  { %1774 = vmatmul.mubr.bf16.vlgmr.msra.gmra.mrb[52].mxu0 %v3957_v50  ;;  %1815 = vmatmul.mubr.bf16.vlgmr.msra.gmra.mrb[52].mxu1 %v3957_v50 }
 0x809   :  { %1874 = vmatpush1.bf16.msra.mxu0 %v3751_v55  ;;  %1915 = vmatpush1.bf16.msra.mxu1 %v3754_v23  ;;  %v4692_v55 = vld [vmem:[#allocation71_spill] sm:$0xff]  ;;  %v4693_v23 = vld [vmem:[#allocation54_spill] sm:$0xff] }
 0x80a   :  { %1875 = vmatprep.subr.bf16.mxu0 %v3757_v15  ;;  %1916 = vmatprep.subr.bf16.mxu1 %v3760_v37  ;;  %v4694_v15 = vld [vmem:[#allocation55_spill] sm:$0xff]  ;;  %v4695_v37 = vld [vmem:[#allocation56_spill] sm:$0xff] }
 0x80d   :  { %1876 = vmatpush1.bf16.msra.mxu0 %v3763_v34  ;;  %1917 = vmatpush1.bf16.msra.mxu1 %v3766_v40  ;;  %v4696_v34 = vld [vmem:[#allocation57_spill] sm:$0xff]  ;;  %v4697_v40 = vld [vmem:[#allocation58_spill] sm:$0xff] }
 0x80e   :  { %1877 = vmatprep.subr.bf16.mxu0 %v3769_v22  ;;  %1918 = vmatprep.subr.bf16.mxu1 %v3772_v53  ;;  %v4698_v22 = vld [vmem:[#allocation59_spill] sm:$0xff]  ;;  %v4699_v53 = vld [vmem:[#allocation82_spill] sm:$0xff] }
 0x811   :  { %1878 = vmatpush1.bf16.msra.mxu0 %v3775_v32  ;;  %1919 = vmatpush1.bf16.msra.mxu1 %v3778_v56  ;;  %v4700_v32 = vld [vmem:[#allocation18_spill] sm:$0xff]  ;;  %v4701_v56 = vld [vmem:[#allocation19_spill] sm:$0xff] }
 0x812   :  { %1879 = vmatprep.subr.bf16.mxu0 %v3781_v61  ;;  %1920 = vmatprep.subr.bf16.mxu1 %v3784_v38  ;;  %v4702_v61 = vld [vmem:[#allocation20_spill] sm:$0xff]  ;;  %v4703_v38 = vld [vmem:[#allocation21_spill] sm:$0xff] }
 0x815   :  { %1880 = vmatpush1.bf16.msra.mxu0 %v3787_v10  ;;  %1921 = vmatpush1.bf16.msra.mxu1 %v3790_v7  ;;  %v4704_v10 = vld [vmem:[#allocation22_spill] sm:$0xff]  ;;  %v4705_v7 = vld [vmem:[#allocation23_spill] sm:$0xff] }
 0x816   :  { %1881 = vmatprep.subr.bf16.mxu0 %v3793_v62  ;;  %1922 = vmatprep.subr.bf16.mxu1 %v3796_v54  ;;  %v4706_v62 = vld [vmem:[#allocation24_spill] sm:$0xff] }
 0x817   :  { %v4707_v54 = vld [vmem:[#allocation60_spill] sm:$0xff] }
 0x819   :  { %1882 = vmatpush1.bf16.msra.mxu0 %v3799_v58  ;;  %1923 = vmatpush1.bf16.msra.mxu1 %v3802_v59  ;;  %v4708_v58 = vld [vmem:[#allocation61_spill] sm:$0xff]  ;;  %v4709_v59 = vld [vmem:[#allocation62_spill] sm:$0xff] }
 0x81a   :  { %1883 = vmatprep.subr.bf16.mxu0 %v3805_v6  ;;  %1924 = vmatprep.subr.bf16.mxu1 %v3808_v27  ;;  %v4710_v6 = vld [vmem:[#allocation63_spill] sm:$0xff]  ;;  %v4711_v27 = vld [vmem:[#allocation64_spill] sm:$0xff] }
 0x81d   :  { %1884 = vmatpush1.bf16.msra.mxu0 %v3811_v41  ;;  %1925 = vmatpush1.bf16.msra.mxu1 %v3814_v36  ;;  %v4712_v41 = vld [vmem:[#allocation65_spill] sm:$0xff]  ;;  %v4713_v36 = vld [vmem:[#allocation66_spill] sm:$0xff] }
 0x81e   :  { %1885 = vmatprep.subr.bf16.mxu0 %v3817_v2  ;;  %1926 = vmatprep.subr.bf16.mxu1 %v3820_v21  ;;  %v4714_v2 = vld [vmem:[#allocation67_spill] sm:$0xff]  ;;  %v4715_v21 = vld [vmem:[#allocation69_spill] sm:$0xff] }
 0x821   :  { %1886 = vmatpush1.bf16.msra.mxu0 %v3823_v47  ;;  %1927 = vmatpush1.bf16.msra.mxu1 %v3826_v43  ;;  %v4716_v47 = vld [vmem:[#allocation72_spill] sm:$0xff]  ;;  %v4717_v43 = vld [vmem:[#allocation73_spill] sm:$0xff] }
 0x822   :  { %1887 = vmatprep.subr.bf16.mxu0 %v3829_v49  ;;  %1928 = vmatprep.subr.bf16.mxu1 %v3832_v24  ;;  %v4718_v49 = vld [vmem:[#allocation74_spill] sm:$0xff]  ;;  %v4719_v24 = vld [vmem:[#allocation75_spill] sm:$0xff] }
 0x825   :  { %1888 = vmatpush1.bf16.msra.mxu0 %v3835_v16  ;;  %1929 = vmatpush1.bf16.msra.mxu1 %v3838_v29 }
 0x826   :  { %1889 = vmatprep.subr.bf16.mxu0 %v3841_v48  ;;  %1930 = vmatprep.subr.bf16.mxu1 %v3844_v17  ;;  %v4720_v48 = vld [vmem:[#allocation12_spill] sm:$0xff] }
 0x829   :  { %1890 = vmatpush1.bf16.msra.mxu0 %v4690_v30  ;;  %1931 = vmatpush1.bf16.msra.mxu1 %v4691_v25  ;;  %v4724_v30 = vld [vmem:[#allocation16_spill] sm:$0xff] }
 0x82a   :  { %1891 = vmatprep.subr.bf16.mxu0 %v4692_v55  ;;  %1932 = vmatprep.subr.bf16.mxu1 %v4693_v23  ;;  %v1733_v25 = vmul.f32 %v1731_v28, %v4724_v30  ;;  %v4725_v23 = vld [vmem:[#allocation17_spill] sm:$0xff] }
 0x82d   :  { %1892 = vmatpush1.bf16.msra.mxu0 %v4694_v15  ;;  %1933 = vmatpush1.bf16.msra.mxu1 %v4695_v37  ;;  %v1734_v15 = vmul.f32 %v1731_v28, %v4725_v23 }
 0x82e   :  { %1893 = vmatprep.subr.bf16.mxu0 %v4696_v34  ;;  %1934 = vmatprep.subr.bf16.mxu1 %v4697_v40 }
 0x831   :  { %1894 = vmatpush1.bf16.msra.mxu0 %v4698_v22  ;;  %1935 = vmatpush1.bf16.msra.mxu1 %v4699_v53  ;;  %v1737_v53 = vadd.f32 %v1733_v25, %v4484_v1 }
 0x832   :  { %1895 = vmatprep.subr.bf16.mxu0 %v4700_v32  ;;  %1936 = vmatprep.subr.bf16.mxu1 %v4701_v56 }
 0x835   :  { %1896 = vmatpush1.bf16.msra.mxu0 %v4702_v61  ;;  %1937 = vmatpush1.bf16.msra.mxu1 %v4703_v38  ;;  %v1738_v61 = vadd.f32 %v1734_v15, %v4485_v8 }
 0x836   :  { %1897 = vmatprep.subr.bf16.mxu0 %v4704_v10  ;;  %1938 = vmatprep.subr.bf16.mxu1 %v4705_v7 }
 0x839   :  { %1898 = vmatpush1.bf16.msra.mxu0 %v4706_v62  ;;  %1939 = vmatpush1.bf16.msra.mxu1 %v4707_v54 }
 0x83a   :  { %1899 = vmatprep.subr.bf16.mxu0 %v4708_v58  ;;  %1940 = vmatprep.subr.bf16.mxu1 %v4709_v59  ;;  %v1736_v58 = vmul.f32 %v1731_v28, %v4486_v26 }
 0x83c   :  { %v1740_v8 = vadd.f32 %v1736_v58, %v4416_v31  ;;  %v4726_v58 = vld [vmem:[#allocation10_spill] sm:$0xff] }
 0x83d   :  { %1900 = vmatpush1.bf16.msra.mxu0 %v4710_v6  ;;  %1941 = vmatpush1.bf16.msra.mxu1 %v4711_v27 }
 0x83e   :  { %1901 = vmatprep.subr.bf16.mxu0 %v4712_v41  ;;  %1942 = vmatprep.subr.bf16.mxu1 %v4713_v36  ;;  %v1735_v36 = vmul.f32 %v1731_v28, %v4417_v3 }
 0x841   :  { %1902 = vmatpush1.bf16.msra.mxu0 %v4714_v2  ;;  %1943 = vmatpush1.bf16.msra.mxu1 %v4715_v21 }
 0x842   :  { %1903 = vmatprep.subr.bf16.mxu0 %v4716_v47  ;;  %1944 = vmatprep.subr.bf16.mxu1 %v4717_v43  ;;  %v1739_v47 = vadd.f32 %v1735_v36, %v4418_v42 }
 0x845   :  { %1904 = vmatpush1.bf16.msra.mxu0 %v4718_v49  ;;  %1945 = vmatpush1.bf16.msra.mxu1 %v4719_v24 }
 0x8bb   :  { %v1678_v16 = vpop.f32.mrb[48].mxu0  ;;  %v1719_v29 = vpop.f32.mrb[48].mxu1 }
 0x8bc   :  { %v1679_v17 = vadd.f32 %v1678_v16, %v4720_v48  ;;  %v1680_v50 = vpop.f32.mrb[49].mxu0  ;;  %v1721_v5 = vpop.f32.mrb[49].mxu1  ;;  %v1720_v9 = vadd.f32 %v1719_v29, %v4723_v52 }
 0x8bd   :  { %v1681_v60 = vadd.f32 %v1680_v50, %v4721_v57  ;;  %v1682_v14 = vpop.f32.mrb[50].mxu0  ;;  %v1723_v33 = vpop.f32.mrb[50].mxu1  ;;  %v1722_v12 = vadd.f32 %v1721_v5, %v4722_v4 }
 0x8be   :  { %v2049_v11 = vmul.f32 -1.442695, %v1679_v17  ;;  %v1683_v44 = vpop.f32.mrb[51].mxu0  ;;  %v1724_v35 = vpop.f32.mrb[51].mxu1 }
 0x8bf   :  { %v2050_v19 = vmul.f32 -1.442695, %v1681_v60  ;;  %v2051_v0 = vmul.f32 -1.442695, %v1722_v12 }
 0x8c0   :  { %2279 = vpow2.f32 %v2049_v11 }
 0x8c1   :  { %2281 = vpow2.f32 %v2050_v19 }
 0x8c2   :  { %2283 = vpow2.f32 %v2051_v0 }
 0x8c3   :  { %2285 = vtanh.f32 %v1720_v9 }
 0x8ca   :  { %v2280_v51 = vpop.eup %2279 }
 0x8cb   :  { %v2282_v46 = vpop.eup %2281  ;;  %v1850_v39 = vadd.f32 1.0, %v2280_v51 }
 0x8cc   :  { %v1856_v63 = vadd.f32 1.0, %v2282_v46  ;;  %v2284_v20 = vpop.eup %2283 }
 0x8cd   :  { %2287 = vrcp.f32 %v1850_v39  ;;  %v2286_v18 = vpop.eup %2285  ;;  %v1863_v40 = vadd.f32 1.0, %v2284_v20 }
 0x8ce   :  { %2289 = vrcp.f32 %v1856_v63 }
 0x8cf   :  { %2291 = vrcp.f32 %v1863_v40 }
 0x8d7   :  { %v2288_v55 = vpop.eup %2287 }
 0x8d8   :  { %v2290_v37 = vpop.eup %2289  ;;  %v1867_v34 = vmul.f32 %v2288_v55, %v2286_v18 }
 0x8d9   :  { %v1866_v22 = vmul.f32 %v2290_v37, %v3946_v13  ;;  %v2292_v21 = vpop.eup %2291 }
 0x8db   :  { %v1775_v32 = vpop.f32.mrb[52].mxu0  ;;  %v1816_v56 = vpop.f32.mrb[52].mxu1  ;;  %v4038_v38 = vadd.f32 %v1867_v34, %v1866_v22 }
 0x8dc   :  { %v1776_v10 = vadd.f32 %v1775_v32, %v1737_v53  ;;  %v1777_v7 = vpop.f32.mrb[53].mxu0  ;;  %v1818_v62 = vpop.f32.mrb[53].mxu1  ;;  %v1817_v49 = vadd.f32 %v1816_v56, %v1739_v47 }
 0x8dd   :  { %v1778_v54 = vadd.f32 %v1777_v7, %v1738_v61  ;;  %v1779_v59 = vpop.f32.mrb[54].mxu0  ;;  %v1820_v6 = vpop.f32.mrb[54].mxu1  ;;  %2293 = vtanh.f32 %v4038_v38  ;;  %v1819_v2 = vadd.f32 %v1818_v62, %v1740_v8 }
 0x8de   :  { %v2046_v13 = vmul.f32 -1.442695, %v1776_v10  ;;  %v1780_v27 = vpop.f32.mrb[55].mxu0  ;;  %v1821_v1 = vpop.f32.mrb[55].mxu1 }
 0x8df   :  { %v2047_v41 = vmul.f32 -1.442695, %v1778_v54  ;;  %v2048_v26 = vmul.f32 -1.442695, %v1819_v2  ;;  %v4727_v27 = vld [vmem:[#allocation11_spill] sm:$0xff] }
 0x8e0   :  { %2295 = vpow2.f32 %v2046_v13 }
 0x8e1   :  { %2297 = vpow2.f32 %v2047_v41 }
 0x8e2   :  { %2299 = vpow2.f32 %v2048_v26 }
 0x8e3   :  { %2301 = vtanh.f32 %v1817_v49 }
 0x8e7   :  { %v2294_v43 = vpop.eup %2293 }
 0x8e8   :  { %v1870_v24 = vmul.f32 %v2294_v43, %v2292_v21 }
 0x8ea   :  { %v2296_v16 = vpop.eup %2295  ;;  %v1872_v29 = vpack.c.bf16 %v1870_v24, %v1870_v24 }
 0x8eb   :  { %v2298_v17 = vpop.eup %2297  ;;  %v1826_v50 = vadd.f32 1.0, %v2296_v16 }
 0x8ec   :  { %v1832_v5 = vadd.f32 1.0, %v2298_v17  ;;  %1905 = vmatprep.mubr.bf16.mxu0 %v1872_v29  ;;  %1946 = vmatprep.mubr.bf16.mxu1 %v1872_v29  ;;  %v2300_v31 = vpop.eup %2299 }
 0x8ed   :  { %2303 = vrcp.f32 %v1826_v50  ;;  %v2302_v3 = vpop.eup %2301  ;;  %v1839_v33 = vadd.f32 1.0, %v2300_v31 }
 0x8ee   :  { %2305 = vrcp.f32 %v1832_v5 }
 0x8ef   :  { %2307 = vrcp.f32 %v1839_v33 }
 0x8f7   :  { %v2304_v60 = vpop.eup %2303 }
 0x8f8   :  { %v2306_v14 = vpop.eup %2305  ;;  %v1843_v42 = vmul.f32 %v2304_v60, %v2302_v3 }
 0x8f9   :  { %v1842_v11 = vmul.f32 %v2306_v14, %v3954_v45  ;;  %v2308_v35 = vpop.eup %2307 }
 0x8fb   :  { %v1844_v44 = vadd.f32 %v1843_v42, %v1842_v11 }
 0x8fd   :  { %2309 = vtanh.f32 %v1844_v44 }
 0x907   :  { %v2310_v19 = vpop.eup %2309 }
 0x908   :  { %v1846_v12 = vmul.f32 %v2310_v19, %v2308_v35 }
 0x90a   :  { %v1871_v0 = vpack.c.bf16 %v1846_v12, %v1846_v12 }
 0x90c   :  { %1906 = vmatmul.mubr.bf16.vlgmr.msra.gmra.mrb[56].mxu0 %v1871_v0  ;;  %1947 = vmatmul.mubr.bf16.vlgmr.msra.gmra.mrb[56].mxu1 %v1871_v0 }
 0x9df   :  { %v1907_v9 = vpop.f32.mrb[56].mxu0  ;;  %v1948_v51 = vpop.f32.mrb[56].mxu1 }
 0x9e0   :  { %v1908_v46 = vadd.f32 %v1907_v9, %v4720_v48  ;;  %v1909_v39 = vpop.f32.mrb[57].mxu0  ;;  %v1950_v63 = vpop.f32.mrb[57].mxu1  ;;  %v1949_v37 = vadd.f32 %v1948_v51, %v4723_v52 }
 0x9e1   :  { %v1910_v28 = vadd.f32 %v1909_v39, %v4721_v57  ;;  %v1911_v20 = vpop.f32.mrb[58].mxu0  ;;  %v1952_v18 = vpop.f32.mrb[58].mxu1  ;;  %v1951_v23 = vadd.f32 %v1950_v63, %v4722_v4 }
 0x9e2   :  { %v2052_v45 = vmul.f32 -1.442695, %v1908_v46  ;;  %v1912_v30 = vpop.f32.mrb[59].mxu0  ;;  %v1953_v25 = vpop.f32.mrb[59].mxu1 }
 0x9e3   :  { %v2053_v55 = vmul.f32 -1.442695, %v1910_v28  ;;  %v2054_v15 = vmul.f32 -1.442695, %v1951_v23 }
 0x9e4   :  { %2311 = vpow2.f32 %v2052_v45 }
 0x9e5   :  { %2313 = vpow2.f32 %v2053_v55 }
 0x9e6   :  { %2315 = vpow2.f32 %v2054_v15 }
 0x9e7   :  { %2317 = vtanh.f32 %v1949_v37 }
 0x9ee   :  { %v2312_v34 = vpop.eup %2311 }
 0x9ef   :  { %v2314_v40 = vpop.eup %2313  ;;  %v1958_v48 = vadd.f32 1.0, %v2312_v34 }
 0x9f0   :  { %v1964_v22 = vadd.f32 1.0, %v2314_v40  ;;  %v2316_v57 = vpop.eup %2315 }
 0x9f1   :  { %2319 = vrcp.f32 %v1958_v48  ;;  %v2318_v53 = vpop.eup %2317  ;;  %v1971_v10 = vadd.f32 1.0, %v2316_v57 }
 0x9f2   :  { %2321 = vrcp.f32 %v1964_v22 }
 0x9f3   :  { %2323 = vrcp.f32 %v1971_v10 }
 0x9fb   :  { %v2320_v32 = vpop.eup %2319 }
 0x9fc   :  { %v2322_v56 = vpop.eup %2321  ;;  %v1975_v61 = vmul.f32 %v2320_v32, %v2318_v53 }
 0x9fd   :  { %v1974_v7 = vmul.f32 %v2322_v56, %v4038_v38  ;;  %v2324_v52 = vpop.eup %2323 }
 0x9ff   :  { %v1976_v4 = vadd.f32 %v1975_v61, %v1974_v7 }
 0xa01   :  { %2325 = vtanh.f32 %v1976_v4 }
 0xa0b   :  { %v2326_v62 = vpop.eup %2325 }
 0xa0c   :  { %v1978_v54 = vmul.f32 %v2326_v62, %v2324_v52 }
 0xa0e   :  { %v1979_v59 = vmul.f32 %v1978_v54, %v4726_v58 }
 0xa10   :  { %v1981_v6 = vsel %vm1980_vm0, %v1979_v59, 0.0 }
 0xa11   :  { %1982 = vadd.xlane.f32.xlu1 %v1981_v6 }
 0xa9e   :  { %v1983_v13 = vpop.xlane.xlu1 %1982 }
 0xa9f   :  { %v1984_v1 = vadd.f32 %v1983_v13, %v4727_v27 }
 0xaa1   :  { %1986 = vst.msk [vmem:[%s4059_s3] sm:$0x3] %vm1985_vm1, %v1984_v1 }
 0xaa2   :  { %1991 = vsyncpa [#allocation5], 1 }
 0xaa3   :  { %1992 = vsyncmov [#allocation3] }
 0xaa6   :  { %s1993_s27 = vpop.sfrf %1992 }
 0xaa7   :  { %p2055_p8 = scmp.ne.s32.totalorder %s1993_s27, 0 }
 0xaa9   :  { %1997 = shalt.err (%p2055_p8)  }

</bundles_post_ra>
